<compile_context>
chip_gen: v5e
topology: v5e:2x2
jax: 0.10.0
libtpu: 0.0.40
codegen_flags: <defaults>
</compile_context>

<pallas_src>
import jax
import jax.numpy as jnp
from jax.experimental import pallas as pl
from jax.experimental.pallas import tpu as pltpu

# ---- module hyper-parameters (small, forward-consistent shapes) -------------
D = 8            # number of pts_linears layers
W = 32           # hidden width (PyTorch default 256; kept small per instructions)
HALF_W = W // 2
IN_PTS = 3       # input_ch
IN_VIEWS = 3     # input_ch_views
IN_FEAT = 8      # input_ch_feat
SKIPS = (4,)
BETA_MIN = 0.01
OUT_DIM = 5      # [rgb(3), alpha(1), uncert(1)]
C_IN = IN_PTS + IN_FEAT + IN_VIEWS
MAX_IN = W       # widest contraction dim in the slab (layer-5 is split, so <= W)


# --------------------------- parameter slab layout ----------------------------
def _row_layouts():
    """Static row layout of the packed weight / bias slabs (channel-major)."""
    w_items = [("pb", W, IN_FEAT), ("l0", W, IN_PTS)]
    for i in range(1, D):
        if (i - 1) in SKIPS:
            # layer after the skip: input is concat([pts, h]) -> split weight
            w_items += [(f"l{i}_pts", W, IN_PTS), (f"l{i}_h", W, W)]
        else:
            w_items += [(f"l{i}", W, W)]
    w_items += [
        ("head", W + 2, W),          # rows: [feature(0:W), alpha(W), uncert(W+1)]
        ("vw_f", HALF_W, W),         # views_linears[0] weight, feature columns
        ("vw_v", HALF_W, IN_VIEWS),  # views_linears[0] weight, view-dir columns
        ("rgb", 3, HALF_W),
    ]
    b_items = ([("pb", W)] + [(f"l{i}", W) for i in range(D)]
               + [("head", W + 2), ("views", HALF_W), ("rgb", 3)])

    def layout(items, align):
        offs, r = {}, 0
        for name, out, *_ in items:
            offs[name] = r
            r += ((out + align - 1) // align) * align
        return offs, r

    w_offs, w_rows = layout(w_items, 16)   # bf16 sublane tile = 16 rows
    b_offs, b_rows = layout(b_items, 8)    # f32 sublane tile = 8 rows
    return w_items, w_offs, w_rows, b_items, b_offs, b_rows


def pack_params(p):
    """Pack the per-layer (out, in) f32 weights / (out,) biases into two slabs."""
    w_items, w_offs, w_rows, b_items, b_offs, b_rows = _row_layouts()

    wmats = {
        "pb": p["pb_w"],
        "l0": p["l0_w"],
        "head": jnp.concatenate([p["feat_w"], p["alpha_w"], p["unc_w"]], axis=0),
        "vw_f": p["views_w"][:, :W],
        "vw_v": p["views_w"][:, W:],
        "rgb": p["rgb_w"],
    }
    for i in range(1, D):
        if (i - 1) in SKIPS:
            wmats[f"l{i}_pts"] = p[f"l{i}_w"][:, :IN_PTS]
            wmats[f"l{i}_h"] = p[f"l{i}_w"][:, IN_PTS:]
        else:
            wmats[f"l{i}"] = p[f"l{i}_w"]

    bvecs = {
        "pb": p["pb_b"],
        "head": jnp.concatenate([p["feat_b"], p["alpha_b"], p["unc_b"]]),
        "views": p["views_b"],
        "rgb": p["rgb_b"],
    }
    for i in range(D):
        bvecs[f"l{i}"] = p[f"l{i}_b"]

    wslab = jnp.zeros((w_rows, MAX_IN), jnp.bfloat16)
    for name, out, inn in w_items:
        r = w_offs[name]
        wslab = wslab.at[r:r + out, :inn].set(wmats[name].astype(jnp.bfloat16))

    bslab = jnp.zeros((b_rows, 1), jnp.float32)
    for name, out in b_items:
        r = b_offs[name]
        bslab = bslab.at[r:r + out, 0].set(bvecs[name])

    return wslab, bslab


# ------------------------------ Pallas kernel --------------------------------
def _make_kernel(w_offs, b_offs):
    bf16 = jnp.bfloat16
    f32 = jnp.float32

    def kernel(x_ref, w_ref, b_ref, o_ref):
        # x_ref: (C_IN, tile_n) bf16 channel-major; o_ref: (OUT_DIM, tile_n) f32
        def wm(name, out, inn):            # bf16 weight block (out, inn)
            r = w_offs[name]
            return w_ref[r:r + out, :inn]

        def bv(name, out):                 # f32 bias column (out, 1)
            r = b_offs[name]
            return b_ref[r:r + out, :]

        def mm(w, a):                      # bf16 MXU matmul, f32 accumulate
            return jnp.dot(w, a, preferred_element_type=f32)

        # One whole-tile load; slice the value (cheap sublane selects).
        xb = x_ref[...]                                    # (C_IN, tile_n) bf16
        pts = xb[0:IN_PTS, :]
        feats = xb[IN_PTS:IN_PTS + IN_FEAT, :]
        views = xb[IN_PTS + IN_FEAT:, :]

        # bias = pts_bias(input_feats): (W, tile_n) f32, live across the loop.
        bias = mm(wm("pb", W, IN_FEAT), feats) + bv("pb", W)

        # layer 0: input is the 3 point channels.
        z = mm(wm("l0", W, IN_PTS), pts)
        h = jnp.maximum((z + bv("l0", W)) * bias, 0.0)

        for i in range(1, D):
            hb = h.astype(bf16)
            if (i - 1) in SKIPS:
                # skip concat [pts, h] realized as two partial dots (no concat,
                # no ragged 35-channel activation).
                z = (mm(wm(f"l{i}_h", W, W), hb)
                     + mm(wm(f"l{i}_pts", W, IN_PTS), pts))
            else:
                z = mm(wm(f"l{i}", W, W), hb)
            h = jnp.maximum((z + bv(f"l{i}", W)) * bias, 0.0)

        hb = h.astype(bf16)
        # fused heads: rows [feature(0:W), alpha(W), uncertainty(W+1)]
        head = mm(wm("head", W + 2, W), hb) + bv("head", W + 2)
        alpha = jnp.maximum(head[W:W + 1, :], 0.0)
        uncert = jnp.logaddexp(head[W + 1:W + 2, :], 0.0) + BETA_MIN  # softplus
        feature = head[0:W, :].astype(bf16)

        # views head: concat [feature, views] realized as two partial dots.
        hv = (mm(wm("vw_f", HALF_W, W), feature)
              + mm(wm("vw_v", HALF_W, IN_VIEWS), views)
              + bv("views", HALF_W))
        hv = jnp.maximum(hv, 0.0)
        rgb = jax.nn.sigmoid(mm(wm("rgb", 3, HALF_W), hv.astype(bf16))
                             + bv("rgb", 3))

        # single unmasked lane-dense store: rows [rgb(3), alpha, uncert]
        o_ref[...] = jnp.concatenate([rgb, alpha, uncert], axis=0
                                     ).astype(o_ref.dtype)

    return kernel


# ------------------------------- wrapper --------------------------------------
def renderer_forward(x, wslab, bslab, *, tile_n=1024):
    """x: (N, C_IN) f32 -> (N, OUT_DIM) f32."""
    assert tile_n % 128 == 0
    N, c = x.shape
    assert c == C_IN
    n_pad = pl.cdiv(N, tile_n) * tile_n

    # channel-major bf16 input; transpose + cast + pad fuse into one XLA pass.
    x_cm = jnp.transpose(x).astype(jnp.bfloat16)           # (C_IN, N)
    if n_pad != N:
        x_cm = jnp.pad(x_cm, ((0, 0), (0, n_pad - N)))

    _, w_offs, _, _, b_offs, _ = _row_layouts()
    kernel = _make_kernel(w_offs, b_offs)

    out_cm = pl.pallas_call(
        kernel,
        out_shape=jax.ShapeDtypeStruct((OUT_DIM, n_pad), jnp.float32),
        grid_spec=pltpu.PrefetchScalarGridSpec(
            num_scalar_prefetch=0,
            grid=(n_pad // tile_n,),
            in_specs=[
                pl.BlockSpec((C_IN, tile_n), lambda i: (0, i)),
                pl.BlockSpec(wslab.shape, lambda i: (0, 0)),   # grid-invariant
                pl.BlockSpec(bslab.shape, lambda i: (0, 0)),   # grid-invariant
            ],
            out_specs=pl.BlockSpec((OUT_DIM, tile_n), lambda i: (0, i)),
        ),
        compiler_params=pltpu.CompilerParams(
            dimension_semantics=("parallel",)),
    )(x_cm, wslab, bslab)

    return jnp.transpose(out_cm)[:N]


# -------------------------- deterministic init ---------------------------------
def _kaiming_linear(key, fan_in, fan_out):
    # kaiming_normal_ (a=0, fan_in): std = sqrt(2 / fan_in); bias zeroed.
    w = jax.random.normal(key, (fan_out, fan_in), jnp.float32) * (2.0 / fan_in) ** 0.5
    b = jnp.zeros((fan_out,), jnp.float32)
    return w, b


def _default_linear(key, fan_in, fan_out):
    # PyTorch default Linear init: U(-1/sqrt(fan_in), 1/sqrt(fan_in)).
    kw, kb = jax.random.split(key)
    bound = 1.0 / (fan_in ** 0.5)
    w = jax.random.uniform(kw, (fan_out, fan_in), jnp.float32, -bound, bound)
    b = jax.random.uniform(kb, (fan_out,), jnp.float32, -bound, bound)
    return w, b


def init_params(key):
    ks = jax.random.split(key, 1 + D + 5)
    p = {}
    p["pb_w"], p["pb_b"] = _default_linear(ks[0], IN_FEAT, W)          # pts_bias
    for i in range(D):
        fan_in = IN_PTS if i == 0 else (W + IN_PTS if (i - 1) in SKIPS else W)
        p[f"l{i}_w"], p[f"l{i}_b"] = _kaiming_linear(ks[1 + i], fan_in, W)
    p["feat_w"], p["feat_b"] = _kaiming_linear(ks[1 + D + 0], W, W)     # feature_linear
    p["alpha_w"], p["alpha_b"] = _kaiming_linear(ks[1 + D + 1], W, 1)   # alpha_linear
    p["unc_w"], p["unc_b"] = _default_linear(ks[1 + D + 2], W, 1)       # uncertainty_linear
    p["views_w"], p["views_b"] = _kaiming_linear(ks[1 + D + 3], W + IN_VIEWS, HALF_W)
    p["rgb_w"], p["rgb_b"] = _kaiming_linear(ks[1 + D + 4], HALF_W, 3)  # rgb_linear
    return p


# ----------------------------- pure-JAX reference ------------------------------
def reference_forward(x, p):
    pts = x[:, :IN_PTS]
    feats = x[:, IN_PTS:IN_PTS + IN_FEAT]
    views = x[:, IN_PTS + IN_FEAT:]
    bias = feats @ p["pb_w"].T + p["pb_b"]
    h = pts
    for i in range(D):
        h = (h @ p[f"l{i}_w"].T + p[f"l{i}_b"]) * bias
        h = jnp.maximum(h, 0.0)
        if i in SKIPS:
            h = jnp.concatenate([pts, h], axis=-1)
    alpha = jnp.maximum(h @ p["alpha_w"].T + p["alpha_b"], 0.0)
    uncert = jnp.logaddexp(h @ p["unc_w"].T + p["unc_b"], 0.0) + BETA_MIN
    feature = h @ p["feat_w"].T + p["feat_b"]
    hv = jnp.concatenate([feature, views], axis=-1)
    hv = jnp.maximum(hv @ p["views_w"].T + p["views_b"], 0.0)
    rgb = jax.nn.sigmoid(hv @ p["rgb_w"].T + p["rgb_b"])
    return jnp.concatenate([rgb, alpha, uncert], axis=-1)


# ----------------------------------- main ---------------------------------------
if __name__ == "__main__":
    key = jax.random.PRNGKey(0)
    kx, kp = jax.random.split(key)

    N = 2048                                  # 2 tiles of 1024 -> split across TCs
    x = jax.random.normal(kx, (N, C_IN), jnp.float32)

    params = init_params(kp)
    wslab, bslab = pack_params(params)

    out = renderer_forward(x, wslab, bslab, tile_n=1024)
    out = jax.block_until_ready(out)

    ref = reference_forward(x, params)        # f32 reference (PyTorch semantics)
    assert out.shape == (N, OUT_DIM)
    # bf16 inputs + bf16 matmuls (f32 accumulation) vs f32 reference -> relaxed tol.
    assert jnp.allclose(out, ref, rtol=3e-2, atol=3e-2), "mismatch vs reference"

    print("KERNEL_OK")
</pallas_src>

<mosaic_0001>
module attributes {stable_mosaic.version = 11 : i64} {
  func.func @kernel(%arg0: i32, %arg1: memref<14x1024xbf16, #tpu.memory_space<vmem>>, %arg2: memref<416x32xbf16, #tpu.memory_space<vmem>>, %arg3: memref<352x1xf32, #tpu.memory_space<vmem>>, %arg4: memref<5x1024xf32, #tpu.memory_space<vmem>>) attributes {dimension_semantics = [#tpu.dimension_semantics<parallel>], iteration_bounds = array<i64: 2>, scalar_prefetch = 0 : i64, scratch_operands = 0 : i64, tpu.core_type = #tpu.core_type<tc>, window_params = [{transform_indices = @transform_0, window_bounds = array<i64: 14, 1024>}, {pipeline_mode = #tpu.pipeline_mode<synchronous>, transform_indices = @transform_1, window_bounds = array<i64: 416, 32>}, {pipeline_mode = #tpu.pipeline_mode<synchronous>, transform_indices = @transform_2, window_bounds = array<i64: 352, 1>}, {transform_indices = @transform_3, window_bounds = array<i64: 5, 1024>}]} {
    %c0 = arith.constant 0 : index
    %c0_0 = arith.constant 0 : index
    %0 = vector.load %arg1[%c0, %c0_0] : memref<14x1024xbf16, #tpu.memory_space<vmem>>, vector<14x1024xbf16>
    %1 = vector.extract_strided_slice %0 {offsets = [0, 0], sizes = [3, 1024], strides = [1, 1]} : vector<14x1024xbf16> to vector<3x1024xbf16>
    %2 = vector.extract_strided_slice %0 {offsets = [3, 0], sizes = [8, 1024], strides = [1, 1]} : vector<14x1024xbf16> to vector<8x1024xbf16>
    %3 = vector.extract_strided_slice %0 {offsets = [11, 0], sizes = [3, 1024], strides = [1, 1]} : vector<14x1024xbf16> to vector<3x1024xbf16>
    %c0_1 = arith.constant 0 : index
    %c0_2 = arith.constant 0 : index
    %4 = vector.load %arg2[%c0_1, %c0_2] : memref<416x32xbf16, #tpu.memory_space<vmem>>, vector<32x8xbf16>
    %cst = arith.constant dense<0.000000e+00> : vector<32x1024xf32>
    %5 = tpu.matmul %4, %2, %cst {dimension_numbers = #tpu.dot_dimension_numbers<[1], [0], [0], [1], [0, 0, 1, 1], [], []>} : vector<32x8xbf16>, vector<8x1024xbf16>, vector<32x1024xf32> -> vector<32x1024xf32>
    %c0_3 = arith.constant 0 : index
    %c0_4 = arith.constant 0 : index
    %6 = vector.load %arg3[%c0_3, %c0_4] : memref<352x1xf32, #tpu.memory_space<vmem>>, vector<32x1xf32>
    %7 = vector.broadcast %6 : vector<32x1xf32> to vector<32x1024xf32>
    %8 = arith.addf %5, %7 : vector<32x1024xf32>
    %c32 = arith.constant 32 : index
    %c0_5 = arith.constant 0 : index
    %9 = vector.load %arg2[%c32, %c0_5] : memref<416x32xbf16, #tpu.memory_space<vmem>>, vector<32x3xbf16>
    %cst_6 = arith.constant dense<0.000000e+00> : vector<32x1024xf32>
    %10 = tpu.matmul %9, %1, %cst_6 {dimension_numbers = #tpu.dot_dimension_numbers<[1], [0], [0], [1], [0, 0, 1, 1], [], []>} : vector<32x3xbf16>, vector<3x1024xbf16>, vector<32x1024xf32> -> vector<32x1024xf32>
    %c32_7 = arith.constant 32 : index
    %c0_8 = arith.constant 0 : index
    %11 = vector.load %arg3[%c32_7, %c0_8] : memref<352x1xf32, #tpu.memory_space<vmem>>, vector<32x1xf32>
    %12 = vector.broadcast %11 : vector<32x1xf32> to vector<32x1024xf32>
    %13 = arith.addf %10, %12 : vector<32x1024xf32>
    %14 = arith.mulf %13, %8 : vector<32x1024xf32>
    %cst_9 = arith.constant 0.000000e+00 : f32
    %15 = vector.broadcast %cst_9 : f32 to vector<32x1024xf32>
    %16 = arith.maximumf %14, %15 : vector<32x1024xf32>
    %17 = arith.truncf %16 : vector<32x1024xf32> to vector<32x1024xbf16>
    %c64 = arith.constant 64 : index
    %c0_10 = arith.constant 0 : index
    %18 = vector.load %arg2[%c64, %c0_10] : memref<416x32xbf16, #tpu.memory_space<vmem>>, vector<32x32xbf16>
    %cst_11 = arith.constant dense<0.000000e+00> : vector<32x1024xf32>
    %19 = tpu.matmul %18, %17, %cst_11 {dimension_numbers = #tpu.dot_dimension_numbers<[1], [0], [0], [1], [0, 0, 1, 1], [], []>} : vector<32x32xbf16>, vector<32x1024xbf16>, vector<32x1024xf32> -> vector<32x1024xf32>
    %c64_12 = arith.constant 64 : index
    %c0_13 = arith.constant 0 : index
    %20 = vector.load %arg3[%c64_12, %c0_13] : memref<352x1xf32, #tpu.memory_space<vmem>>, vector<32x1xf32>
    %21 = vector.broadcast %20 : vector<32x1xf32> to vector<32x1024xf32>
    %22 = arith.addf %19, %21 : vector<32x1024xf32>
    %23 = arith.mulf %22, %8 : vector<32x1024xf32>
    %cst_14 = arith.constant 0.000000e+00 : f32
    %24 = vector.broadcast %cst_14 : f32 to vector<32x1024xf32>
    %25 = arith.maximumf %23, %24 : vector<32x1024xf32>
    %26 = arith.truncf %25 : vector<32x1024xf32> to vector<32x1024xbf16>
    %c96 = arith.constant 96 : index
    %c0_15 = arith.constant 0 : index
    %27 = vector.load %arg2[%c96, %c0_15] : memref<416x32xbf16, #tpu.memory_space<vmem>>, vector<32x32xbf16>
    %cst_16 = arith.constant dense<0.000000e+00> : vector<32x1024xf32>
    %28 = tpu.matmul %27, %26, %cst_16 {dimension_numbers = #tpu.dot_dimension_numbers<[1], [0], [0], [1], [0, 0, 1, 1], [], []>} : vector<32x32xbf16>, vector<32x1024xbf16>, vector<32x1024xf32> -> vector<32x1024xf32>
    %c96_17 = arith.constant 96 : index
    %c0_18 = arith.constant 0 : index
    %29 = vector.load %arg3[%c96_17, %c0_18] : memref<352x1xf32, #tpu.memory_space<vmem>>, vector<32x1xf32>
    %30 = vector.broadcast %29 : vector<32x1xf32> to vector<32x1024xf32>
    %31 = arith.addf %28, %30 : vector<32x1024xf32>
    %32 = arith.mulf %31, %8 : vector<32x1024xf32>
    %cst_19 = arith.constant 0.000000e+00 : f32
    %33 = vector.broadcast %cst_19 : f32 to vector<32x1024xf32>
    %34 = arith.maximumf %32, %33 : vector<32x1024xf32>
    %35 = arith.truncf %34 : vector<32x1024xf32> to vector<32x1024xbf16>
    %c128 = arith.constant 128 : index
    %c0_20 = arith.constant 0 : index
    %36 = vector.load %arg2[%c128, %c0_20] : memref<416x32xbf16, #tpu.memory_space<vmem>>, vector<32x32xbf16>
    %cst_21 = arith.constant dense<0.000000e+00> : vector<32x1024xf32>
    %37 = tpu.matmul %36, %35, %cst_21 {dimension_numbers = #tpu.dot_dimension_numbers<[1], [0], [0], [1], [0, 0, 1, 1], [], []>} : vector<32x32xbf16>, vector<32x1024xbf16>, vector<32x1024xf32> -> vector<32x1024xf32>
    %c128_22 = arith.constant 128 : index
    %c0_23 = arith.constant 0 : index
    %38 = vector.load %arg3[%c128_22, %c0_23] : memref<352x1xf32, #tpu.memory_space<vmem>>, vector<32x1xf32>
    %39 = vector.broadcast %38 : vector<32x1xf32> to vector<32x1024xf32>
    %40 = arith.addf %37, %39 : vector<32x1024xf32>
    %41 = arith.mulf %40, %8 : vector<32x1024xf32>
    %cst_24 = arith.constant 0.000000e+00 : f32
    %42 = vector.broadcast %cst_24 : f32 to vector<32x1024xf32>
    %43 = arith.maximumf %41, %42 : vector<32x1024xf32>
    %44 = arith.truncf %43 : vector<32x1024xf32> to vector<32x1024xbf16>
    %c160 = arith.constant 160 : index
    %c0_25 = arith.constant 0 : index
    %45 = vector.load %arg2[%c160, %c0_25] : memref<416x32xbf16, #tpu.memory_space<vmem>>, vector<32x32xbf16>
    %cst_26 = arith.constant dense<0.000000e+00> : vector<32x1024xf32>
    %46 = tpu.matmul %45, %44, %cst_26 {dimension_numbers = #tpu.dot_dimension_numbers<[1], [0], [0], [1], [0, 0, 1, 1], [], []>} : vector<32x32xbf16>, vector<32x1024xbf16>, vector<32x1024xf32> -> vector<32x1024xf32>
    %c160_27 = arith.constant 160 : index
    %c0_28 = arith.constant 0 : index
    %47 = vector.load %arg3[%c160_27, %c0_28] : memref<352x1xf32, #tpu.memory_space<vmem>>, vector<32x1xf32>
    %48 = vector.broadcast %47 : vector<32x1xf32> to vector<32x1024xf32>
    %49 = arith.addf %46, %48 : vector<32x1024xf32>
    %50 = arith.mulf %49, %8 : vector<32x1024xf32>
    %cst_29 = arith.constant 0.000000e+00 : f32
    %51 = vector.broadcast %cst_29 : f32 to vector<32x1024xf32>
    %52 = arith.maximumf %50, %51 : vector<32x1024xf32>
    %53 = arith.truncf %52 : vector<32x1024xf32> to vector<32x1024xbf16>
    %c224 = arith.constant 224 : index
    %c0_30 = arith.constant 0 : index
    %54 = vector.load %arg2[%c224, %c0_30] : memref<416x32xbf16, #tpu.memory_space<vmem>>, vector<32x32xbf16>
    %cst_31 = arith.constant dense<0.000000e+00> : vector<32x1024xf32>
    %55 = tpu.matmul %54, %53, %cst_31 {dimension_numbers = #tpu.dot_dimension_numbers<[1], [0], [0], [1], [0, 0, 1, 1], [], []>} : vector<32x32xbf16>, vector<32x1024xbf16>, vector<32x1024xf32> -> vector<32x1024xf32>
    %c192 = arith.constant 192 : index
    %c0_32 = arith.constant 0 : index
    %56 = vector.load %arg2[%c192, %c0_32] : memref<416x32xbf16, #tpu.memory_space<vmem>>, vector<32x3xbf16>
    %cst_33 = arith.constant dense<0.000000e+00> : vector<32x1024xf32>
    %57 = tpu.matmul %56, %1, %cst_33 {dimension_numbers = #tpu.dot_dimension_numbers<[1], [0], [0], [1], [0, 0, 1, 1], [], []>} : vector<32x3xbf16>, vector<3x1024xbf16>, vector<32x1024xf32> -> vector<32x1024xf32>
    %58 = arith.addf %55, %57 : vector<32x1024xf32>
    %c192_34 = arith.constant 192 : index
    %c0_35 = arith.constant 0 : index
    %59 = vector.load %arg3[%c192_34, %c0_35] : memref<352x1xf32, #tpu.memory_space<vmem>>, vector<32x1xf32>
    %60 = vector.broadcast %59 : vector<32x1xf32> to vector<32x1024xf32>
    %61 = arith.addf %58, %60 : vector<32x1024xf32>
    %62 = arith.mulf %61, %8 : vector<32x1024xf32>
    %cst_36 = arith.constant 0.000000e+00 : f32
    %63 = vector.broadcast %cst_36 : f32 to vector<32x1024xf32>
    %64 = arith.maximumf %62, %63 : vector<32x1024xf32>
    %65 = arith.truncf %64 : vector<32x1024xf32> to vector<32x1024xbf16>
    %c256 = arith.constant 256 : index
    %c0_37 = arith.constant 0 : index
    %66 = vector.load %arg2[%c256, %c0_37] : memref<416x32xbf16, #tpu.memory_space<vmem>>, vector<32x32xbf16>
    %cst_38 = arith.constant dense<0.000000e+00> : vector<32x1024xf32>
    %67 = tpu.matmul %66, %65, %cst_38 {dimension_numbers = #tpu.dot_dimension_numbers<[1], [0], [0], [1], [0, 0, 1, 1], [], []>} : vector<32x32xbf16>, vector<32x1024xbf16>, vector<32x1024xf32> -> vector<32x1024xf32>
    %c224_39 = arith.constant 224 : index
    %c0_40 = arith.constant 0 : index
    %68 = vector.load %arg3[%c224_39, %c0_40] : memref<352x1xf32, #tpu.memory_space<vmem>>, vector<32x1xf32>
    %69 = vector.broadcast %68 : vector<32x1xf32> to vector<32x1024xf32>
    %70 = arith.addf %67, %69 : vector<32x1024xf32>
    %71 = arith.mulf %70, %8 : vector<32x1024xf32>
    %cst_41 = arith.constant 0.000000e+00 : f32
    %72 = vector.broadcast %cst_41 : f32 to vector<32x1024xf32>
    %73 = arith.maximumf %71, %72 : vector<32x1024xf32>
    %74 = arith.truncf %73 : vector<32x1024xf32> to vector<32x1024xbf16>
    %c288 = arith.constant 288 : index
    %c0_42 = arith.constant 0 : index
    %75 = vector.load %arg2[%c288, %c0_42] : memref<416x32xbf16, #tpu.memory_space<vmem>>, vector<32x32xbf16>
    %cst_43 = arith.constant dense<0.000000e+00> : vector<32x1024xf32>
    %76 = tpu.matmul %75, %74, %cst_43 {dimension_numbers = #tpu.dot_dimension_numbers<[1], [0], [0], [1], [0, 0, 1, 1], [], []>} : vector<32x32xbf16>, vector<32x1024xbf16>, vector<32x1024xf32> -> vector<32x1024xf32>
    %c256_44 = arith.constant 256 : index
    %c0_45 = arith.constant 0 : index
    %77 = vector.load %arg3[%c256_44, %c0_45] : memref<352x1xf32, #tpu.memory_space<vmem>>, vector<32x1xf32>
    %78 = vector.broadcast %77 : vector<32x1xf32> to vector<32x1024xf32>
    %79 = arith.addf %76, %78 : vector<32x1024xf32>
    %80 = arith.mulf %79, %8 : vector<32x1024xf32>
    %cst_46 = arith.constant 0.000000e+00 : f32
    %81 = vector.broadcast %cst_46 : f32 to vector<32x1024xf32>
    %82 = arith.maximumf %80, %81 : vector<32x1024xf32>
    %83 = arith.truncf %82 : vector<32x1024xf32> to vector<32x1024xbf16>
    %c320 = arith.constant 320 : index
    %c0_47 = arith.constant 0 : index
    %84 = vector.load %arg2[%c320, %c0_47] : memref<416x32xbf16, #tpu.memory_space<vmem>>, vector<34x32xbf16>
    %cst_48 = arith.constant dense<0.000000e+00> : vector<34x1024xf32>
    %85 = tpu.matmul %84, %83, %cst_48 {dimension_numbers = #tpu.dot_dimension_numbers<[1], [0], [0], [1], [0, 0, 1, 1], [], []>} : vector<34x32xbf16>, vector<32x1024xbf16>, vector<34x1024xf32> -> vector<34x1024xf32>
    %c288_49 = arith.constant 288 : index
    %c0_50 = arith.constant 0 : index
    %86 = vector.load %arg3[%c288_49, %c0_50] : memref<352x1xf32, #tpu.memory_space<vmem>>, vector<34x1xf32>
    %87 = vector.broadcast %86 : vector<34x1xf32> to vector<34x1024xf32>
    %88 = arith.addf %85, %87 : vector<34x1024xf32>
    %89 = vector.extract_strided_slice %88 {offsets = [32, 0], sizes = [1, 1024], strides = [1, 1]} : vector<34x1024xf32> to vector<1x1024xf32>
    %cst_51 = arith.constant 0.000000e+00 : f32
    %90 = vector.broadcast %cst_51 : f32 to vector<1x1024xf32>
    %91 = arith.maximumf %89, %90 : vector<1x1024xf32>
    %92 = vector.extract_strided_slice %88 {offsets = [33, 0], sizes = [1, 1024], strides = [1, 1]} : vector<34x1024xf32> to vector<1x1024xf32>
    %cst_52 = arith.constant 0.000000e+00 : f32
    %93 = vector.broadcast %cst_52 : f32 to vector<1x1024xf32>
    %94 = arith.maximumf %92, %93 : vector<1x1024xf32>
    %95 = vector.broadcast %cst_52 : f32 to vector<1x1024xf32>
    %96 = arith.subf %92, %95 : vector<1x1024xf32>
    %97 = arith.cmpf one, %96, %96 : vector<1x1024xf32>
    %98 = vector.broadcast %cst_52 : f32 to vector<1x1024xf32>
    %99 = arith.addf %92, %98 : vector<1x1024xf32>
    %100 = math.absf %96 : vector<1x1024xf32>
    %cst_53 = arith.constant 0.000000e+00 : f32
    %101 = vector.broadcast %cst_53 : f32 to vector<1x1024xf32>
    %102 = arith.subf %101, %100 : vector<1x1024xf32>
    %103 = math.exp %102 : vector<1x1024xf32>
    %104 = math.log1p %103 : vector<1x1024xf32>
    %105 = arith.addf %94, %104 : vector<1x1024xf32>
    %106 = arith.select %97, %99, %105 : vector<1x1024xi1>, vector<1x1024xf32>
    %cst_54 = arith.constant 0.00999999977 : f32
    %107 = vector.broadcast %cst_54 : f32 to vector<1x1024xf32>
    %108 = arith.addf %106, %107 : vector<1x1024xf32>
    %109 = vector.extract_strided_slice %88 {offsets = [0, 0], sizes = [32, 1024], strides = [1, 1]} : vector<34x1024xf32> to vector<32x1024xf32>
    %110 = arith.truncf %109 : vector<32x1024xf32> to vector<32x1024xbf16>
    %c368 = arith.constant 368 : index
    %c0_55 = arith.constant 0 : index
    %111 = vector.load %arg2[%c368, %c0_55] : memref<416x32xbf16, #tpu.memory_space<vmem>>, vector<16x32xbf16>
    %cst_56 = arith.constant dense<0.000000e+00> : vector<16x1024xf32>
    %112 = tpu.matmul %111, %110, %cst_56 {dimension_numbers = #tpu.dot_dimension_numbers<[1], [0], [0], [1], [0, 0, 1, 1], [], []>} : vector<16x32xbf16>, vector<32x1024xbf16>, vector<16x1024xf32> -> vector<16x1024xf32>
    %c384 = arith.constant 384 : index
    %c0_57 = arith.constant 0 : index
    %113 = vector.load %arg2[%c384, %c0_57] : memref<416x32xbf16, #tpu.memory_space<vmem>>, vector<16x3xbf16>
    %cst_58 = arith.constant dense<0.000000e+00> : vector<16x1024xf32>
    %114 = tpu.matmul %113, %3, %cst_58 {dimension_numbers = #tpu.dot_dimension_numbers<[1], [0], [0], [1], [0, 0, 1, 1], [], []>} : vector<16x3xbf16>, vector<3x1024xbf16>, vector<16x1024xf32> -> vector<16x1024xf32>
    %115 = arith.addf %112, %114 : vector<16x1024xf32>
    %c328 = arith.constant 328 : index
    %c0_59 = arith.constant 0 : index
    %116 = vector.load %arg3[%c328, %c0_59] : memref<352x1xf32, #tpu.memory_space<vmem>>, vector<16x1xf32>
    %117 = vector.broadcast %116 : vector<16x1xf32> to vector<16x1024xf32>
    %118 = arith.addf %115, %117 : vector<16x1024xf32>
    %cst_60 = arith.constant 0.000000e+00 : f32
    %119 = vector.broadcast %cst_60 : f32 to vector<16x1024xf32>
    %120 = arith.maximumf %118, %119 : vector<16x1024xf32>
    %c400 = arith.constant 400 : index
    %c0_61 = arith.constant 0 : index
    %121 = vector.load %arg2[%c400, %c0_61] : memref<416x32xbf16, #tpu.memory_space<vmem>>, vector<3x16xbf16>
    %122 = arith.truncf %120 : vector<16x1024xf32> to vector<16x1024xbf16>
    %cst_62 = arith.constant dense<0.000000e+00> : vector<3x1024xf32>
    %123 = tpu.matmul %121, %122, %cst_62 {dimension_numbers = #tpu.dot_dimension_numbers<[1], [0], [0], [1], [0, 0, 1, 1], [], []>} : vector<3x16xbf16>, vector<16x1024xbf16>, vector<3x1024xf32> -> vector<3x1024xf32>
    %c344 = arith.constant 344 : index
    %c0_63 = arith.constant 0 : index
    %124 = vector.load %arg3[%c344, %c0_63] : memref<352x1xf32, #tpu.memory_space<vmem>>, vector<3x1xf32>
    %125 = vector.broadcast %124 : vector<3x1xf32> to vector<3x1024xf32>
    %126 = arith.addf %123, %125 : vector<3x1024xf32>
    %127 = arith.negf %126 : vector<3x1024xf32>
    %128 = math.exp %127 : vector<3x1024xf32>
    %cst_64 = arith.constant 1.000000e+00 : f32
    %129 = vector.broadcast %cst_64 : f32 to vector<3x1024xf32>
    %130 = arith.addf %129, %128 : vector<3x1024xf32>
    %131 = arith.divf %129, %130 : vector<3x1024xf32>
    %132 = tpu.concatenate %131, %91, %108 in 0 : vector<3x1024xf32>, vector<1x1024xf32>, vector<1x1024xf32> -> vector<5x1024xf32>
    %c0_65 = arith.constant 0 : index
    %c0_66 = arith.constant 0 : index
    %133 = vector.load %arg4[%c0_65, %c0_66] : memref<5x1024xf32, #tpu.memory_space<vmem>>, vector<5x1024xf32>
    tpu.vector_store %arg4[%c0_65, %c0_66], %132 {strides = array<i32>} : memref<5x1024xf32, #tpu.memory_space<vmem>>, vector<5x1024xf32>,
    return
  }
  func.func @transform_0(%arg0: i32) -> (i32, i32) {
    %c0_i32 = arith.constant 0 : i32
    %c0_i32_0 = arith.constant 0 : i32
    return %c0_i32, %arg0 : i32, i32
  }
  func.func @transform_1(%arg0: i32) -> (i32, i32) {
    %c0_i32 = arith.constant 0 : i32
    %c0_i32_0 = arith.constant 0 : i32
    %c0_i32_1 = arith.constant 0 : i32
    return %c0_i32, %c0_i32_0 : i32, i32
  }
  func.func @transform_2(%arg0: i32) -> (i32, i32) {
    %c0_i32 = arith.constant 0 : i32
    %c0_i32_0 = arith.constant 0 : i32
    %c0_i32_1 = arith.constant 0 : i32
    return %c0_i32, %c0_i32_0 : i32, i32
  }
  func.func @transform_3(%arg0: i32) -> (i32, i32) {
    %c0_i32 = arith.constant 0 : i32
    %c0_i32_0 = arith.constant 0 : i32
    return %c0_i32, %arg0 : i32, i32
  }
}

</mosaic_0001>

<bundles_post_ra>
// kernel: tpu_custom_call.1
= control target key start
LH: loop header
LB: loop body
LE: loop exit
PB: predicated region body
PF: predicated region fallthrough
CT: control target
= control target key end

     0   :  { %8 = vsyncpa [#allocation4], 0  ;;  %s6681_s0 = inlined_call_operand.vmem [shape: bf16[14,2048], index: 0, kind: input, shape index: {}]   ;;  %s6682_s1 = inlined_call_operand.vmem [shape: bf16[416,32], index: 1, kind: input, shape index: {}]   ;;  %s6683_s2 = inlined_call_operand.vmem [shape: f32[352,1], index: 2, kind: input, shape index: {}]   ;;  %s6684_s3 = inlined_call_operand.hbm [shape: f32[5,2048], index: 3, kind: output, shape index: {}]  }
   0x1   :  { %10 = vsyncpa [#allocation4 + $0x1], 0  ;;  %s4751_s12 = smov 0   ;;  %s4753_s13 = smov 0  }
   0x2   :  { %s4755_s14 = smov 0   ;;  %s4757_s15 = smov 0  }
   0x3 LB: > { %s4204_s16 = sadd.s32 4294967295, %s4727_s15   ;;  %s4205_s17 = sadd.s32 4294967294, %s4727_s15   ;;  %s4727_s15 = sphi %s4757_s15, %s6865_s15   ;;  %s4723_s14 = sphi %s4755_s14, %s6864_s14   ;;  %s4719_s13 = sphi %s4753_s13, %s6863_s13   ;;  %s4715_s12 = sphi %s4751_s12, %s6862_s12  }
   0x4   : > { %s4774_s18 = sadd.s32 1, %s4727_s15   ;;  %s23_s19 = sadd.s32 1, %s4723_s14 }
   0x5   : > { %s20_s20 = ssub.s32 %s4727_s15, %s4774_s18  ;;  %p30_p0 = scmp.ne.s32.totalorder %s4723_s14, %s4719_s13 }
   0x6   : > { %p21_p1 = scmp.eq.s32.totalorder %s20_s20, 0  ;;  %p31_p2 = scmp.eq.s32.totalorder %s4727_s15, 0 }
   0x7   : > { %p102_p3 = scmp.eq.s32.totalorder %s4204_s16, 1  ;;  %p107_p4 = scmp.ne.s32.totalorder %s4719_s13, %s4715_s12 }
   0x8   : > { %s4787_s21 = scalar_select %p21_p1, %s4723_s14, %s23_s19  }
   0x9   : > { %p32_p5 = por %p31_p2, %p30_p0  ;;  %p4789_p6 = por %p102_p3, %p30_p0 }
   0xa   : > { %p108_p7 = scmp.eq.s32.totalorder %s4205_s17, 1  ;;  %p4207_p9 = scmp.ge.s32.totalorder %s4727_s15, 2 }
   0xc   : > { %p4793_p8 = por %p108_p7, %p107_p4  ;;  %130 = sbr.rel (%p4207_p9) target bundleno = 29 (0x1d), region = 24 }
  0x11   : > { %133 = sbr.rel (!%p32_p5) target bundleno = 29 (0x1d), region = 28  ;;  %s135_s24 = sand.u32 (%p32_p5), 1, %s4723_s14  }
  0x12   : > { %s4531_s25 = sshll.u32 (%p32_p5), %s4727_s15, 5  ;;  %s4208_s26 = sshll.u32 (%p32_p5), %s135_s24, 6 }
  0x13   : > { %s140_s29 = scalar_lea.vmem (%p32_p5), %s6681_s0, %s4531_s25  ;;  %s137_s30 = scalar_lea.vmem (%p32_p5), [#allocation2], %s4208_s26 }
  0x14   : > { %v153_v0 = vld [vmem:[%s140_s29] sm:$0xff] (%p32_p5)  ;;  %v155_v1 = vld [vmem:[%s140_s29 + $0x8] sm:$0xff] (%p32_p5)  ;;  %v157_v2 = vld [vmem:[%s140_s29 + $0x10] sm:$0xff] (%p32_p5) }
  0x15   : > { %154 = vst [vmem:[%s137_s30] sm:$0xff] (%p32_p5), %v153_v0  ;;  %v159_v3 = vld [vmem:[%s140_s29 + $0x18] sm:$0xff] (%p32_p5)  ;;  %v161_v4 = vld [vmem:[%s140_s29 + $0x40] sm:$0xff] (%p32_p5)  ;;  %v163_v5 = vld [vmem:[%s140_s29 + $0x48] sm:$0xff] (%p32_p5) }
  0x16   : > { %156 = vst [vmem:[%s137_s30 + $0x8] sm:$0xff] %v155_v1  ;;  %v165_v6 = vld [vmem:[%s140_s29 + $0x50] sm:$0xff]  ;;  %v167_v7 = vld [vmem:[%s140_s29 + $0x58] sm:$0xff] }
  0x17   : > { %158 = vst [vmem:[%s137_s30 + $0x10] sm:$0xff] %v157_v2 }
  0x18   : > { %160 = vst [vmem:[%s137_s30 + $0x18] sm:$0xff] %v159_v3 }
  0x19   : > { %162 = vst [vmem:[%s137_s30 + $0x20] sm:$0xff] %v161_v4 }
  0x1a   : > { %164 = vst [vmem:[%s137_s30 + $0x28] sm:$0xff] %v163_v5 }
  0x1b   : > { %166 = vst [vmem:[%s137_s30 + $0x30] sm:$0xff] %v165_v6 }
  0x1c   : > { %168 = vst [vmem:[%s137_s30 + $0x38] sm:$0xff] %v167_v7 }
  0x1d PF: > { %p4211_p10 = scmp.ge.s32.totalorder %s4727_s15, 1  ;;  %p173_p11 = scmp.lt.s32.totalorder %s4727_s15, 3 }
  0x1f   : > { %p174_p12 = pnand %p4211_p10, %p173_p11 }
  0x21   : > { %177 = sbr.rel (%p174_p12) target bundleno = 2026 (0x7ea), region = 51 }
  0x26   : > { %v538_v8 = vld [vmem:[%s6683_s2 + $0x30] sm:$0xff]  ;;  %s180_s8 = sand.u32 1, %s4719_s13   ;;  %v4729_v10 = vmov 0   ;;  %v218_v23 = vld [vmem:[%s6683_s2] sm:$0xff]  ;;  %v539_v26 = vld [vmem:[%s6683_s2 + $0x38] sm:$0xff]  ;;  %vm355_vm0 = vcmask 1043456  }
  0x27   : > { %v220_v9 = vld [vmem:[%s6683_s2 + $0x10] sm:$0xff]  ;;  %4599 = vset.pattern.permute.xlu1 %v4729_v10  ;;  %4598 = vset.pattern.permute.xlu0 %v4729_v10  ;;  %s4816_s9 = sshll.u32 %s180_s8, 6  ;;  %v221_v27 = vld [vmem:[%s6683_s2 + $0x18] sm:$0xff]  ;;  %v219_v48 = vld [vmem:[%s6683_s2 + $0x8] sm:$0xff]  ;;  %vm348_vm1 = vcmask 64512   ;;  %vm585_vm2 = vcmask 1040384  }
  0x28   : > { %552 = vperm.xlu1 %4599, %v538_v8   ;;  %234 = vperm.xlu0 %4598, %v220_v9   ;;  %s4819_s10 = scalar_lea.vmem [#allocation2], %s4816_s9  ;;  %v537_v0 = vld [vmem:[%s6683_s2 + $0x28] sm:$0xff]  ;;  %v536_v1 = vld [vmem:[%s6683_s2 + $0x20] sm:$0xff]  ;;  %vm586_vm3 = vcmask 1041408   ;;  %vm578_vm4 = vcmask 23552   ;;  %vm883_vm5 = vcmask 261120  }
  0x29   : > { %v206_v11 = vld [vmem:[%s4819_s10] sm:$0xff]  ;;  %v207_v13 = vld [vmem:[%s4819_s10 + $0x8] sm:$0xff]  ;;  %4600 = vset.pattern.permute.xlu2 %v4729_v10  ;;  %v209_v34 = vld [vmem:[%s4819_s10 + $0x18] sm:$0xff]  ;;  %vm3790_vm6 = vcmask 130048   ;;  %vm4098_vm15 = vcmask 1042432   ;;  %s6533_s28 = scalar_lea.vmem [#allocation3], %s4816_s9 }
  0x2a   : > { %v210_v12 = vld [vmem:[%s4819_s10 + $0x20] sm:$0x77]  ;;  %v4824_v14 = vunpack.c.l.b16 %v206_v11  ;;  %v4828_v16 = vunpack.c.h.b16 %v206_v11  ;;  %v211_v18 = vld [vmem:[%s4819_s10 + $0x28] sm:$0x77]  ;;  %v4833_v19 = vunpack.c.l.b16 %v207_v13  ;;  %v4837_v21 = vunpack.c.h.b16 %v207_v13  ;;  %224 = vperm.xlu2 %4600, %v218_v23   ;;  %v213_v39 = vld [vmem:[%s4819_s10 + $0x38] sm:$0x77] }
  0x2b   : > { %v4826_v15 = vunpack.c.l.b16 %v210_v12  ;;  %v4830_v17 = vunpack.c.h.b16 %v210_v12  ;;  %v4835_v20 = vunpack.c.l.b16 %v211_v18  ;;  %v4839_v22 = vunpack.c.h.b16 %v211_v18  ;;  %v208_v57 = vld [vmem:[%s4819_s10 + $0x10] sm:$0xff]  ;;  %v4888_v2 = vld [vmem:[%s6682_s1] sm:$0xff]  ;;  %s4556_s9 = sshll.u32 %s4204_s16, 6  ;;  %s4137_s16 = sshll.u32 %s6533_s28, 4  ;;  %s4138_s16 = int_to_ptr.vmem [resolvable:$true] %s4137_s16 }
  0x2c   : > { %v4863_v51 = vunpack.c.l.b16 %v209_v34  ;;  %v4865_v52 = vunpack.c.l.b16 %v213_v39  ;;  %v4867_v55 = vunpack.c.h.b16 %v209_v34  ;;  %v4869_v56 = vunpack.c.h.b16 %v213_v39  ;;  %v212_v58 = vld [vmem:[%s4819_s10 + $0x30] sm:$0x77]  ;;  %s4135_s4 = scalar_lea.hbm %s6684_s3, %s4556_s9  ;;  %s4124_s6 = scalar_lea.sflag [#allocation4], %s180_s8 }
  0x2d   : > { %6760 = vst [vmem:[#allocation6_spill] sm:$0xff] %v4826_v15  ;;  %v276_v24 = vpack.c.b16 %v4826_v15, %v4824_v14  ;;  %v277_v25 = vpack.c.b16 %v4830_v17, %v4828_v16  ;;  %v278_v28 = vpack.c.b16 %v4835_v20, %v4833_v19  ;;  %v279_v29 = vpack.c.b16 %v4839_v22, %v4837_v21  ;;  %s6642_s5 = sshll.u32 %s4135_s4, 4  ;;  %s4685_s19 = scalar_lea.hbm %s6684_s3, 128  ;;  %s4140_s5 = int_to_ptr.hbm [resolvable:$true] %s6642_s5 }
  0x2e   : > { %6761 = vst [vmem:[#allocation7_spill] sm:$0xff] %v4830_v17  ;;  %v282_v61 = vpack.c.b16 %v4865_v52, %v4863_v51  ;;  %v283_v3 = vpack.c.b16 %v4869_v56, %v4867_v55  ;;  %v4892_v6 = vunpack.c.l.b16 %v208_v57  ;;  %v4894_v7 = vunpack.c.l.b16 %v212_v58  ;;  %s4679_s7 = sshra.s32 %s4140_s5, 4  ;;  %s4680_s7 = int_to_ptr.hbm [resolvable:$true] %s4679_s7 }
  0x2f   : > { %6762 = vst [vmem:[#allocation8_spill] sm:$0xff] %v4835_v20  ;;  %v285_v30 = vshrl.u32 %v276_v24, 16  ;;  %v288_v31 = vshll.u32 %v276_v24, 16  ;;  %v293_v32 = vshrl.u32 %v277_v25, 16  ;;  %v296_v33 = vshll.u32 %v277_v25, 16  ;;  %s4681_s10 = scalar_lea.hbm %s4680_s7, 64  ;;  %p4686_p2 = scmp.lt.s32.totalorder %s4680_s7, %s6684_s3 }
  0x30   : > { %6763 = vst [vmem:[#allocation9_spill] sm:$0xff] %v4839_v22  ;;  %v301_v35 = vshrl.u32 %v278_v28, 16  ;;  %v304_v36 = vshll.u32 %v278_v28, 16  ;;  %v309_v37 = vshrl.u32 %v279_v29, 16  ;;  %v312_v38 = vshll.u32 %v279_v29, 16  ;;  %557 = vperm.xlu1 %4599, %v539_v26   ;;  %239 = vperm.xlu0 %4598, %v221_v27   ;;  %v851_v29 = vld [vmem:[%s6683_s2 + $0x50] sm:$0xff]  ;;  %p4682_p13 = scmp.ne.s32.totalorder %s4680_s7, %s4681_s10  ;;  %p4687_p3 = scmp.lt.s32.totalorder %s4685_s19, %s4681_s10 }
  0x31   : > { %v287_v40 = vrot.slane %v285_v30, 1  ;;  %v290_v41 = vrot.slane %v288_v31, 2  ;;  %v295_v42 = vrot.slane %v293_v32, 1  ;;  %v298_v43 = vrot.slane %v296_v33, 2  ;;  %6764 = vst [vmem:[#allocation10_spill] sm:$0xff] %v4865_v52 }
  0x32   : > { %v303_v44 = vrot.slane %v301_v35, 1  ;;  %v306_v45 = vrot.slane %v304_v36, 2  ;;  %v311_v46 = vrot.slane %v309_v37, 1  ;;  %v314_v47 = vrot.slane %v312_v38, 2  ;;  %6765 = vst [vmem:[#allocation11_spill] sm:$0xff] %v4869_v56  ;;  %229 = vperm.xlu2 %4600, %v219_v48   ;;  %v849_v36 = vld [vmem:[%s6683_s2 + $0x40] sm:$0xff]  ;;  %p4683_p0 = pnand %p4682_p13, %p4789_p6  ;;  %p4688_p4 = por %p4687_p3, %p4686_p2 }
  0x33   : > { %v291_v49 = vor.u32 %v290_v41, %v287_v40  ;;  %v299_v50 = vor.u32 %v298_v43, %v295_v42  ;;  %v333_v4 = vshrl.u32 %v282_v61, 16  ;;  %v336_v5 = vshll.u32 %v282_v61, 16  ;;  %6766 = vst [vmem:[#allocation12_spill] sm:$0xff] %v4894_v7  ;;  %v852_v37 = vld [vmem:[%s6683_s2 + $0x58] sm:$0xff]  ;;  %v4533_v48 = vld [vmem:[%s6682_s1 + $0x8] sm:$0xff] }
  0x34   : > { %v307_v53 = vor.u32 %v306_v45, %v303_v44  ;;  %v315_v54 = vor.u32 %v314_v47, %v311_v46  ;;  %v341_v8 = vshrl.u32 %v283_v3, 16  ;;  %v344_v9 = vshll.u32 %v283_v3, 16  ;;  %v850_v45 = vld [vmem:[%s6683_s2 + $0x48] sm:$0xff]  ;;  %v1129_v46 = vld [vmem:[%s6683_s2 + $0x78] sm:$0xff]  ;;  %v1128_v47 = vld [vmem:[%s6683_s2 + $0x70] sm:$0xff]  ;;  %p4684_p1 = pneg %p4683_p0 }
  0x35   : > { %v357_v59 = vsel %vm355_vm0, %v291_v49, 0  ;;  %v360_v60 = vsel %vm355_vm0, %v299_v50, 0  ;;  %v4896_v10 = vunpack.c.h.b16 %v208_v57  ;;  %v4898_v11 = vunpack.c.h.b16 %v212_v58  ;;  %v1126_v49 = vld [vmem:[%s6683_s2 + $0x60] sm:$0xff]  ;;  %v1404_v50 = vld [vmem:[%s6683_s2 + $0x90] sm:$0xff] }
  0x36   : > { %387 = vmatpush.bf16.msra.mxu0 %v357_v59  ;;  %406 = vmatpush.bf16.msra.mxu1 %v360_v60  ;;  %v363_v62 = vsel %vm355_vm0, %v307_v53, 0  ;;  %v366_v63 = vsel %vm355_vm0, %v315_v54, 0  ;;  %v335_v12 = vrot.slane %v333_v4, 1  ;;  %v338_v13 = vrot.slane %v336_v5, 2  ;;  %v1127_v53 = vld [vmem:[%s6683_s2 + $0x68] sm:$0xff]  ;;  %v1405_v60 = vld [vmem:[%s6683_s2 + $0x98] sm:$0xff]  ;;  %p4689_p5 = pnand %p4688_p4, %p4684_p1 }
  0x37   : > { %425 = vmatpush.bf16.msra.mxu2 %v363_v62  ;;  %444 = vmatpush.bf16.msra.mxu3 %v366_v63  ;;  %6767 = vst [vmem:[#allocation13_spill] sm:$0xff] %v4898_v11  ;;  %v280_v18 = vpack.c.b16 %v4894_v7, %v4892_v6  ;;  %v343_v23 = vrot.slane %v341_v8, 1  ;;  %v346_v24 = vrot.slane %v344_v9, 2  ;;  %v281_v25 = vpack.c.b16 %v4898_v11, %v4896_v10  ;;  %v1680_v3 = vld [vmem:[%s6683_s2 + $0xb0] sm:$0xff]  ;;  %v1678_v4 = vld [vmem:[%s6683_s2 + $0xa0] sm:$0xff]  ;;  %v1681_v5 = vld [vmem:[%s6683_s2 + $0xb8] sm:$0xff] }
  0x38   : > { %547 = vperm.xlu1 %4599, %v537_v0   ;;  %542 = vperm.xlu0 %4598, %v536_v1   ;;  %v339_v26 = vor.u32 %v338_v13, %v335_v12  ;;  %v572_v54 = vpack.c.b16 %v4833_v19, %v4833_v19  ;;  %v4730_v57 = vmov 65535   ;;  %v573_v59 = vpack.c.b16 %v4837_v21, %v4837_v21  ;;  %v1679_v8 = vld [vmem:[%s6683_s2 + $0xa8] sm:$0xff]  ;;  %v2296_v9 = vld [vmem:[%s6683_s2 + $0xd0] sm:$0xff]  ;;  %v2294_v12 = vld [vmem:[%s6683_s2 + $0xc0] sm:$0xff] }
  0x39   : > { %4222 = vmatmul.msk.bf16.vlgmr.msra.gmra.mxu0 %vm348_vm1, %v4888_v2  ;;  %4224 = vmatmul.msk.bf16.vlgmr.msra.gmra.mxu1 %vm348_vm1, %v4888_v2  ;;  %v317_v27 = vshrl.u32 %v280_v18, 16  ;;  %v320_v28 = vshll.u32 %v280_v18, 16  ;;  %v347_v30 = vor.u32 %v346_v24, %v343_v23  ;;  %v325_v31 = vshrl.u32 %v281_v25, 16  ;;  %v2436_v13 = vld [vmem:[%s6683_s2 + $0xf0] sm:$0xff]  ;;  %v2295_v18 = vld [vmem:[%s6683_s2 + $0xc8] sm:$0xff] }
  0x3a   : > { %4226 = vmatmul.msk.bf16.vlgmr.msra.gmra.mxu2 %vm348_vm1, %v4888_v2  ;;  %4228 = vmatmul.msk.bf16.vlgmr.msra.gmra.mxu3 %vm348_vm1, %v4888_v2  ;;  %v328_v32 = vshll.u32 %v281_v25, 16  ;;  %v375_v33 = vsel %vm355_vm0, %v339_v26, 0  ;;  %v587_v58 = vsel %vm585_vm2, 4294967295, %v4730_v57  ;;  %v570_v61 = vpack.c.b16 %v4824_v14, %v4824_v14  ;;  %v1403_v14 = vld [vmem:[%s6683_s2 + $0x88] sm:$0xff]  ;;  %v2437_v26 = vld [vmem:[%s6683_s2 + $0xf8] sm:$0xff] }
  0x3b   : > { %v319_v34 = vrot.slane %v317_v27, 1  ;;  %v322_v35 = vrot.slane %v320_v28, 2  ;;  %865 = vperm.xlu2 %4600, %v851_v29   ;;  %501 = vmatpush.bf16.msrb.mxu2 %v375_v33  ;;  %v378_v38 = vsel %vm355_vm0, %v347_v30, 0  ;;  %v327_v39 = vrot.slane %v325_v31, 1  ;;  %v4534_v30 = vld [vmem:[%s6682_s1 + $0x10] sm:$0xff]  ;;  %v2713_v33 = vld [vmem:[%s6683_s2 + $0x118] sm:$0xff] }
  0x3c   : > { %v330_v40 = vrot.slane %v328_v32, 2  ;;  %520 = vmatpush.bf16.msrb.mxu3 %v378_v38  ;;  %v571_v62 = vpack.c.b16 %v4828_v16, %v4828_v16  ;;  %v4961_v63 = vsel %vm586_vm3, %v587_v58, 0  ;;  %v1402_v16 = vld [vmem:[%s6683_s2 + $0x80] sm:$0xff]  ;;  %v574_v23 = vpack.c.b16 %v4892_v6, %v4892_v6  ;;  %v2712_v31 = vld [vmem:[%s6683_s2 + $0x110] sm:$0xff] }
  0x3d   : > { %v323_v41 = vor.u32 %v322_v35, %v319_v34  ;;  %6768 = vst [vmem:[#allocation14_spill] sm:$0xff] %v4961_v63  ;;  %v4964_v19 = vand.u32 %v4961_v63, %v572_v54  ;;  %v4967_v0 = vand.u32 %v4961_v63, %v573_v59  ;;  %v4970_v21 = vand.u32 %v4961_v63, %v570_v61  ;;  %v2710_v32 = vld [vmem:[%s6683_s2 + $0x100] sm:$0xff]  ;;  %v2711_v34 = vld [vmem:[%s6683_s2 + $0x108] sm:$0xff]  ;;  %v2990_v35 = vld [vmem:[%s6683_s2 + $0x138] sm:$0xff] }
  0x3e   : > { %v331_v42 = vor.u32 %v330_v40, %v327_v39  ;;  %v4973_v1 = vand.u32 %v4961_v63, %v571_v62  ;;  %v575_v24 = vpack.c.b16 %v4896_v10, %v4896_v10  ;;  %v576_v25 = vpack.c.b16 %v4863_v51, %v4863_v51  ;;  %v2435_v51 = vld [vmem:[%s6683_s2 + $0xe8] sm:$0xff]  ;;  %v2987_v38 = vld [vmem:[%s6683_s2 + $0x120] sm:$0xff] }
  0x3f   : > { %v369_v43 = vsel %vm355_vm0, %v323_v41, 0  ;;  %6769 = vst [vmem:[#allocation15_spill] sm:$0xff] %v4964_v19  ;;  %658 = vmatpush.bf16.msra.mxu2 %v4964_v19  ;;  %v577_v27 = vpack.c.b16 %v4867_v55, %v4867_v55  ;;  %v5036_v28 = vand.u32 %v4961_v63, %v574_v23  ;;  %v2434_v55 = vld [vmem:[%s6683_s2 + $0xe0] sm:$0xff]  ;;  %v3731_v39 = vld [vmem:[%s6683_s2 + $0x148] sm:$0xff]  ;;  %v3732_v41 = vld [vmem:[%s6683_s2 + $0x150] sm:$0xff] }
  0x40   : > { %855 = vperm.xlu1 %4599, %v849_v36   ;;  %870 = vperm.xlu0 %4598, %v852_v37   ;;  %v372_v44 = vsel %vm355_vm0, %v331_v42, 0  ;;  %6770 = vst [vmem:[#allocation16_spill] sm:$0xff] %v4967_v0  ;;  %v5039_v29 = vand.u32 %v4961_v63, %v575_v24  ;;  %v5042_v6 = vand.u32 %v4961_v63, %v576_v25  ;;  %v2989_v36 = vld [vmem:[%s6683_s2 + $0x130] sm:$0xff]  ;;  %v4535_v37 = vld [vmem:[%s6682_s1 + $0x18] sm:$0xff]  ;;  %v2988_v40 = vld [vmem:[%s6683_s2 + $0x128] sm:$0xff] }
  0x41   : > { %463 = vmatpush.bf16.msrb.mxu0 %v369_v43  ;;  %482 = vmatpush.bf16.msrb.mxu1 %v372_v44  ;;  %6771 = vst [vmem:[#allocation17_spill] sm:$0xff] %v4970_v21  ;;  %v5045_v10 = vand.u32 %v4961_v63, %v577_v27  ;;  %v3784_v42 = vld [vmem:[%s6683_s2 + $0x158] sm:$0x7]  ;;  %v2991_v43 = vld [vmem:[%s6683_s2 + $0x140] sm:$0x3] }
  0x42   : > { %6772 = vst [vmem:[#allocation18_spill] sm:$0xff] %v4973_v1  ;;  %677 = vmatpush.bf16.msra.mxu3 %v4967_v0 }
  0x43   : > { %860 = vperm.xlu2 %4600, %v850_v45   ;;  %6773 = vst [vmem:[#allocation19_spill] sm:$0xff] %v5036_v28 }
  0x44   : > { %6774 = vst [vmem:[#allocation20_spill] sm:$0xff] %v5039_v29 }
  0x45   : > { %620 = vmatpush.bf16.msra.mxu0 %v4970_v21  ;;  %639 = vmatpush.bf16.msra.mxu1 %v4973_v1  ;;  %6775 = vst [vmem:[#allocation21_spill] sm:$0xff] %v5042_v6 }
  0x46   : > { %6776 = vst [vmem:[#allocation22_spill] sm:$0xff] %v5045_v10 }
  0x48   : > { %1147 = vperm.xlu1 %4599, %v1129_v46   ;;  %1142 = vperm.xlu0 %4598, %v1128_v47  }
  0x49   : > { %4223 = vmatmul.msk.bf16.gmra.mxu0 %vm348_vm1, %v4533_v48  ;;  %4225 = vmatmul.msk.bf16.gmra.mxu1 %vm348_vm1, %v4533_v48 }
  0x4a   : > { %4227 = vmatmul.msk.bf16.gmra.mxu2 %vm348_vm1, %v4533_v48  ;;  %4229 = vmatmul.msk.bf16.gmra.mxu3 %vm348_vm1, %v4533_v48 }
  0x4b   : > { %1132 = vperm.xlu2 %4600, %v1126_v49  }
  0x50   : > { %1418 = vperm.xlu1 %4599, %v1404_v50   ;;  %1137 = vperm.xlu0 %4598, %v1127_v53  }
  0x53   : > { %1423 = vperm.xlu2 %4600, %v1405_v60  }
  0x58   : > { %1413 = vperm.xlu1 %4599, %v1403_v14   ;;  %1408 = vperm.xlu0 %4598, %v1402_v16  }
  0x59   : > { %4230 = vmatmul.msk.bf16.vlgmr.msrb.gmra.mxu0 %vm348_vm1, %v4888_v2  ;;  %4232 = vmatmul.msk.bf16.vlgmr.msrb.gmra.mxu1 %vm348_vm1, %v4888_v2 }
  0x5a   : > { %4234 = vmatmul.msk.bf16.vlgmr.msrb.gmra.mxu2 %vm348_vm1, %v4888_v2  ;;  %4236 = vmatmul.msk.bf16.vlgmr.msrb.gmra.mxu3 %vm348_vm1, %v4888_v2  ;;  %v2297_v2 = vld [vmem:[%s6683_s2 + $0xd8] sm:$0xff] }
  0x5b   : > { %1694 = vperm.xlu2 %4600, %v1680_v3   ;;  %696 = vmatpush.bf16.msrb.mxu0 %v5036_v28 }
  0x5c   : > { %715 = vmatpush.bf16.msrb.mxu1 %v5039_v29  ;;  %734 = vmatpush.bf16.msrb.mxu2 %v5042_v6 }
  0x5d   : > { %753 = vmatpush.bf16.msrb.mxu3 %v5045_v10 }
  0x60   : > { %1684 = vperm.xlu1 %4599, %v1678_v4   ;;  %1699 = vperm.xlu0 %4598, %v1681_v5  }
  0x63   : > { %1689 = vperm.xlu2 %4600, %v1679_v8  }
  0x68   : > { %2315 = vperm.xlu1 %4599, %v2297_v2   ;;  %2310 = vperm.xlu0 %4598, %v2296_v9  }
  0x69   : > { %4231 = vmatmul.msk.bf16.gmra.mxu0 %vm348_vm1, %v4533_v48  ;;  %4233 = vmatmul.msk.bf16.gmra.mxu1 %vm348_vm1, %v4533_v48 }
  0x6a   : > { %4235 = vmatmul.msk.bf16.gmra.mxu2 %vm348_vm1, %v4533_v48  ;;  %4237 = vmatmul.msk.bf16.gmra.mxu3 %vm348_vm1, %v4533_v48 }
  0x6b   : > { %2300 = vperm.xlu2 %4600, %v2294_v12  }
  0x70   : > { %2450 = vperm.xlu1 %4599, %v2436_v13   ;;  %2305 = vperm.xlu0 %4598, %v2295_v18  }
  0x73   : > { %2455 = vperm.xlu2 %4600, %v2437_v26  }
  0x78   : > { %2445 = vperm.xlu1 %4599, %v2435_v51   ;;  %2440 = vperm.xlu0 %4598, %v2434_v55  }
  0x79   : > { %4246 = vmatmul.msk.bf16.vlgmr.msra.gmra.mxu0 %vm578_vm4, %v4534_v30  ;;  %4248 = vmatmul.msk.bf16.vlgmr.msra.gmra.mxu1 %vm578_vm4, %v4534_v30 }
  0x7a   : > { %4250 = vmatmul.msk.bf16.vlgmr.msra.gmra.mxu2 %vm578_vm4, %v4534_v30  ;;  %4252 = vmatmul.msk.bf16.vlgmr.msra.gmra.mxu3 %vm578_vm4, %v4534_v30 }
  0x7b   : > { %2726 = vperm.xlu2 %4600, %v2712_v31  }
  0x80   : > { %2716 = vperm.xlu1 %4599, %v2710_v32   ;;  %2731 = vperm.xlu0 %4598, %v2713_v33  }
  0x83   : > { %2721 = vperm.xlu2 %4600, %v2711_v34  }
  0x88   : > { %3009 = vperm.xlu1 %4599, %v2990_v35   ;;  %3004 = vperm.xlu0 %4598, %v2989_v36  }
  0x89   : > { %4247 = vmatmul.msk.bf16.gmra.mxu0 %vm578_vm4, %v4535_v37  ;;  %4249 = vmatmul.msk.bf16.gmra.mxu1 %vm578_vm4, %v4535_v37 }
  0x8a   : > { %4251 = vmatmul.msk.bf16.gmra.mxu2 %vm578_vm4, %v4535_v37  ;;  %4253 = vmatmul.msk.bf16.gmra.mxu3 %vm578_vm4, %v4535_v37 }
  0x8b   : > { %2994 = vperm.xlu2 %4600, %v2987_v38  }
  0x90   : > { %3735 = vperm.xlu1 %4599, %v3731_v39   ;;  %2999 = vperm.xlu0 %4598, %v2988_v40  }
  0x93   : > { %3740 = vperm.xlu2 %4600, %v3732_v41  }
  0x98   : > { %3787 = vperm.xlu1 %4599, %v3784_v42   ;;  %3014 = vperm.xlu0 %4598, %v2991_v43  }
  0x99   : > { %4254 = vmatmul.msk.bf16.vlgmr.msrb.gmra.mxu0 %vm578_vm4, %v4534_v30  ;;  %4256 = vmatmul.msk.bf16.vlgmr.msrb.gmra.mxu1 %vm578_vm4, %v4534_v30 }
  0x9a   : > { %4258 = vmatmul.msk.bf16.vlgmr.msrb.gmra.mxu2 %vm578_vm4, %v4534_v30  ;;  %4260 = vmatmul.msk.bf16.vlgmr.msrb.gmra.mxu3 %vm578_vm4, %v4534_v30  ;;  %v5155_v31 = vpop.permute.xlu1 %552  ;;  %v5157_v32 = vpop.permute.xlu0 %234 }
  0xa2   : > { %v5161_v38 = vpop.permute.xlu1 %557  ;;  %v5163_v39 = vpop.permute.xlu0 %239 }
  0xa9   : > { %4255 = vmatmul.msk.bf16.gmra.mxu0 %vm578_vm4, %v4535_v37  ;;  %4257 = vmatmul.msk.bf16.gmra.mxu1 %vm578_vm4, %v4535_v37 }
  0xaa   : > { %4259 = vmatmul.msk.bf16.gmra.mxu2 %vm578_vm4, %v4535_v37  ;;  %4261 = vmatmul.msk.bf16.gmra.mxu3 %vm578_vm4, %v4535_v37  ;;  %v5159_v37 = vpop.permute.xlu2 %224  ;;  %v5175_v7 = vpop.permute.xlu1 %547 }
  0xab   : > { %v5177_v63 = vpop.permute.xlu0 %542 }
  0xb2   : > { %v5165_v56 = vpop.permute.xlu2 %229 }
  0xb6   : > { %v389_v44 = vpop.f32.mrf.mxu0  ;;  %v408_v45 = vpop.f32.mrf.mxu1 }
  0xb7   : > { %v5180_v17 = vadd.f32 %v389_v44, %v5159_v37  ;;  %v5183_v15 = vadd.f32 %v408_v45, %v5159_v37 }
  0xb9   : > { %6779 = vst [vmem:[#allocation25_spill] sm:$0xff] %v5180_v17 }
  0xba   : > { %6780 = vst [vmem:[#allocation26_spill] sm:$0xff] %v5183_v15 }
  0xbd   : > { %v5115_v46 = vpop.f32.mrf.mxu2  ;;  %v5117_v47 = vpop.f32.mrf.mxu3 }
  0xbe   : > { %v391_v48 = vpop.f32.mrf.mxu0  ;;  %v410_v49 = vpop.f32.mrf.mxu1 }
  0xc5   : > { %v429_v50 = vpop.f32.mrf.mxu2  ;;  %v448_v53 = vpop.f32.mrf.mxu3 }
  0xc6   : > { %v394_v54 = vpop.f32.mrf.mxu0  ;;  %v413_v57 = vpop.f32.mrf.mxu1 }
  0xc7   : > { %v5168_v52 = vadd.f32 %v394_v54, %v5157_v32  ;;  %v5171_v22 = vadd.f32 %v413_v57, %v5157_v32  ;;  %v5186_v54 = vadd.f32 %v391_v48, %v5165_v56  ;;  %v5189_v57 = vadd.f32 %v410_v49, %v5165_v56 }
  0xc9   : > { %6777 = vst [vmem:[#allocation23_spill] sm:$0xff] %v5168_v52 }
  0xca   : > { %6778 = vst [vmem:[#allocation24_spill] sm:$0xff] %v5171_v22 }
  0xcb   : > { %6781 = vst [vmem:[#allocation27_spill] sm:$0xff] %v5186_v54 }
  0xcd   : > { %v5119_v58 = vpop.f32.mrf.mxu2  ;;  %v5121_v59 = vpop.f32.mrf.mxu3 }
  0xce   : > { %v396_v60 = vpop.f32.mrf.mxu0  ;;  %v415_v61 = vpop.f32.mrf.mxu1 }
  0xcf   : > { %v5200_v45 = vadd.f32 %v396_v60, %v5163_v39  ;;  %v5203_v48 = vadd.f32 %v415_v61, %v5163_v39  ;;  %v5213_v60 = vadd.f32 %v5119_v58, %v5157_v32  ;;  %v5217_v61 = vadd.f32 %v5121_v59, %v5157_v32 }
  0xd1   : > { %6784 = vst [vmem:[#allocation30_spill] sm:$0xff] %v5200_v45 }
  0xd2   : > { %6785 = vst [vmem:[#allocation31_spill] sm:$0xff] %v5203_v48 }
  0xd3   : > { %6786 = vst [vmem:[#allocation32_spill] sm:$0xff] %v5213_v60 }
  0xd4   : > { %6787 = vst [vmem:[#allocation33_spill] sm:$0xff] %v5217_v61 }
  0xd5   : > { %v434_v62 = vpop.f32.mrf.mxu2  ;;  %v453_v14 = vpop.f32.mrf.mxu3 }
  0xd6   : > { %v5123_v16 = vpop.f32.mrf.mxu0  ;;  %v5125_v3 = vpop.f32.mrf.mxu1 }
  0xdd   : > { %v5127_v4 = vpop.f32.mrf.mxu2  ;;  %v5129_v5 = vpop.f32.mrf.mxu3 }
  0xde   : > { %v5131_v8 = vpop.f32.mrf.mxu0  ;;  %v5133_v2 = vpop.f32.mrf.mxu1 }
  0xe5   : > { %v5135_v9 = vpop.f32.mrf.mxu2  ;;  %v5137_v12 = vpop.f32.mrf.mxu3 }
  0xe6   : > { %v5139_v13 = vpop.f32.mrf.mxu0  ;;  %v5141_v18 = vpop.f32.mrf.mxu1 }
  0xed   : > { %v5143_v23 = vpop.f32.mrf.mxu2  ;;  %v5145_v24 = vpop.f32.mrf.mxu3 }
  0xee   : > { %v5147_v25 = vpop.f32.mrf.mxu0  ;;  %v5149_v26 = vpop.f32.mrf.mxu1 }
  0xf5   : > { %v5151_v27 = vpop.f32.mrf.mxu2  ;;  %v5153_v51 = vpop.f32.mrf.mxu3 }
  0xf6   : > { %v622_v55 = vpop.f32.mrf.mxu0  ;;  %v641_v30 = vpop.f32.mrf.mxu1 }
  0xf7   : > { %v623_v49 = vadd.f32 %v622_v55, %v5177_v63  ;;  %v5220_v55 = vadd.f32 %v434_v62, %v5163_v39 }
  0xf9   : > { %6788 = vst [vmem:[#allocation34_spill] sm:$0xff] %v5220_v55  ;;  %v765_v58 = vmul.f32 %v623_v49, %v5180_v17 }
  0xfd   : > { %v660_v33 = vpop.f32.mrf.mxu2  ;;  %v679_v34 = vpop.f32.mrf.mxu3 }
  0xfe   : > { %v624_v35 = vpop.f32.mrf.mxu0  ;;  %v643_v36 = vpop.f32.mrf.mxu1 }
  0xff   : > { %v625_v10 = vadd.f32 %v624_v35, %v5175_v7  ;;  %v644_v44 = vadd.f32 %v643_v36, %v5175_v7 }
 0x105   : > { %v662_v40 = vpop.f32.mrf.mxu2  ;;  %v681_v41 = vpop.f32.mrf.mxu3 }
 0x106   : > { %v627_v42 = vpop.f32.mrf.mxu0  ;;  %v646_v43 = vpop.f32.mrf.mxu1 }
 0x107   : > { %v628_v20 = vadd.f32 %v627_v42, %v5155_v31  ;;  %v647_v11 = vadd.f32 %v646_v43, %v5155_v31  ;;  %v5192_v42 = vadd.f32 %v429_v50, %v5165_v56  ;;  %v5195_v43 = vadd.f32 %v448_v53, %v5165_v56 }
 0x108   : > { %v642_v50 = vadd.f32 %v641_v30, %v5177_v63  ;;  %v5223_v30 = vadd.f32 %v453_v14, %v5163_v39 }
 0x109   : > { %6782 = vst [vmem:[#allocation28_spill] sm:$0xff] %v5192_v42  ;;  %v781_v53 = vmul.f32 %v628_v20, %v5168_v52  ;;  %v782_v35 = vmul.f32 %v647_v11, %v5171_v22  ;;  %v773_v20 = vmul.f32 %v625_v10, %v5186_v54  ;;  %v774_v11 = vmul.f32 %v644_v44, %v5189_v57 }
 0x10a   : > { %6783 = vst [vmem:[#allocation29_spill] sm:$0xff] %v5195_v43  ;;  %v766_v1 = vmul.f32 %v642_v50, %v5183_v15  ;;  %v661_v10 = vadd.f32 %v660_v33, %v5177_v63  ;;  %v680_v44 = vadd.f32 %v679_v34, %v5177_v63 }
 0x10b   : > { %6789 = vst [vmem:[#allocation35_spill] sm:$0xff] %v5223_v30  ;;  %v813_v21 = vmax.f32 %v781_v53, 0.0  ;;  %v814_v22 = vmax.f32 %v782_v35, 0.0  ;;  %v806_v49 = vmax.f32 %v774_v11, 0.0 }
 0x10d   : > { %v665_v6 = vpop.f32.mrf.mxu2  ;;  %v684_v0 = vpop.f32.mrf.mxu3 }
 0x10e   : > { %v629_v19 = vpop.f32.mrf.mxu0  ;;  %v648_v29 = vpop.f32.mrf.mxu1  ;;  %v666_v59 = vadd.f32 %v665_v6, %v5155_v31  ;;  %v685_v62 = vadd.f32 %v684_v0, %v5155_v31 }
 0x10f   : > { %v630_v36 = vadd.f32 %v629_v19, %v5161_v38  ;;  %v649_v28 = vadd.f32 %v648_v29, %v5161_v38 }
 0x110   : > { %v783_v0 = vmul.f32 %v666_v59, %v5213_v60  ;;  %v784_v53 = vmul.f32 %v685_v62, %v5217_v61 }
 0x111   : > { %v789_v19 = vmul.f32 %v630_v36, %v5200_v45  ;;  %v790_v29 = vmul.f32 %v649_v28, %v5203_v48  ;;  %v663_v36 = vadd.f32 %v662_v40, %v5175_v7  ;;  %v682_v28 = vadd.f32 %v681_v41, %v5175_v7 }
 0x112   : > { %v805_v48 = vmax.f32 %v773_v20, 0.0  ;;  %v5247_v40 = vadd.f32 %v5115_v46, %v5159_v37 }
 0x113   : > { %v821_v14 = vmax.f32 %v789_v19, 0.0  ;;  %v822_v52 = vmax.f32 %v790_v29, 0.0  ;;  %v776_v41 = vmul.f32 %v682_v28, %v5195_v43 }
 0x114   : > { %6790 = vst [vmem:[#allocation36_spill] sm:$0xff] %v5247_v40  ;;  %v767_v29 = vmul.f32 %v661_v10, %v5247_v40 }
 0x115   : > { %v837_v17 = vpack.c.bf16 %v821_v14, %v813_v21  ;;  %v838_v50 = vpack.c.bf16 %v822_v52, %v814_v22  ;;  %v667_v15 = vpop.f32.mrf.mxu2  ;;  %v686_v6 = vpop.f32.mrf.mxu3  ;;  %v5251_v22 = vadd.f32 %v5117_v47, %v5159_v37  ;;  %v797_v52 = vmax.f32 %v765_v58, 0.0 }
 0x116   : > { %v668_v35 = vadd.f32 %v667_v15, %v5161_v38  ;;  %v687_v33 = vadd.f32 %v686_v6, %v5161_v38  ;;  %v5241_v19 = vpop.f32.mrf.mxu0  ;;  %v5243_v34 = vpop.f32.mrf.mxu1  ;;  %v798_v21 = vmax.f32 %v766_v1, 0.0  ;;  %v775_v15 = vmul.f32 %v663_v36, %v5192_v42 }
 0x117   : > { %6791 = vst [vmem:[#allocation37_spill] sm:$0xff] %v5251_v22  ;;  %896 = vmatpush.bf16.msra.mxu0 %v837_v17  ;;  %915 = vmatpush.bf16.msra.mxu1 %v838_v50  ;;  %v768_v46 = vmul.f32 %v680_v44, %v5251_v22  ;;  %v829_v59 = vpack.c.bf16 %v805_v48, %v797_v52  ;;  %v815_v47 = vmax.f32 %v783_v0, 0.0  ;;  %v816_v14 = vmax.f32 %v784_v53, 0.0  ;;  %v5262_v17 = vld [vmem:[%s6682_s1 + $0x20] sm:$0xff] }
 0x118   : > { %v791_v20 = vmul.f32 %v668_v35, %v5220_v55  ;;  %v792_v11 = vmul.f32 %v687_v33, %v5223_v30  ;;  %v830_v62 = vpack.c.bf16 %v806_v49, %v798_v21  ;;  %v807_v36 = vmax.f32 %v775_v15, 0.0 }
 0x119   : > { %v808_v28 = vmax.f32 %v776_v41, 0.0  ;;  %v799_v44 = vmax.f32 %v767_v29, 0.0  ;;  %v800_v49 = vmax.f32 %v768_v46, 0.0  ;;  %v5283_v29 = vadd.f32 %v5125_v3, %v5159_v37 }
 0x11a   : > { %v823_v58 = vmax.f32 %v791_v20, 0.0  ;;  %v824_v1 = vmax.f32 %v792_v11, 0.0  ;;  %v5279_v11 = vadd.f32 %v5123_v16, %v5159_v37  ;;  %v5287_v46 = vadd.f32 %v5131_v8, %v5165_v56 }
 0x11b   : > { %897 = vmatpush.bf16.msra.mxu0 %v829_v59  ;;  %916 = vmatpush.bf16.msra.mxu1 %v830_v62  ;;  %v831_v35 = vpack.c.bf16 %v807_v36, %v799_v44  ;;  %v832_v33 = vpack.c.bf16 %v808_v28, %v800_v49  ;;  %v5293_v62 = vld [vmem:[%s6682_s1 + $0x28] sm:$0xff]  ;;  %v5301_v16 = vadd.f32 %v5135_v9, %v5165_v56 }
 0x11c   : > { %v839_v50 = vpack.c.bf16 %v823_v58, %v815_v47  ;;  %v840_v10 = vpack.c.bf16 %v824_v1, %v816_v14  ;;  %6792 = vst [vmem:[#allocation38_spill] sm:$0xff] %v5287_v46  ;;  %v5297_v47 = vadd.f32 %v5133_v2, %v5165_v56  ;;  %v5305_v3 = vadd.f32 %v5137_v12, %v5165_v56 }
 0x11d   : > { %v5264_v6 = vpop.f32.mrf.mxu2  ;;  %v5266_v48 = vpop.f32.mrf.mxu3  ;;  %6794 = vst [vmem:[#allocation40_spill] sm:$0xff] %v5301_v16  ;;  %v5309_v8 = vadd.f32 %v5139_v13, %v5157_v32  ;;  %v5313_v14 = vadd.f32 %v5141_v18, %v5157_v32  ;;  %v5317_v2 = vadd.f32 %v5147_v25, %v5163_v39  ;;  %v5323_v56 = vadd.f32 %v5149_v26, %v5163_v39 }
 0x11e   : > { %934 = vmatpush.bf16.msra.mxu2 %v839_v50  ;;  %953 = vmatpush.bf16.msra.mxu3 %v840_v10  ;;  %v700_v0 = vpop.f32.mrf.mxu0  ;;  %v719_v53 = vpop.f32.mrf.mxu1  ;;  %6793 = vst [vmem:[#allocation39_spill] sm:$0xff] %v5297_v47  ;;  %v699_v12 = vadd.f32 %v5241_v19, %v5177_v63  ;;  %v718_v13 = vadd.f32 %v5243_v34, %v5177_v63 }
 0x11f   : > { %4270 = vmatmul.msk.bf16.vlgmr.msra.gmra.mxu0 %vm883_vm5, %v5262_v17  ;;  %4272 = vmatmul.msk.bf16.vlgmr.msra.gmra.mxu1 %vm883_vm5, %v5262_v17  ;;  %6795 = vst [vmem:[#allocation41_spill] sm:$0xff] %v5305_v3  ;;  %v701_v58 = vadd.f32 %v700_v0, %v5175_v7  ;;  %v720_v9 = vadd.f32 %v719_v53, %v5175_v7 }
 0x120   : > { %6796 = vst [vmem:[#allocation42_spill] sm:$0xff] %v5313_v14  ;;  %v5339_v26 = vadd.f32 %v5143_v23, %v5157_v32  ;;  %v5343_v19 = vadd.f32 %v5145_v24, %v5157_v32  ;;  %v5347_v34 = vadd.f32 %v5151_v27, %v5163_v39  ;;  %v5351_v49 = vadd.f32 %v5153_v51, %v5163_v39 }
 0x121   : > { %6797 = vst [vmem:[#allocation43_spill] sm:$0xff] %v5317_v2  ;;  %v777_v0 = vmul.f32 %v701_v58, %v5287_v46  ;;  %v778_v53 = vmul.f32 %v720_v9, %v5297_v47  ;;  %v770_v24 = vmul.f32 %v718_v13, %v5283_v29 }
 0x122   : > { %935 = vmatpush.bf16.msra.mxu2 %v831_v35  ;;  %954 = vmatpush.bf16.msra.mxu3 %v832_v33  ;;  %6798 = vst [vmem:[#allocation44_spill] sm:$0xff] %v5323_v56  ;;  %v769_v33 = vmul.f32 %v699_v12, %v5279_v11 }
 0x123   : > { %6799 = vst [vmem:[#allocation45_spill] sm:$0xff] %v5339_v26  ;;  %v809_v12 = vmax.f32 %v777_v0, 0.0  ;;  %v810_v13 = vmax.f32 %v778_v53, 0.0 }
 0x124   : > { %6800 = vst [vmem:[#allocation46_spill] sm:$0xff] %v5343_v19 }
 0x125   : > { %v738_v52 = vpop.f32.mrf.mxu2  ;;  %v757_v21 = vpop.f32.mrf.mxu3  ;;  %4274 = vmatmul.msk.bf16.vlgmr.msra.gmra.mxu2 %vm883_vm5, %v5262_v17  ;;  %4276 = vmatmul.msk.bf16.vlgmr.msra.gmra.mxu3 %vm883_vm5, %v5262_v17  ;;  %6801 = vst [vmem:[#allocation47_spill] sm:$0xff] %v5347_v34 }
 0x126   : > { %v703_v15 = vpop.f32.mrf.mxu0  ;;  %v722_v41 = vpop.f32.mrf.mxu1  ;;  %6802 = vst [vmem:[#allocation48_spill] sm:$0xff] %v5351_v49  ;;  %v739_v58 = vadd.f32 %v738_v52, %v5175_v7  ;;  %v758_v9 = vadd.f32 %v757_v21, %v5175_v7  ;;  %v5377_v52 = vadd.f32 %v5127_v4, %v5159_v37  ;;  %v5381_v21 = vadd.f32 %v5129_v5, %v5159_v37 }
 0x127   : > { %v704_v20 = vadd.f32 %v703_v15, %v5155_v31  ;;  %v723_v59 = vadd.f32 %v722_v41, %v5155_v31 }
 0x128   : > { %6803 = vst [vmem:[#allocation49_spill] sm:$0xff] %v5377_v52 }
 0x129   : > { %v785_v18 = vmul.f32 %v704_v20, %v5309_v8  ;;  %v786_v50 = vmul.f32 %v723_v59, %v5313_v14  ;;  %v737_v20 = vadd.f32 %v5264_v6, %v5177_v63  ;;  %v756_v59 = vadd.f32 %v5266_v48, %v5177_v63  ;;  %6804 = vst [vmem:[#allocation50_spill] sm:$0xff] %v5381_v21 }
 0x12b   : > { %v817_v15 = vmax.f32 %v785_v18, 0.0  ;;  %v818_v41 = vmax.f32 %v786_v50, 0.0  ;;  %v802_v18 = vmax.f32 %v770_v24, 0.0  ;;  %v779_v50 = vmul.f32 %v739_v58, %v5301_v16 }
 0x12c   : > { %v771_v0 = vmul.f32 %v737_v20, %v5377_v52  ;;  %v772_v4 = vmul.f32 %v756_v59, %v5381_v21 }
 0x12d   : > { %v741_v1 = vpop.f32.mrf.mxu2  ;;  %v760_v36 = vpop.f32.mrf.mxu3  ;;  %v811_v24 = vmax.f32 %v779_v50, 0.0 }
 0x12e   : > { %v705_v25 = vpop.f32.mrf.mxu0  ;;  %v724_v28 = vpop.f32.mrf.mxu1  ;;  %v742_v32 = vadd.f32 %v741_v1, %v5155_v31  ;;  %v761_v27 = vadd.f32 %v760_v36, %v5155_v31  ;;  %v801_v36 = vmax.f32 %v769_v33, 0.0 }
 0x12f   : > { %v706_v10 = vadd.f32 %v705_v25, %v5161_v38  ;;  %v725_v44 = vadd.f32 %v724_v28, %v5161_v38  ;;  %4271 = vmatmul.msk.bf16.gmra.mxu0 %vm883_vm5, %v5293_v62  ;;  %4273 = vmatmul.msk.bf16.gmra.mxu1 %vm883_vm5, %v5293_v62 }
 0x130   : > { %v787_v6 = vmul.f32 %v742_v32, %v5339_v26  ;;  %v788_v63 = vmul.f32 %v761_v27, %v5343_v19  ;;  %v833_v53 = vpack.c.bf16 %v809_v12, %v801_v36  ;;  %v5411_v36 = vpop.permute.xlu1 %855 }
 0x131   : > { %v793_v35 = vmul.f32 %v706_v10, %v5317_v2  ;;  %v794_v23 = vmul.f32 %v725_v44, %v5323_v56  ;;  %v780_v10 = vmul.f32 %v758_v9, %v5305_v3 }
 0x132   : > { %v819_v5 = vmax.f32 %v787_v6, 0.0  ;;  %v820_v37 = vmax.f32 %v788_v63, 0.0 }
 0x133   : > { %v825_v51 = vmax.f32 %v793_v35, 0.0  ;;  %v826_v39 = vmax.f32 %v794_v23, 0.0  ;;  %v834_v35 = vpack.c.bf16 %v810_v13, %v802_v18  ;;  %v812_v32 = vmax.f32 %v780_v10, 0.0  ;;  %v5405_v13 = vpop.permute.xlu2 %865 }
 0x135   : > { %v841_v25 = vpack.c.bf16 %v825_v51, %v817_v15  ;;  %v842_v1 = vpack.c.bf16 %v826_v39, %v818_v41  ;;  %v743_v28 = vpop.f32.mrf.mxu2  ;;  %v762_v31 = vpop.f32.mrf.mxu3  ;;  %4275 = vmatmul.msk.bf16.gmra.mxu2 %vm883_vm5, %v5293_v62  ;;  %4277 = vmatmul.msk.bf16.gmra.mxu3 %vm883_vm5, %v5293_v62  ;;  %v803_v41 = vmax.f32 %v771_v0, 0.0  ;;  %v804_v51 = vmax.f32 %v772_v4, 0.0  ;;  %v6805_v4 = vld [vmem:[#allocation23_spill] sm:$0xff] }
 0x136   : > { %v744_v48 = vadd.f32 %v743_v28, %v5161_v38  ;;  %v763_v7 = vadd.f32 %v762_v31, %v5161_v38 }
 0x137   : > { %972 = vmatpush.bf16.msrb.mxu0 %v841_v25  ;;  %991 = vmatpush.bf16.msrb.mxu1 %v842_v1  ;;  %v835_v39 = vpack.c.bf16 %v811_v24, %v803_v41  ;;  %v836_v20 = vpack.c.bf16 %v812_v32, %v804_v51  ;;  %v6808_v41 = vld [vmem:[#allocation25_spill] sm:$0xff] }
 0x138   : > { %v795_v44 = vmul.f32 %v744_v48, %v5347_v34  ;;  %v796_v38 = vmul.f32 %v763_v7, %v5351_v49 }
 0x13a   : > { %v827_v23 = vmax.f32 %v795_v44, 0.0  ;;  %v828_v33 = vmax.f32 %v796_v38, 0.0 }
 0x13b   : > { %973 = vmatpush.bf16.msrb.mxu0 %v833_v53  ;;  %992 = vmatpush.bf16.msrb.mxu1 %v834_v35  ;;  %v5409_v7 = vpop.permute.xlu2 %860  ;;  %v6806_v35 = vld [vmem:[#allocation24_spill] sm:$0xff] }
 0x13c   : > { %v843_v27 = vpack.c.bf16 %v827_v23, %v819_v5  ;;  %v844_v15 = vpack.c.bf16 %v828_v33, %v820_v37 }
 0x13e   : > { %1010 = vmatpush.bf16.msrb.mxu2 %v843_v27  ;;  %1029 = vmatpush.bf16.msrb.mxu3 %v844_v15  ;;  %v6807_v27 = vld [vmem:[#allocation31_spill] sm:$0xff] }
 0x13f   : > { %4278 = vmatmul.msk.bf16.vlgmr.msrb.gmra.mxu0 %vm883_vm5, %v5262_v17  ;;  %4280 = vmatmul.msk.bf16.vlgmr.msrb.gmra.mxu1 %vm883_vm5, %v5262_v17 }
 0x142   : > { %1011 = vmatpush.bf16.msrb.mxu2 %v835_v39  ;;  %1030 = vmatpush.bf16.msrb.mxu3 %v836_v20  ;;  %v6809_v39 = vld [vmem:[#allocation26_spill] sm:$0xff] }
 0x145   : > { %4282 = vmatmul.msk.bf16.vlgmr.msrb.gmra.mxu2 %vm883_vm5, %v5262_v17  ;;  %4284 = vmatmul.msk.bf16.vlgmr.msrb.gmra.mxu3 %vm883_vm5, %v5262_v17 }
 0x14f   : > { %4279 = vmatmul.msk.bf16.gmra.mxu0 %vm883_vm5, %v5293_v62  ;;  %4281 = vmatmul.msk.bf16.gmra.mxu1 %vm883_vm5, %v5293_v62 }
 0x155   : > { %4283 = vmatmul.msk.bf16.gmra.mxu2 %vm883_vm5, %v5293_v62  ;;  %4285 = vmatmul.msk.bf16.gmra.mxu3 %vm883_vm5, %v5293_v62  ;;  %v5413_v62 = vpop.permute.xlu0 %870 }
 0x19c   : > { %v899_v59 = vpop.f32.mrf.mxu0  ;;  %v918_v58 = vpop.f32.mrf.mxu1 }
 0x19d   : > { %v900_v10 = vadd.f32 %v899_v59, %v5411_v36  ;;  %v919_v44 = vadd.f32 %v918_v58, %v5411_v36 }
 0x19f   : > { %v1042_v51 = vmul.f32 %v900_v10, %v6808_v41  ;;  %v1043_v20 = vmul.f32 %v919_v44, %v6809_v39 }
 0x1a4   : > { %v901_v9 = vpop.f32.mrf.mxu0  ;;  %v920_v12 = vpop.f32.mrf.mxu1 }
 0x1a5   : > { %v902_v18 = vadd.f32 %v901_v9, %v5409_v7  ;;  %v921_v50 = vadd.f32 %v920_v12, %v5409_v7 }
 0x1a7   : > { %v1050_v33 = vmul.f32 %v902_v18, %v5186_v54  ;;  %v1051_v24 = vmul.f32 %v921_v50, %v5189_v57 }
 0x1a8   : > { %v937_v25 = vpop.f32.mrf.mxu2  ;;  %v956_v17 = vpop.f32.mrf.mxu3 }
 0x1ac   : > { %v904_v1 = vpop.f32.mrf.mxu0  ;;  %v923_v28 = vpop.f32.mrf.mxu1 }
 0x1ad   : > { %v905_v63 = vadd.f32 %v904_v1, %v5405_v13  ;;  %v924_v48 = vadd.f32 %v923_v28, %v5405_v13 }
 0x1af   : > { %v1058_v53 = vmul.f32 %v905_v63, %v6805_v4  ;;  %v1059_v5 = vmul.f32 %v924_v48, %v6806_v35  ;;  %v1082_v63 = vmax.f32 %v1050_v33, 0.0  ;;  %v1083_v48 = vmax.f32 %v1051_v24, 0.0 }
 0x1b0   : > { %v939_v31 = vpop.f32.mrf.mxu2  ;;  %v958_v6 = vpop.f32.mrf.mxu3  ;;  %v938_v33 = vadd.f32 %v937_v25, %v5411_v36  ;;  %v957_v24 = vadd.f32 %v956_v17, %v5411_v36 }
 0x1b1   : > { %v1090_v9 = vmax.f32 %v1058_v53, 0.0  ;;  %v1091_v12 = vmax.f32 %v1059_v5, 0.0  ;;  %v940_v44 = vadd.f32 %v939_v31, %v5409_v7  ;;  %v959_v53 = vadd.f32 %v958_v6, %v5409_v7 }
 0x1b3   : > { %v1052_v25 = vmul.f32 %v940_v44, %v5192_v42  ;;  %v1053_v17 = vmul.f32 %v959_v53, %v5195_v43 }
 0x1b4   : > { %v906_v38 = vpop.f32.mrf.mxu0  ;;  %v925_v0 = vpop.f32.mrf.mxu1 }
 0x1b5   : > { %v907_v37 = vadd.f32 %v906_v38, %v5413_v62  ;;  %v926_v23 = vadd.f32 %v925_v0, %v5413_v62 }
 0x1b7   : > { %v1066_v32 = vmul.f32 %v907_v37, %v5200_v45  ;;  %v1067_v15 = vmul.f32 %v926_v23, %v6807_v27  ;;  %v1074_v45 = vmax.f32 %v1042_v51, 0.0  ;;  %v1075_v23 = vmax.f32 %v1043_v20, 0.0  ;;  %v5439_v51 = vld [vmem:[%s6682_s1 + $0x30] sm:$0xff] }
 0x1b8   : > { %v942_v59 = vpop.f32.mrf.mxu2  ;;  %v961_v58 = vpop.f32.mrf.mxu3 }
 0x1b9   : > { %v1098_v1 = vmax.f32 %v1066_v32, 0.0  ;;  %v1099_v28 = vmax.f32 %v1067_v15, 0.0  ;;  %v943_v50 = vadd.f32 %v942_v59, %v5405_v13  ;;  %v962_v10 = vadd.f32 %v961_v58, %v5405_v13 }
 0x1ba   : > { %v1106_v5 = vpack.c.bf16 %v1082_v63, %v1074_v45  ;;  %v1107_v32 = vpack.c.bf16 %v1083_v48, %v1075_v23  ;;  %v1084_v23 = vmax.f32 %v1052_v25, 0.0  ;;  %v5461_v25 = vld [vmem:[%s6682_s1 + $0x38] sm:$0xff] }
 0x1bb   : > { %v1114_v38 = vpack.c.bf16 %v1098_v1, %v1090_v9  ;;  %v1115_v18 = vpack.c.bf16 %v1099_v28, %v1091_v12  ;;  %v1060_v15 = vmul.f32 %v943_v50, %v5213_v60  ;;  %v1061_v20 = vmul.f32 %v962_v10, %v5217_v61 }
 0x1bc   : > { %v975_v0 = vpop.f32.mrf.mxu0  ;;  %v994_v37 = vpop.f32.mrf.mxu1  ;;  %v1044_v12 = vmul.f32 %v938_v33, %v5247_v40  ;;  %v1045_v1 = vmul.f32 %v957_v24, %v5251_v22  ;;  %v1085_v10 = vmax.f32 %v1053_v17, 0.0 }
 0x1bd   : > { %1172 = vmatpush.bf16.msra.mxu0 %v1114_v38  ;;  %1191 = vmatpush.bf16.msra.mxu1 %v1115_v18  ;;  %v1092_v48 = vmax.f32 %v1060_v15, 0.0  ;;  %v1093_v38 = vmax.f32 %v1061_v20, 0.0 }
 0x1be   : > { %v1076_v33 = vmax.f32 %v1044_v12, 0.0  ;;  %v1077_v24 = vmax.f32 %v1045_v1, 0.0  ;;  %v976_v1 = vadd.f32 %v975_v0, %v5411_v36 }
 0x1c0   : > { %v944_v59 = vpop.f32.mrf.mxu2  ;;  %v963_v9 = vpop.f32.mrf.mxu3 }
 0x1c1   : > { %v945_v31 = vadd.f32 %v944_v59, %v5413_v62  ;;  %v964_v45 = vadd.f32 %v963_v9, %v5413_v62  ;;  %1173 = vmatpush.bf16.msra.mxu0 %v1106_v5  ;;  %1192 = vmatpush.bf16.msra.mxu1 %v1107_v32  ;;  %v1108_v59 = vpack.c.bf16 %v1084_v23, %v1076_v33 }
 0x1c2   : > { %v1109_v9 = vpack.c.bf16 %v1085_v10, %v1077_v24 }
 0x1c3   : > { %v1068_v6 = vmul.f32 %v945_v31, %v5220_v55  ;;  %v1069_v58 = vmul.f32 %v964_v45, %v5223_v30 }
 0x1c4   : > { %v977_v28 = vpop.f32.mrf.mxu0  ;;  %v996_v63 = vpop.f32.mrf.mxu1  ;;  %4294 = vmatmul.msk.bf16.vlgmr.msra.gmra.mxu0 %vm883_vm5, %v5439_v51  ;;  %4296 = vmatmul.msk.bf16.vlgmr.msra.gmra.mxu1 %vm883_vm5, %v5439_v51 }
 0x1c5   : > { %v1100_v18 = vmax.f32 %v1068_v6, 0.0  ;;  %v1101_v50 = vmax.f32 %v1069_v58, 0.0  ;;  %v978_v58 = vadd.f32 %v977_v28, %v5409_v7  ;;  %v997_v12 = vadd.f32 %v996_v63, %v5409_v7 }
 0x1c7   : > { %v1116_v44 = vpack.c.bf16 %v1100_v18, %v1092_v48  ;;  %v1117_v53 = vpack.c.bf16 %v1101_v50, %v1093_v38  ;;  %v995_v48 = vadd.f32 %v994_v37, %v5411_v36  ;;  %v1054_v0 = vmul.f32 %v978_v58, %v5287_v46 }
 0x1c8   : > { %v1013_v5 = vpop.f32.mrf.mxu2  ;;  %v1032_v32 = vpop.f32.mrf.mxu3  ;;  %v1055_v37 = vmul.f32 %v997_v12, %v5297_v47 }
 0x1c9   : > { %1210 = vmatpush.bf16.msra.mxu2 %v1116_v44  ;;  %1229 = vmatpush.bf16.msra.mxu3 %v1117_v53  ;;  %v1046_v53 = vmul.f32 %v976_v1, %v5279_v11  ;;  %v1047_v33 = vmul.f32 %v995_v48, %v5283_v29 }
 0x1cb   : > { %v1078_v47 = vmax.f32 %v1046_v53, 0.0 }
 0x1cc   : > { %v980_v31 = vpop.f32.mrf.mxu0  ;;  %v999_v45 = vpop.f32.mrf.mxu1 }
 0x1cd   : > { %1211 = vmatpush.bf16.msra.mxu2 %v1108_v59  ;;  %1230 = vmatpush.bf16.msra.mxu3 %v1109_v9  ;;  %v981_v17 = vadd.f32 %v980_v31, %v5405_v13  ;;  %v1000_v6 = vadd.f32 %v999_v45, %v5405_v13 }
 0x1cf   : > { %v1062_v50 = vmul.f32 %v981_v17, %v5309_v8  ;;  %v1063_v23 = vmul.f32 %v1000_v6, %v5313_v14  ;;  %v1086_v6 = vmax.f32 %v1054_v0, 0.0  ;;  %v1033_v0 = vadd.f32 %v1032_v32, %v5411_v36 }
 0x1d0   : > { %v1015_v15 = vpop.f32.mrf.mxu2  ;;  %v1034_v20 = vpop.f32.mrf.mxu3  ;;  %4298 = vmatmul.msk.bf16.vlgmr.msra.gmra.mxu2 %vm883_vm5, %v5439_v51  ;;  %4300 = vmatmul.msk.bf16.vlgmr.msra.gmra.mxu3 %vm883_vm5, %v5439_v51 }
 0x1d1   : > { %v1094_v9 = vmax.f32 %v1062_v50, 0.0  ;;  %v1095_v31 = vmax.f32 %v1063_v23, 0.0  ;;  %v1016_v1 = vadd.f32 %v1015_v15, %v5409_v7  ;;  %v1035_v48 = vadd.f32 %v1034_v20, %v5409_v7 }
 0x1d2   : > { %v1110_v50 = vpack.c.bf16 %v1086_v6, %v1078_v47  ;;  %v1049_v53 = vmul.f32 %v1033_v0, %v5381_v21 }
 0x1d4   : > { %v982_v38 = vpop.f32.mrf.mxu0  ;;  %v1001_v18 = vpop.f32.mrf.mxu1  ;;  %4295 = vmatmul.msk.bf16.gmra.mxu0 %vm883_vm5, %v5461_v25  ;;  %4297 = vmatmul.msk.bf16.gmra.mxu1 %vm883_vm5, %v5461_v25 }
 0x1d5   : > { %v983_v28 = vadd.f32 %v982_v38, %v5413_v62  ;;  %v1002_v63 = vadd.f32 %v1001_v18, %v5413_v62  ;;  %v1087_v38 = vmax.f32 %v1055_v37, 0.0 }
 0x1d7   : > { %v1070_v10 = vmul.f32 %v983_v28, %v5317_v2  ;;  %v1071_v44 = vmul.f32 %v1002_v63, %v5323_v56  ;;  %v1079_v28 = vmax.f32 %v1047_v33, 0.0 }
 0x1d8   : > { %v1018_v24 = vpop.f32.mrf.mxu2  ;;  %v1037_v59 = vpop.f32.mrf.mxu3 }
 0x1d9   : > { %v1102_v45 = vmax.f32 %v1070_v10, 0.0  ;;  %v1103_v17 = vmax.f32 %v1071_v44, 0.0  ;;  %v1019_v12 = vadd.f32 %v1018_v24, %v5405_v13  ;;  %v1038_v63 = vadd.f32 %v1037_v59, %v5405_v13 }
 0x1da   : > { %v1111_v23 = vpack.c.bf16 %v1087_v38, %v1079_v28  ;;  %v1014_v10 = vadd.f32 %v1013_v5, %v5411_v36  ;;  %v1056_v36 = vmul.f32 %v1016_v1, %v5301_v16  ;;  %v1057_v5 = vmul.f32 %v1035_v48, %v5305_v3 }
 0x1db   : > { %v1118_v18 = vpack.c.bf16 %v1102_v45, %v1094_v9  ;;  %v1119_v58 = vpack.c.bf16 %v1103_v17, %v1095_v31  ;;  %v1064_v37 = vmul.f32 %v1019_v12, %v5339_v26  ;;  %v1065_v13 = vmul.f32 %v1038_v63, %v5343_v19 }
 0x1dc   : > { %v1048_v20 = vmul.f32 %v1014_v10, %v5377_v52  ;;  %v1088_v31 = vmax.f32 %v1056_v36, 0.0  ;;  %v1089_v45 = vmax.f32 %v1057_v5, 0.0 }
 0x1dd   : > { %1248 = vmatpush.bf16.msrb.mxu0 %v1118_v18  ;;  %1267 = vmatpush.bf16.msrb.mxu1 %v1119_v58  ;;  %v1097_v33 = vmax.f32 %v1065_v13, 0.0  ;;  %v1081_v18 = vmax.f32 %v1049_v53, 0.0  ;;  %v5525_v13 = vpop.permute.xlu1 %1147 }
 0x1de   : > { %v1080_v38 = vmax.f32 %v1048_v20, 0.0 }
 0x1df   : > { %v1113_v12 = vpack.c.bf16 %v1089_v45, %v1081_v18 }
 0x1e0   : > { %v1020_v44 = vpop.f32.mrf.mxu2  ;;  %v1039_v24 = vpop.f32.mrf.mxu3  ;;  %4299 = vmatmul.msk.bf16.gmra.mxu2 %vm883_vm5, %v5461_v25  ;;  %4301 = vmatmul.msk.bf16.gmra.mxu3 %vm883_vm5, %v5461_v25  ;;  %v1112_v58 = vpack.c.bf16 %v1088_v31, %v1080_v38 }
 0x1e1   : > { %v1021_v7 = vadd.f32 %v1020_v44, %v5413_v62  ;;  %v1040_v47 = vadd.f32 %v1039_v24, %v5413_v62  ;;  %1249 = vmatpush.bf16.msrb.mxu0 %v1110_v50  ;;  %1268 = vmatpush.bf16.msrb.mxu1 %v1111_v23  ;;  %v1096_v62 = vmax.f32 %v1064_v37, 0.0  ;;  %v5519_v50 = vpop.permute.xlu0 %1142 }
 0x1e3   : > { %v1072_v32 = vmul.f32 %v1021_v7, %v5347_v34  ;;  %v1073_v15 = vmul.f32 %v1040_v47, %v5351_v49  ;;  %v5527_v7 = vpop.permute.xlu2 %1132 }
 0x1e4   : > { %4302 = vmatmul.msk.bf16.vlgmr.msrb.gmra.mxu0 %vm883_vm5, %v5439_v51  ;;  %4304 = vmatmul.msk.bf16.vlgmr.msrb.gmra.mxu1 %vm883_vm5, %v5439_v51 }
 0x1e5   : > { %v1104_v59 = vmax.f32 %v1072_v32, 0.0  ;;  %v1105_v9 = vmax.f32 %v1073_v15, 0.0 }
 0x1e7   : > { %v1120_v17 = vpack.c.bf16 %v1104_v59, %v1096_v62  ;;  %v1121_v6 = vpack.c.bf16 %v1105_v9, %v1097_v33 }
 0x1e9   : > { %1286 = vmatpush.bf16.msrb.mxu2 %v1120_v17  ;;  %1305 = vmatpush.bf16.msrb.mxu3 %v1121_v6  ;;  %v5523_v24 = vpop.permute.xlu0 %1137  ;;  %v6810_v17 = vld [vmem:[#allocation30_spill] sm:$0xff] }
 0x1ed   : > { %1287 = vmatpush.bf16.msrb.mxu2 %v1112_v58  ;;  %1306 = vmatpush.bf16.msrb.mxu3 %v1113_v12 }
 0x1f0   : > { %4306 = vmatmul.msk.bf16.vlgmr.msrb.gmra.mxu2 %vm883_vm5, %v5439_v51  ;;  %4308 = vmatmul.msk.bf16.vlgmr.msrb.gmra.mxu3 %vm883_vm5, %v5439_v51 }
 0x1f4   : > { %4303 = vmatmul.msk.bf16.gmra.mxu0 %vm883_vm5, %v5461_v25  ;;  %4305 = vmatmul.msk.bf16.gmra.mxu1 %vm883_vm5, %v5461_v25 }
 0x200   : > { %4307 = vmatmul.msk.bf16.gmra.mxu2 %vm883_vm5, %v5461_v25  ;;  %4309 = vmatmul.msk.bf16.gmra.mxu3 %vm883_vm5, %v5461_v25 }
 0x241   : > { %v1175_v28 = vpop.f32.mrf.mxu0  ;;  %v1194_v63 = vpop.f32.mrf.mxu1 }
 0x242   : > { %v1176_v36 = vadd.f32 %v1175_v28, %v5527_v7  ;;  %v1195_v5 = vadd.f32 %v1194_v63, %v5527_v7 }
 0x244   : > { %v1318_v18 = vmul.f32 %v1176_v36, %v6808_v41  ;;  %v1319_v58 = vmul.f32 %v1195_v5, %v6809_v39  ;;  %v5546_v5 = vld [vmem:[%s6682_s1 + $0x40] sm:$0xff] }
 0x249   : > { %v1177_v1 = vpop.f32.mrf.mxu0  ;;  %v1196_v48 = vpop.f32.mrf.mxu1 }
 0x24a   : > { %v1178_v25 = vadd.f32 %v1177_v1, %v5523_v24  ;;  %v1197_v47 = vadd.f32 %v1196_v48, %v5523_v24 }
 0x24c   : > { %v1326_v31 = vmul.f32 %v1178_v25, %v5186_v54  ;;  %v1327_v45 = vmul.f32 %v1197_v47, %v5189_v57  ;;  %v1351_v47 = vmax.f32 %v1319_v58, 0.0 }
 0x24e   : > { %v1358_v48 = vmax.f32 %v1326_v31, 0.0 }
 0x251   : > { %v1180_v23 = vpop.f32.mrf.mxu0  ;;  %v1199_v51 = vpop.f32.mrf.mxu1 }
 0x252   : > { %v1181_v37 = vadd.f32 %v1180_v23, %v5519_v50  ;;  %v1200_v44 = vadd.f32 %v1199_v51, %v5519_v50  ;;  %v1359_v23 = vmax.f32 %v1327_v45, 0.0 }
 0x253   : > { %v1213_v10 = vpop.f32.mrf.mxu2  ;;  %v1232_v0 = vpop.f32.mrf.mxu3 }
 0x254   : > { %v1334_v20 = vmul.f32 %v1181_v37, %v6805_v4  ;;  %v1335_v53 = vmul.f32 %v1200_v44, %v6806_v35  ;;  %v1383_v36 = vpack.c.bf16 %v1359_v23, %v1351_v47  ;;  %v1233_v23 = vadd.f32 %v1232_v0, %v5527_v7 }
 0x256   : > { %v1366_v12 = vmax.f32 %v1334_v20, 0.0  ;;  %v1367_v28 = vmax.f32 %v1335_v53, 0.0 }
 0x259   : > { %v1182_v32 = vpop.f32.mrf.mxu0  ;;  %v1201_v15 = vpop.f32.mrf.mxu1 }
 0x25a   : > { %v1183_v62 = vadd.f32 %v1182_v32, %v5525_v13  ;;  %v1202_v33 = vadd.f32 %v1201_v15, %v5525_v13  ;;  %v1350_v32 = vmax.f32 %v1318_v18, 0.0 }
 0x25b   : > { %v1215_v59 = vpop.f32.mrf.mxu2  ;;  %v1234_v9 = vpop.f32.mrf.mxu3 }
 0x25c   : > { %v1342_v6 = vmul.f32 %v1183_v62, %v6810_v17  ;;  %v1343_v38 = vmul.f32 %v1202_v33, %v6807_v27  ;;  %v1382_v33 = vpack.c.bf16 %v1358_v48, %v1350_v32  ;;  %v1235_v18 = vadd.f32 %v1234_v9, %v5523_v24 }
 0x25e   : > { %v1374_v63 = vmax.f32 %v1342_v6, 0.0  ;;  %v1375_v1 = vmax.f32 %v1343_v38, 0.0  ;;  %v1216_v6 = vadd.f32 %v1215_v59, %v5523_v24  ;;  %v1214_v38 = vadd.f32 %v1213_v10, %v5527_v7 }
 0x260   : > { %v1390_v51 = vpack.c.bf16 %v1374_v63, %v1366_v12  ;;  %v1391_v37 = vpack.c.bf16 %v1375_v1, %v1367_v28  ;;  %v1320_v9 = vmul.f32 %v1214_v38, %v5247_v40  ;;  %v5571_v38 = vld [vmem:[%s6682_s1 + $0x48] sm:$0xff] }
 0x261   : > { %v1251_v44 = vpop.f32.mrf.mxu0  ;;  %v1270_v25 = vpop.f32.mrf.mxu1 }
 0x262   : > { %1448 = vmatpush.bf16.msra.mxu0 %v1390_v51  ;;  %1467 = vmatpush.bf16.msra.mxu1 %v1391_v37  ;;  %v1328_v51 = vmul.f32 %v1216_v6, %v5192_v42  ;;  %v1329_v37 = vmul.f32 %v1235_v18, %v5195_v43 }
 0x263   : > { %v1218_v15 = vpop.f32.mrf.mxu2  ;;  %v1237_v62 = vpop.f32.mrf.mxu3 }
 0x264   : > { %v1219_v20 = vadd.f32 %v1218_v15, %v5519_v50  ;;  %v1238_v53 = vadd.f32 %v1237_v62, %v5519_v50  ;;  %v1361_v6 = vmax.f32 %v1329_v37, 0.0 }
 0x266   : > { %1449 = vmatpush.bf16.msra.mxu0 %v1382_v33  ;;  %1468 = vmatpush.bf16.msra.mxu1 %v1383_v36  ;;  %v1336_v28 = vmul.f32 %v1219_v20, %v5213_v60  ;;  %v1337_v63 = vmul.f32 %v1238_v53, %v5217_v61  ;;  %v1321_v33 = vmul.f32 %v1233_v23, %v5251_v22  ;;  %v1360_v53 = vmax.f32 %v1328_v51, 0.0 }
 0x268   : > { %v1368_v32 = vmax.f32 %v1336_v28, 0.0  ;;  %v1369_v47 = vmax.f32 %v1337_v63, 0.0 }
 0x269   : > { %v1253_v31 = vpop.f32.mrf.mxu0  ;;  %v1272_v45 = vpop.f32.mrf.mxu1  ;;  %4318 = vmatmul.msk.bf16.vlgmr.msra.gmra.mxu0 %vm883_vm5, %v5546_v5  ;;  %4320 = vmatmul.msk.bf16.vlgmr.msra.gmra.mxu1 %vm883_vm5, %v5546_v5 }
 0x26a   : > { %v1254_v51 = vadd.f32 %v1253_v31, %v5523_v24 }
 0x26b   : > { %v1220_v58 = vpop.f32.mrf.mxu2  ;;  %v1239_v12 = vpop.f32.mrf.mxu3 }
 0x26c   : > { %v1221_v1 = vadd.f32 %v1220_v58, %v5525_v13  ;;  %v1240_v48 = vadd.f32 %v1239_v12, %v5525_v13 }
 0x26e   : > { %v1344_v59 = vmul.f32 %v1221_v1, %v5220_v55  ;;  %v1345_v10 = vmul.f32 %v1240_v48, %v5223_v30  ;;  %v1352_v55 = vmax.f32 %v1320_v9, 0.0  ;;  %v1353_v48 = vmax.f32 %v1321_v33, 0.0 }
 0x26f   : > { %v1271_v9 = vadd.f32 %v1270_v25, %v5527_v7  ;;  %v1330_v25 = vmul.f32 %v1254_v51, %v5287_v46 }
 0x270   : > { %v1376_v15 = vmax.f32 %v1344_v59, 0.0  ;;  %v1377_v62 = vmax.f32 %v1345_v10, 0.0  ;;  %v1384_v63 = vpack.c.bf16 %v1360_v53, %v1352_v55  ;;  %v1385_v23 = vpack.c.bf16 %v1361_v6, %v1353_v48 }
 0x271   : > { %v1256_v36 = vpop.f32.mrf.mxu0  ;;  %v1275_v20 = vpop.f32.mrf.mxu1  ;;  %v1273_v59 = vadd.f32 %v1272_v45, %v5523_v24  ;;  %v1252_v10 = vadd.f32 %v1251_v44, %v5527_v7 }
 0x272   : > { %v1392_v0 = vpack.c.bf16 %v1376_v15, %v1368_v32  ;;  %v1393_v58 = vpack.c.bf16 %v1377_v62, %v1369_v47  ;;  %v1257_v18 = vadd.f32 %v1256_v36, %v5519_v50  ;;  %v1276_v28 = vadd.f32 %v1275_v20, %v5519_v50  ;;  %v6811_v62 = vld [vmem:[#allocation39_spill] sm:$0xff] }
 0x273   : > { %v1289_v12 = vpop.f32.mrf.mxu2  ;;  %v1308_v1 = vpop.f32.mrf.mxu3  ;;  %v1331_v33 = vmul.f32 %v1273_v59, %v6811_v62  ;;  %v1322_v53 = vmul.f32 %v1252_v10, %v5279_v11 }
 0x274   : > { %1486 = vmatpush.bf16.msra.mxu2 %v1392_v0  ;;  %1505 = vmatpush.bf16.msra.mxu3 %v1393_v58  ;;  %v1338_v47 = vmul.f32 %v1257_v18, %v5309_v8  ;;  %v1339_v55 = vmul.f32 %v1276_v28, %v5313_v14  ;;  %v1323_v0 = vmul.f32 %v1271_v9, %v5283_v29  ;;  %v1362_v28 = vmax.f32 %v1330_v25, 0.0 }
 0x275   : > { %v1354_v59 = vmax.f32 %v1322_v53, 0.0  ;;  %v1290_v25 = vadd.f32 %v1289_v12, %v5527_v7 }
 0x276   : > { %v1370_v58 = vmax.f32 %v1338_v47, 0.0  ;;  %v1371_v6 = vmax.f32 %v1339_v55, 0.0 }
 0x277   : > { %v1324_v53 = vmul.f32 %v1290_v25, %v5377_v52 }
 0x278   : > { %1487 = vmatpush.bf16.msra.mxu2 %v1384_v63  ;;  %1506 = vmatpush.bf16.msra.mxu3 %v1385_v23  ;;  %v1363_v63 = vmax.f32 %v1331_v33, 0.0  ;;  %v1309_v33 = vadd.f32 %v1308_v1, %v5527_v7 }
 0x279   : > { %v1258_v37 = vpop.f32.mrf.mxu0  ;;  %v1277_v32 = vpop.f32.mrf.mxu1  ;;  %4319 = vmatmul.msk.bf16.gmra.mxu0 %vm883_vm5, %v5571_v38  ;;  %4321 = vmatmul.msk.bf16.gmra.mxu1 %vm883_vm5, %v5571_v38 }
 0x27a   : > { %v1259_v15 = vadd.f32 %v1258_v37, %v5525_v13  ;;  %v1278_v31 = vadd.f32 %v1277_v32, %v5525_v13  ;;  %v1355_v37 = vmax.f32 %v1323_v0, 0.0  ;;  %v1325_v0 = vmul.f32 %v1309_v33, %v5381_v21 }
 0x27b   : > { %v1291_v44 = vpop.f32.mrf.mxu2  ;;  %v1310_v45 = vpop.f32.mrf.mxu3  ;;  %4322 = vmatmul.msk.bf16.vlgmr.msra.gmra.mxu2 %vm883_vm5, %v5546_v5  ;;  %4324 = vmatmul.msk.bf16.vlgmr.msra.gmra.mxu3 %vm883_vm5, %v5546_v5 }
 0x27c   : > { %v1346_v36 = vmul.f32 %v1259_v15, %v5317_v2  ;;  %v1347_v20 = vmul.f32 %v1278_v31, %v5323_v56  ;;  %v1386_v31 = vpack.c.bf16 %v1362_v28, %v1354_v59  ;;  %v1387_v56 = vpack.c.bf16 %v1363_v63, %v1355_v37 }
 0x27d   : > { %v1292_v47 = vadd.f32 %v1291_v44, %v5523_v24  ;;  %v1311_v55 = vadd.f32 %v1310_v45, %v5523_v24  ;;  %v1357_v59 = vmax.f32 %v1325_v0, 0.0 }
 0x27e   : > { %v1378_v48 = vmax.f32 %v1346_v36, 0.0  ;;  %v1379_v18 = vmax.f32 %v1347_v20, 0.0 }
 0x27f   : > { %v1332_v12 = vmul.f32 %v1292_v47, %v5301_v16  ;;  %v1333_v7 = vmul.f32 %v1311_v55, %v5305_v3  ;;  %v5633_v47 = vpop.permute.xlu1 %1418 }
 0x280   : > { %v1394_v23 = vpack.c.bf16 %v1378_v48, %v1370_v58  ;;  %v1395_v51 = vpack.c.bf16 %v1379_v18, %v1371_v6 }
 0x281   : > { %v1365_v28 = vmax.f32 %v1333_v7, 0.0 }
 0x282   : > { %1524 = vmatpush.bf16.msrb.mxu0 %v1394_v23  ;;  %1543 = vmatpush.bf16.msrb.mxu1 %v1395_v51  ;;  %v1356_v51 = vmax.f32 %v1324_v53, 0.0 }
 0x283   : > { %v1294_v32 = vpop.f32.mrf.mxu2  ;;  %v1313_v15 = vpop.f32.mrf.mxu3 }
 0x284   : > { %v1295_v10 = vadd.f32 %v1294_v32, %v5519_v50  ;;  %v1314_v9 = vadd.f32 %v1313_v15, %v5519_v50  ;;  %v1389_v32 = vpack.c.bf16 %v1365_v28, %v1357_v59 }
 0x286   : > { %1525 = vmatpush.bf16.msrb.mxu0 %v1386_v31  ;;  %1544 = vmatpush.bf16.msrb.mxu1 %v1387_v56  ;;  %v1340_v50 = vmul.f32 %v1295_v10, %v5339_v26  ;;  %v1341_v20 = vmul.f32 %v1314_v9, %v5343_v19 }
 0x288   : > { %v1372_v58 = vmax.f32 %v1340_v50, 0.0  ;;  %v1373_v6 = vmax.f32 %v1341_v20, 0.0  ;;  %v5641_v50 = vpop.permute.xlu2 %1423 }
 0x289   : > { %4326 = vmatmul.msk.bf16.vlgmr.msrb.gmra.mxu0 %vm883_vm5, %v5546_v5  ;;  %4328 = vmatmul.msk.bf16.vlgmr.msrb.gmra.mxu1 %vm883_vm5, %v5546_v5 }
 0x28b   : > { %v1296_v36 = vpop.f32.mrf.mxu2  ;;  %v1315_v56 = vpop.f32.mrf.mxu3  ;;  %4323 = vmatmul.msk.bf16.gmra.mxu2 %vm883_vm5, %v5571_v38  ;;  %4325 = vmatmul.msk.bf16.gmra.mxu3 %vm883_vm5, %v5571_v38 }
 0x28c   : > { %v1297_v44 = vadd.f32 %v1296_v36, %v5525_v13  ;;  %v1316_v24 = vadd.f32 %v1315_v56, %v5525_v13  ;;  %v1364_v13 = vmax.f32 %v1332_v12, 0.0  ;;  %v5636_v36 = vpop.permute.xlu1 %1413  ;;  %v5639_v56 = vpop.permute.xlu0 %1408 }
 0x28e   : > { %v1348_v1 = vmul.f32 %v1297_v44, %v5347_v34  ;;  %v1349_v45 = vmul.f32 %v1316_v24, %v5351_v49  ;;  %v1388_v37 = vpack.c.bf16 %v1364_v13, %v1356_v51 }
 0x290   : > { %v1380_v48 = vmax.f32 %v1348_v1, 0.0  ;;  %v1381_v18 = vmax.f32 %v1349_v45, 0.0 }
 0x292   : > { %v1396_v63 = vpack.c.bf16 %v1380_v48, %v1372_v58  ;;  %v1397_v23 = vpack.c.bf16 %v1381_v18, %v1373_v6 }
 0x294   : > { %1562 = vmatpush.bf16.msrb.mxu2 %v1396_v63  ;;  %1581 = vmatpush.bf16.msrb.mxu3 %v1397_v23 }
 0x298   : > { %1563 = vmatpush.bf16.msrb.mxu2 %v1388_v37  ;;  %1582 = vmatpush.bf16.msrb.mxu3 %v1389_v32 }
 0x299   : > { %4327 = vmatmul.msk.bf16.gmra.mxu0 %vm883_vm5, %v5571_v38  ;;  %4329 = vmatmul.msk.bf16.gmra.mxu1 %vm883_vm5, %v5571_v38 }
 0x29b   : > { %4330 = vmatmul.msk.bf16.vlgmr.msrb.gmra.mxu2 %vm883_vm5, %v5546_v5  ;;  %4332 = vmatmul.msk.bf16.vlgmr.msrb.gmra.mxu3 %vm883_vm5, %v5546_v5 }
 0x2ab   : > { %4331 = vmatmul.msk.bf16.gmra.mxu2 %vm883_vm5, %v5571_v38  ;;  %4333 = vmatmul.msk.bf16.gmra.mxu3 %vm883_vm5, %v5571_v38 }
 0x2e6   : > { %v1451_v15 = vpop.f32.mrf.mxu0  ;;  %v1470_v31 = vpop.f32.mrf.mxu1 }
 0x2e7   : > { %v1452_v12 = vadd.f32 %v1451_v15, %v5639_v56  ;;  %v1471_v0 = vadd.f32 %v1470_v31, %v5639_v56 }
 0x2e9   : > { %v1594_v63 = vmul.f32 %v1452_v12, %v6808_v41  ;;  %v1595_v59 = vmul.f32 %v1471_v0, %v6809_v39 }
 0x2ee   : > { %v1453_v10 = vpop.f32.mrf.mxu0  ;;  %v1472_v9 = vpop.f32.mrf.mxu1 }
 0x2ef   : > { %v1454_v38 = vadd.f32 %v1453_v10, %v5636_v36  ;;  %v1473_v20 = vadd.f32 %v1472_v9, %v5636_v36 }
 0x2f1   : > { %v1602_v48 = vmul.f32 %v1454_v38, %v5186_v54  ;;  %v1603_v13 = vmul.f32 %v1473_v20, %v5189_v57  ;;  %v1627_v20 = vmax.f32 %v1595_v59, 0.0 }
 0x2f3   : > { %v1634_v15 = vmax.f32 %v1602_v48, 0.0  ;;  %v1635_v10 = vmax.f32 %v1603_v13, 0.0 }
 0x2f5   : > { %v1659_v12 = vpack.c.bf16 %v1635_v10, %v1627_v20  ;;  %v5683_v20 = vld [vmem:[%s6682_s1 + $0x58] sm:$0xff] }
 0x2f6   : > { %v1456_v55 = vpop.f32.mrf.mxu0  ;;  %v1475_v25 = vpop.f32.mrf.mxu1 }
 0x2f7   : > { %v1457_v33 = vadd.f32 %v1456_v55, %v5633_v47  ;;  %v1476_v5 = vadd.f32 %v1475_v25, %v5633_v47 }
 0x2f9   : > { %v1610_v7 = vmul.f32 %v1457_v33, %v6805_v4  ;;  %v1611_v58 = vmul.f32 %v1476_v5, %v6806_v35  ;;  %v1626_v33 = vmax.f32 %v1594_v63, 0.0 }
 0x2fb   : > { %v1642_v23 = vmax.f32 %v1610_v7, 0.0  ;;  %v1643_v37 = vmax.f32 %v1611_v58, 0.0  ;;  %v5660_v7 = vld [vmem:[%s6682_s1 + $0x50] sm:$0xff] }
 0x2fe   : > { %v1458_v44 = vpop.f32.mrf.mxu0  ;;  %v1489_v24 = vpop.f32.mrf.mxu2 }
 0x2ff   : > { %v1459_v1 = vadd.f32 %v1458_v44, %v5641_v50  ;;  %v1477_v45 = vpop.f32.mrf.mxu1  ;;  %v1508_v53 = vpop.f32.mrf.mxu3  ;;  %v1658_v44 = vpack.c.bf16 %v1634_v15, %v1626_v33 }
 0x300   : > { %v1478_v6 = vadd.f32 %v1477_v45, %v5641_v50  ;;  %v1509_v15 = vadd.f32 %v1508_v53, %v5639_v56 }
 0x301   : > { %v1618_v18 = vmul.f32 %v1459_v1, %v6810_v17 }
 0x302   : > { %v1619_v28 = vmul.f32 %v1478_v6, %v6807_v27 }
 0x303   : > { %v1650_v51 = vmax.f32 %v1618_v18, 0.0 }
 0x304   : > { %v1651_v32 = vmax.f32 %v1619_v28, 0.0 }
 0x305   : > { %v1666_v31 = vpack.c.bf16 %v1650_v51, %v1642_v23  ;;  %v1490_v23 = vadd.f32 %v1489_v24, %v5639_v56 }
 0x306   : > { %v1667_v9 = vpack.c.bf16 %v1651_v32, %v1643_v37  ;;  %v1491_v55 = vpop.f32.mrf.mxu2  ;;  %v1527_v25 = vpop.f32.mrf.mxu0 }
 0x307   : > { %v1510_v5 = vpop.f32.mrf.mxu3  ;;  %v1546_v38 = vpop.f32.mrf.mxu1  ;;  %1724 = vmatpush.bf16.msra.mxu0 %v1666_v31  ;;  %v1492_v18 = vadd.f32 %v1491_v55, %v5636_v36  ;;  %v6812_v55 = vld [vmem:[#allocation34_spill] sm:$0xff] }
 0x308   : > { %1743 = vmatpush.bf16.msra.mxu1 %v1667_v9  ;;  %v1511_v13 = vadd.f32 %v1510_v5, %v5636_v36 }
 0x309   : > { %v1604_v9 = vmul.f32 %v1492_v18, %v5192_v42 }
 0x30a   : > { %v1605_v5 = vmul.f32 %v1511_v13, %v5195_v43 }
 0x30b   : > { %1725 = vmatpush.bf16.msra.mxu0 %v1658_v44  ;;  %v1596_v44 = vmul.f32 %v1490_v23, %v5247_v40  ;;  %v1636_v13 = vmax.f32 %v1604_v9, 0.0 }
 0x30c   : > { %1744 = vmatpush.bf16.msra.mxu1 %v1659_v12 }
 0x30e   : > { %v1494_v1 = vpop.f32.mrf.mxu2  ;;  %v1529_v45 = vpop.f32.mrf.mxu0  ;;  %4342 = vmatmul.msk.bf16.vlgmr.msra.gmra.mxu0 %vm883_vm5, %v5660_v7 }
 0x30f   : > { %v1513_v0 = vpop.f32.mrf.mxu3  ;;  %v1548_v58 = vpop.f32.mrf.mxu1  ;;  %4344 = vmatmul.msk.bf16.vlgmr.msra.gmra.mxu1 %vm883_vm5, %v5660_v7  ;;  %v1495_v6 = vadd.f32 %v1494_v1, %v5633_v47 }
 0x310   : > { %v1514_v48 = vadd.f32 %v1513_v0, %v5633_v47  ;;  %v1597_v0 = vmul.f32 %v1509_v15, %v5251_v22 }
 0x311   : > { %v1612_v51 = vmul.f32 %v1495_v6, %v5213_v60 }
 0x312   : > { %v1613_v31 = vmul.f32 %v1514_v48, %v5217_v61 }
 0x313   : > { %v1644_v53 = vmax.f32 %v1612_v51, 0.0  ;;  %v1528_v51 = vadd.f32 %v1527_v25, %v5639_v56 }
 0x314   : > { %v1645_v6 = vmax.f32 %v1613_v31, 0.0 }
 0x316   : > { %v1496_v28 = vpop.f32.mrf.mxu2  ;;  %v1532_v63 = vpop.f32.mrf.mxu0 }
 0x317   : > { %v1497_v59 = vadd.f32 %v1496_v28, %v5641_v50  ;;  %v1515_v37 = vpop.f32.mrf.mxu3  ;;  %v1551_v32 = vpop.f32.mrf.mxu1  ;;  %v1533_v1 = vadd.f32 %v1532_v63, %v5633_v47  ;;  %v1530_v28 = vadd.f32 %v1529_v45, %v5636_v36  ;;  %v1628_v63 = vmax.f32 %v1596_v44, 0.0 }
 0x318   : > { %v1516_v10 = vadd.f32 %v1515_v37, %v5641_v50  ;;  %v1552_v18 = vadd.f32 %v1551_v32, %v5633_v47  ;;  %v1637_v37 = vmax.f32 %v1605_v5, 0.0  ;;  %v1629_v45 = vmax.f32 %v1597_v0, 0.0 }
 0x319   : > { %v1620_v33 = vmul.f32 %v1497_v59, %v6812_v55  ;;  %v1614_v15 = vmul.f32 %v1533_v1, %v5309_v8  ;;  %v1606_v25 = vmul.f32 %v1530_v28, %v5287_v46  ;;  %v1660_v44 = vpack.c.bf16 %v1636_v13, %v1628_v63 }
 0x31a   : > { %v1621_v24 = vmul.f32 %v1516_v10, %v5223_v30  ;;  %v1549_v10 = vadd.f32 %v1548_v58, %v5636_v36  ;;  %v1547_v58 = vadd.f32 %v1546_v38, %v5639_v56  ;;  %v1661_v1 = vpack.c.bf16 %v1637_v37, %v1629_v45  ;;  %v6814_v45 = vld [vmem:[#allocation17_spill] sm:$0xff] }
 0x31b   : > { %v1652_v12 = vmax.f32 %v1620_v33, 0.0  ;;  %v1615_v33 = vmul.f32 %v1552_v18, %v5313_v14  ;;  %v1646_v0 = vmax.f32 %v1614_v15, 0.0 }
 0x31c   : > { %v1653_v48 = vmax.f32 %v1621_v24, 0.0  ;;  %v1599_v38 = vmul.f32 %v1547_v58, %v5283_v29  ;;  %v6815_v58 = vld [vmem:[#allocation18_spill] sm:$0xff] }
 0x31d   : > { %v1668_v59 = vpack.c.bf16 %v1652_v12, %v1644_v53  ;;  %v6813_v53 = vld [vmem:[#allocation44_spill] sm:$0xff]  ;;  %v1647_v18 = vmax.f32 %v1615_v33, 0.0 }
 0x31e   : > { %v1669_v30 = vpack.c.bf16 %v1653_v48, %v1645_v6  ;;  %v1534_v43 = vpop.f32.mrf.mxu0  ;;  %v1565_v23 = vpop.f32.mrf.mxu2  ;;  %4343 = vmatmul.msk.bf16.gmra.mxu0 %vm883_vm5, %v5683_v20  ;;  %v1598_v6 = vmul.f32 %v1528_v51, %v5279_v11  ;;  %v1631_v63 = vmax.f32 %v1599_v38, 0.0 }
 0x31f   : > { %v1535_v32 = vadd.f32 %v1534_v43, %v5641_v50  ;;  %v1553_v31 = vpop.f32.mrf.mxu1  ;;  %v1584_v9 = vpop.f32.mrf.mxu3  ;;  %4345 = vmatmul.msk.bf16.gmra.mxu1 %vm883_vm5, %v5683_v20  ;;  %1762 = vmatpush.bf16.msra.mxu2 %v1668_v59  ;;  %v1607_v43 = vmul.f32 %v1549_v10, %v6811_v62 }
 0x320   : > { %v1554_v5 = vadd.f32 %v1553_v31, %v5641_v50  ;;  %1781 = vmatpush.bf16.msra.mxu3 %v1669_v30  ;;  %v1638_v30 = vmax.f32 %v1606_v25, 0.0  ;;  %v1630_v10 = vmax.f32 %v1598_v6, 0.0  ;;  %v6816_v25 = vld [vmem:[#allocation19_spill] sm:$0xff] }
 0x321   : > { %v1622_v24 = vmul.f32 %v1535_v32, %v5317_v2  ;;  %v1639_v31 = vmax.f32 %v1607_v43, 0.0 }
 0x322   : > { %v1623_v12 = vmul.f32 %v1554_v5, %v6813_v53  ;;  %v1662_v51 = vpack.c.bf16 %v1638_v30, %v1630_v10 }
 0x323   : > { %v1654_v48 = vmax.f32 %v1622_v24, 0.0  ;;  %1763 = vmatpush.bf16.msra.mxu2 %v1660_v44  ;;  %v1663_v15 = vpack.c.bf16 %v1639_v31, %v1631_v63  ;;  %v6817_v24 = vld [vmem:[#allocation20_spill] sm:$0xff] }
 0x324   : > { %v1655_v59 = vmax.f32 %v1623_v12, 0.0  ;;  %1782 = vmatpush.bf16.msra.mxu3 %v1661_v1 }
 0x325   : > { %v1670_v28 = vpack.c.bf16 %v1654_v48, %v1646_v0  ;;  %v1566_v0 = vadd.f32 %v1565_v23, %v5639_v56 }
 0x326   : > { %v1671_v32 = vpack.c.bf16 %v1655_v59, %v1647_v18  ;;  %v1567_v13 = vpop.f32.mrf.mxu2  ;;  %4346 = vmatmul.msk.bf16.vlgmr.msra.gmra.mxu2 %vm883_vm5, %v5660_v7 }
 0x327   : > { %v1586_v37 = vpop.f32.mrf.mxu3  ;;  %4348 = vmatmul.msk.bf16.vlgmr.msra.gmra.mxu3 %vm883_vm5, %v5660_v7  ;;  %1800 = vmatpush.bf16.msrb.mxu0 %v1670_v28  ;;  %v1568_v12 = vadd.f32 %v1567_v13, %v5636_v36 }
 0x328   : > { %1819 = vmatpush.bf16.msrb.mxu1 %v1671_v32  ;;  %v1587_v1 = vadd.f32 %v1586_v37, %v5636_v36  ;;  %v1600_v32 = vmul.f32 %v1566_v0, %v5377_v52 }
 0x329   : > { %v1608_v30 = vmul.f32 %v1568_v12, %v5301_v16  ;;  %v4546_v12 = vld [vmem:[%s6682_s1 + $0x60] sm:$0xff] }
 0x32a   : > { %v1609_v23 = vmul.f32 %v1587_v1, %v5305_v3 }
 0x32b   : > { %1801 = vmatpush.bf16.msrb.mxu0 %v1662_v51 }
 0x32c   : > { %1820 = vmatpush.bf16.msrb.mxu1 %v1663_v15  ;;  %v1641_v15 = vmax.f32 %v1609_v23, 0.0  ;;  %v5786_v23 = vpop.permute.xlu0 %1699 }
 0x32e   : > { %v1570_v33 = vpop.f32.mrf.mxu2  ;;  %4350 = vmatmul.msk.bf16.vlgmr.msrb.gmra.mxu0 %vm883_vm5, %v5660_v7 }
 0x32f   : > { %1981 = vmatpush.bf16.msra.mxu0 %v6814_v45  ;;  %v1589_v5 = vpop.f32.mrf.mxu3  ;;  %4352 = vmatmul.msk.bf16.vlgmr.msrb.gmra.mxu1 %vm883_vm5, %v5660_v7  ;;  %v1571_v44 = vadd.f32 %v1570_v33, %v5633_v47  ;;  %v1632_v45 = vmax.f32 %v1600_v32, 0.0 }
 0x330   : > { %2000 = vmatpush.bf16.msra.mxu1 %v6815_v58  ;;  %v1590_v43 = vadd.f32 %v1589_v5, %v5633_v47  ;;  %v1585_v47 = vadd.f32 %v1584_v9, %v5639_v56  ;;  %v1640_v9 = vmax.f32 %v1608_v30, 0.0  ;;  %v5783_v30 = vpop.permute.xlu1 %1684 }
 0x331   : > { %v1616_v48 = vmul.f32 %v1571_v44, %v5339_v26  ;;  %v6820_v44 = vld [vmem:[#allocation21_spill] sm:$0xff] }
 0x332   : > { %v1617_v59 = vmul.f32 %v1590_v43, %v5343_v19  ;;  %v1601_v37 = vmul.f32 %v1585_v47, %v5381_v21  ;;  %v1664_v33 = vpack.c.bf16 %v1640_v9, %v1632_v45  ;;  %v6821_v43 = vld [vmem:[#allocation22_spill] sm:$0xff] }
 0x333   : > { %2057 = vmatpush.bf16.msrb.mxu0 %v6816_v25  ;;  %v1648_v13 = vmax.f32 %v1616_v48, 0.0  ;;  %v6818_v25 = vld [vmem:[#allocation15_spill] sm:$0xff]  ;;  %v5776_v48 = vpop.permute.xlu2 %1694 }
 0x334   : > { %2076 = vmatpush.bf16.msrb.mxu1 %v6817_v24  ;;  %v1649_v63 = vmax.f32 %v1617_v59, 0.0  ;;  %v1633_v58 = vmax.f32 %v1601_v37, 0.0  ;;  %v6819_v24 = vld [vmem:[#allocation16_spill] sm:$0xff] }
 0x336   : > { %v1572_v6 = vpop.f32.mrf.mxu2  ;;  %4347 = vmatmul.msk.bf16.gmra.mxu2 %vm883_vm5, %v5683_v20  ;;  %v1665_v5 = vpack.c.bf16 %v1641_v15, %v1633_v58 }
 0x337   : > { %v1573_v38 = vadd.f32 %v1572_v6, %v5641_v50  ;;  %v1591_v18 = vpop.f32.mrf.mxu3  ;;  %4349 = vmatmul.msk.bf16.gmra.mxu3 %vm883_vm5, %v5683_v20 }
 0x338   : > { %v1592_v36 = vadd.f32 %v1591_v18, %v5641_v50 }
 0x339   : > { %v1624_v28 = vmul.f32 %v1573_v38, %v5347_v34 }
 0x33a   : > { %v1625_v31 = vmul.f32 %v1592_v36, %v5351_v49 }
 0x33b   : > { %v1656_v10 = vmax.f32 %v1624_v28, 0.0  ;;  %v5780_v59 = vpop.permute.xlu2 %1689 }
 0x33c   : > { %v1657_v56 = vmax.f32 %v1625_v31, 0.0 }
 0x33d   : > { %v1672_v51 = vpack.c.bf16 %v1656_v10, %v1648_v13 }
 0x33e   : > { %v1673_v50 = vpack.c.bf16 %v1657_v56, %v1649_v63  ;;  %4351 = vmatmul.msk.bf16.gmra.mxu0 %vm883_vm5, %v5683_v20 }
 0x33f   : > { %4353 = vmatmul.msk.bf16.gmra.mxu1 %vm883_vm5, %v5683_v20  ;;  %1838 = vmatpush.bf16.msrb.mxu2 %v1672_v51 }
 0x340   : > { %1857 = vmatpush.bf16.msrb.mxu3 %v1673_v50 }
 0x343   : > { %1839 = vmatpush.bf16.msrb.mxu2 %v1664_v33 }
 0x344   : > { %1858 = vmatpush.bf16.msrb.mxu3 %v1665_v5 }
 0x346   : > { %4354 = vmatmul.msk.bf16.vlgmr.msrb.gmra.mxu2 %vm883_vm5, %v5660_v7 }
 0x347   : > { %2019 = vmatpush.bf16.msra.mxu2 %v6818_v25  ;;  %4356 = vmatmul.msk.bf16.vlgmr.msrb.gmra.mxu3 %vm883_vm5, %v5660_v7  ;;  %v4547_v7 = vld [vmem:[%s6682_s1 + $0x68] sm:$0xff] }
 0x348   : > { %2038 = vmatpush.bf16.msra.mxu3 %v6819_v24 }
 0x34b   : > { %2095 = vmatpush.bf16.msrb.mxu2 %v6820_v44 }
 0x34c   : > { %2114 = vmatpush.bf16.msrb.mxu3 %v6821_v43 }
 0x34e   : > { %4366 = vmatmul.msk.bf16.vlgmr.msra.gmra.mxu0 %vm578_vm4, %v4546_v12 }
 0x34f   : > { %4368 = vmatmul.msk.bf16.vlgmr.msra.gmra.mxu1 %vm578_vm4, %v4546_v12 }
 0x356   : > { %4355 = vmatmul.msk.bf16.gmra.mxu2 %vm883_vm5, %v5683_v20 }
 0x357   : > { %4357 = vmatmul.msk.bf16.gmra.mxu3 %vm883_vm5, %v5683_v20 }
 0x35e   : > { %4367 = vmatmul.msk.bf16.gmra.mxu0 %vm578_vm4, %v4547_v7 }
 0x35f   : > { %4369 = vmatmul.msk.bf16.gmra.mxu1 %vm578_vm4, %v4547_v7 }
 0x366   : > { %4370 = vmatmul.msk.bf16.vlgmr.msra.gmra.mxu2 %vm578_vm4, %v4546_v12 }
 0x367   : > { %4372 = vmatmul.msk.bf16.vlgmr.msra.gmra.mxu3 %vm578_vm4, %v4546_v12 }
 0x36e   : > { %4374 = vmatmul.msk.bf16.vlgmr.msrb.gmra.mxu0 %vm578_vm4, %v4546_v12 }
 0x36f   : > { %4376 = vmatmul.msk.bf16.vlgmr.msrb.gmra.mxu1 %vm578_vm4, %v4546_v12 }
 0x376   : > { %4371 = vmatmul.msk.bf16.gmra.mxu2 %vm578_vm4, %v4547_v7 }
 0x377   : > { %4373 = vmatmul.msk.bf16.gmra.mxu3 %vm578_vm4, %v4547_v7 }
 0x37e   : > { %4375 = vmatmul.msk.bf16.gmra.mxu0 %vm578_vm4, %v4547_v7 }
 0x37f   : > { %4377 = vmatmul.msk.bf16.gmra.mxu1 %vm578_vm4, %v4547_v7 }
 0x386   : > { %4378 = vmatmul.msk.bf16.vlgmr.msrb.gmra.mxu2 %vm578_vm4, %v4546_v12 }
 0x387   : > { %4380 = vmatmul.msk.bf16.vlgmr.msrb.gmra.mxu3 %vm578_vm4, %v4546_v12 }
 0x38b   : > { %v1727_v20 = vpop.f32.mrf.mxu0 }
 0x38c   : > { %v1746_v1 = vpop.f32.mrf.mxu1  ;;  %v1728_v13 = vadd.f32 %v1727_v20, %v5783_v30 }
 0x38d   : > { %v1747_v56 = vadd.f32 %v1746_v1, %v5783_v30 }
 0x38e   : > { %v1870_v33 = vmul.f32 %v1728_v13, %v6808_v41 }
 0x38f   : > { %v1871_v24 = vmul.f32 %v1747_v56, %v6809_v39 }
 0x393   : > { %v1729_v6 = vpop.f32.mrf.mxu0 }
 0x394   : > { %v1748_v0 = vpop.f32.mrf.mxu1  ;;  %v1730_v28 = vadd.f32 %v1729_v6, %v5780_v59 }
 0x395   : > { %v1749_v31 = vadd.f32 %v1748_v0, %v5780_v59 }
 0x396   : > { %4379 = vmatmul.msk.bf16.gmra.mxu2 %vm578_vm4, %v4547_v7  ;;  %v1878_v15 = vmul.f32 %v1730_v28, %v5186_v54 }
 0x397   : > { %4381 = vmatmul.msk.bf16.gmra.mxu3 %vm578_vm4, %v4547_v7  ;;  %v1879_v45 = vmul.f32 %v1749_v31, %v5189_v57 }
 0x398   : > { %v1910_v7 = vmax.f32 %v1878_v15, 0.0 }
 0x399   : > { %v1911_v6 = vmax.f32 %v1879_v45, 0.0 }
 0x39b   : > { %v1732_v38 = vpop.f32.mrf.mxu0 }
 0x39c   : > { %v1751_v18 = vpop.f32.mrf.mxu1  ;;  %v1733_v47 = vadd.f32 %v1732_v38, %v5776_v48 }
 0x39d   : > { %v1752_v36 = vadd.f32 %v1751_v18, %v5776_v48  ;;  %v1902_v18 = vmax.f32 %v1870_v33, 0.0 }
 0x39e   : > { %v1886_v10 = vmul.f32 %v1733_v47, %v6805_v4 }
 0x39f   : > { %v1887_v9 = vmul.f32 %v1752_v36, %v6806_v35  ;;  %v1903_v36 = vmax.f32 %v1871_v24, 0.0  ;;  %v1934_v28 = vpack.c.bf16 %v1910_v7, %v1902_v18  ;;  %v5819_v24 = vld [vmem:[%s6682_s1 + $0x78] sm:$0xff] }
 0x3a0   : > { %v1918_v5 = vmax.f32 %v1886_v10, 0.0 }
 0x3a1   : > { %v1919_v44 = vmax.f32 %v1887_v9, 0.0  ;;  %v1935_v31 = vpack.c.bf16 %v1911_v6, %v1903_v36 }
 0x3a3   : > { %v1734_v32 = vpop.f32.mrf.mxu0 }
 0x3a4   : > { %v1735_v37 = vadd.f32 %v1734_v32, %v5786_v23  ;;  %v1753_v63 = vpop.f32.mrf.mxu1  ;;  %v5804_v32 = vld [vmem:[%s6682_s1 + $0x70] sm:$0xff] }
 0x3a5   : > { %v1754_v51 = vadd.f32 %v1753_v63, %v5786_v23 }
 0x3a6   : > { %v1894_v50 = vmul.f32 %v1735_v37, %v6810_v17 }
 0x3a7   : > { %v1895_v58 = vmul.f32 %v1754_v51, %v6807_v27 }
 0x3a8   : > { %v1926_v25 = vmax.f32 %v1894_v50, 0.0 }
 0x3a9   : > { %v1927_v43 = vmax.f32 %v1895_v58, 0.0  ;;  %v1765_v12 = vpop.f32.mrf.mxu2 }
 0x3aa   : > { %v1942_v20 = vpack.c.bf16 %v1926_v25, %v1918_v5  ;;  %v1784_v1 = vpop.f32.mrf.mxu3  ;;  %v1766_v50 = vadd.f32 %v1765_v12, %v5783_v30 }
 0x3ab   : > { %v1943_v0 = vpack.c.bf16 %v1927_v43, %v1919_v44  ;;  %v1803_v38 = vpop.f32.mrf.mxu0  ;;  %v1785_v45 = vadd.f32 %v1784_v1, %v5783_v30 }
 0x3ac   : > { %v1822_v47 = vpop.f32.mrf.mxu1  ;;  %2148 = vmatpush.bf16.msra.mxu0 %v1942_v20  ;;  %v1804_v58 = vadd.f32 %v1803_v38, %v5783_v30  ;;  %v1872_v12 = vmul.f32 %v1766_v50, %v5247_v40 }
 0x3ad   : > { %2167 = vmatpush.bf16.msra.mxu1 %v1943_v0  ;;  %v1823_v5 = vadd.f32 %v1822_v47, %v5783_v30  ;;  %v1873_v7 = vmul.f32 %v1785_v45, %v5251_v22 }
 0x3ae   : > { %v1874_v0 = vmul.f32 %v1804_v58, %v5279_v11 }
 0x3b0   : > { %2149 = vmatpush.bf16.msra.mxu0 %v1934_v28  ;;  %v1875_v28 = vmul.f32 %v1823_v5, %v5283_v29 }
 0x3b1   : > { %2168 = vmatpush.bf16.msra.mxu1 %v1935_v31  ;;  %v1767_v13 = vpop.f32.mrf.mxu2 }
 0x3b2   : > { %v1786_v10 = vpop.f32.mrf.mxu3  ;;  %v1768_v44 = vadd.f32 %v1767_v13, %v5780_v59 }
 0x3b3   : > { %v1805_v37 = vpop.f32.mrf.mxu0  ;;  %4390 = vmatmul.msk.bf16.vlgmr.msra.gmra.mxu0 %vm883_vm5, %v5804_v32  ;;  %v1787_v20 = vadd.f32 %v1786_v10, %v5780_v59 }
 0x3b4   : > { %v1824_v63 = vpop.f32.mrf.mxu1  ;;  %4392 = vmatmul.msk.bf16.vlgmr.msra.gmra.mxu1 %vm883_vm5, %v5804_v32  ;;  %v1806_v38 = vadd.f32 %v1805_v37, %v5780_v59 }
 0x3b5   : > { %v1825_v31 = vadd.f32 %v1824_v63, %v5780_v59  ;;  %v6822_v63 = vld [vmem:[#allocation29_spill] sm:$0xff] }
 0x3b6   : > { %v1881_v45 = vmul.f32 %v1787_v20, %v6822_v63 }
 0x3b9   : > { %v1770_v56 = vpop.f32.mrf.mxu2 }
 0x3ba   : > { %v1789_v9 = vpop.f32.mrf.mxu3  ;;  %v1771_v33 = vadd.f32 %v1770_v56, %v5776_v48 }
 0x3bb   : > { %v1808_v51 = vpop.f32.mrf.mxu0  ;;  %v1790_v25 = vadd.f32 %v1789_v9, %v5776_v48  ;;  %v1880_v9 = vmul.f32 %v1768_v44, %v5192_v42  ;;  %v1882_v44 = vmul.f32 %v1806_v38, %v5287_v46  ;;  %v1913_v42 = vmax.f32 %v1881_v45, 0.0 }
 0x3bc   : > { %v1827_v15 = vpop.f32.mrf.mxu1  ;;  %v1809_v43 = vadd.f32 %v1808_v51, %v5776_v48  ;;  %v1888_v18 = vmul.f32 %v1771_v33, %v5213_v60  ;;  %v6823_v33 = vld [vmem:[#allocation35_spill] sm:$0xff]  ;;  %v1904_v38 = vmax.f32 %v1872_v12, 0.0 }
 0x3bd   : > { %v1828_v1 = vadd.f32 %v1827_v15, %v5776_v48  ;;  %v1889_v13 = vmul.f32 %v1790_v25, %v5217_v61 }
 0x3be   : > { %v1890_v37 = vmul.f32 %v1809_v43, %v5309_v8 }
 0x3bf   : > { %v1891_v58 = vmul.f32 %v1828_v1, %v5313_v14 }
 0x3c0   : > { %v1922_v20 = vmax.f32 %v1890_v37, 0.0  ;;  %v1907_v37 = vmax.f32 %v1875_v28, 0.0 }
 0x3c1   : > { %v1772_v6 = vpop.f32.mrf.mxu2 }
 0x3c2   : > { %v1773_v47 = vadd.f32 %v1772_v6, %v5786_v23  ;;  %v1791_v36 = vpop.f32.mrf.mxu3  ;;  %v1920_v6 = vmax.f32 %v1888_v18, 0.0  ;;  %v1914_v18 = vmax.f32 %v1882_v44, 0.0 }
 0x3c3   : > { %v1792_v10 = vadd.f32 %v1791_v36, %v5786_v23  ;;  %v1810_v56 = vpop.f32.mrf.mxu0  ;;  %4391 = vmatmul.msk.bf16.gmra.mxu0 %vm883_vm5, %v5819_v24  ;;  %v1883_v36 = vmul.f32 %v1825_v31, %v6811_v62 }
 0x3c4   : > { %v1896_v51 = vmul.f32 %v1773_v47, %v6812_v55  ;;  %v1811_v15 = vadd.f32 %v1810_v56, %v5786_v23  ;;  %v1829_v50 = vpop.f32.mrf.mxu1  ;;  %4393 = vmatmul.msk.bf16.gmra.mxu1 %vm883_vm5, %v5819_v24  ;;  %v1921_v56 = vmax.f32 %v1889_v13, 0.0  ;;  %v1912_v55 = vmax.f32 %v1880_v9, 0.0 }
 0x3c5   : > { %v1897_v5 = vmul.f32 %v1792_v10, %v6823_v33  ;;  %v1830_v25 = vadd.f32 %v1829_v50, %v5786_v23  ;;  %v1923_v10 = vmax.f32 %v1891_v58, 0.0  ;;  %v1915_v31 = vmax.f32 %v1883_v36, 0.0 }
 0x3c6   : > { %v1928_v43 = vmax.f32 %v1896_v51, 0.0  ;;  %v1898_v47 = vmul.f32 %v1811_v15, %v5317_v2  ;;  %v1905_v15 = vmax.f32 %v1873_v7, 0.0  ;;  %v1936_v9 = vpack.c.bf16 %v1912_v55, %v1904_v38 }
 0x3c7   : > { %v1929_v22 = vmax.f32 %v1897_v5, 0.0  ;;  %v1899_v40 = vmul.f32 %v1830_v25, %v6813_v53  ;;  %v1906_v5 = vmax.f32 %v1874_v0, 0.0 }
 0x3c8   : > { %v1944_v63 = vpack.c.bf16 %v1928_v43, %v1920_v6  ;;  %v1930_v1 = vmax.f32 %v1898_v47, 0.0  ;;  %v1937_v25 = vpack.c.bf16 %v1913_v42, %v1905_v15 }
 0x3c9   : > { %v1945_v33 = vpack.c.bf16 %v1929_v22, %v1921_v56  ;;  %v1931_v50 = vmax.f32 %v1899_v40, 0.0  ;;  %v1841_v61 = vpop.f32.mrf.mxu2  ;;  %v1938_v45 = vpack.c.bf16 %v1914_v18, %v1906_v5  ;;  %v1939_v40 = vpack.c.bf16 %v1915_v31, %v1907_v37 }
 0x3ca   : > { %v1946_v51 = vpack.c.bf16 %v1930_v1, %v1922_v20  ;;  %v1860_v60 = vpop.f32.mrf.mxu3  ;;  %2186 = vmatpush.bf16.msra.mxu2 %v1944_v63  ;;  %v1842_v6 = vadd.f32 %v1841_v61, %v5783_v30 }
 0x3cb   : > { %v1947_v13 = vpack.c.bf16 %v1931_v50, %v1923_v10  ;;  %2205 = vmatpush.bf16.msra.mxu3 %v1945_v33  ;;  %v5862_v63 = vpop.f32.mrf.mxu0 }
 0x3cc   : > { %2224 = vmatpush.bf16.msrb.mxu0 %v1946_v51  ;;  %v5867_v44 = vpop.f32.mrf.mxu1 }
 0x3cd   : > { %2243 = vmatpush.bf16.msrb.mxu1 %v1947_v13 }
 0x3ce   : > { %2187 = vmatpush.bf16.msra.mxu2 %v1936_v9 }
 0x3cf   : > { %2206 = vmatpush.bf16.msra.mxu3 %v1937_v25 }
 0x3d0   : > { %2225 = vmatpush.bf16.msrb.mxu0 %v1938_v45 }
 0x3d1   : > { %2244 = vmatpush.bf16.msrb.mxu1 %v1939_v40  ;;  %v1843_v22 = vpop.f32.mrf.mxu2  ;;  %4394 = vmatmul.msk.bf16.vlgmr.msra.gmra.mxu2 %vm883_vm5, %v5804_v32 }
 0x3d2   : > { %v1862_v12 = vpop.f32.mrf.mxu3  ;;  %4396 = vmatmul.msk.bf16.vlgmr.msra.gmra.mxu3 %vm883_vm5, %v5804_v32  ;;  %v1844_v28 = vadd.f32 %v1843_v22, %v5780_v59 }
 0x3d3   : > { %4398 = vmatmul.msk.bf16.vlgmr.msrb.gmra.mxu0 %vm883_vm5, %v5804_v32  ;;  %v1863_v58 = vadd.f32 %v1862_v12, %v5780_v59  ;;  %v1985_v9 = vpop.f32.mrf.mxu0 }
 0x3d4   : > { %4400 = vmatmul.msk.bf16.vlgmr.msrb.gmra.mxu1 %vm883_vm5, %v5804_v32  ;;  %v1884_v20 = vmul.f32 %v1844_v28, %v5301_v16  ;;  %v2004_v25 = vpop.f32.mrf.mxu1 }
 0x3d5   : > { %v1885_v1 = vmul.f32 %v1863_v58, %v5305_v3 }
 0x3d6   : > { %v1916_v51 = vmax.f32 %v1884_v20, 0.0 }
 0x3d7   : > { %v1917_v31 = vmax.f32 %v1885_v1, 0.0 }
 0x3d9   : > { %v1846_v42 = vpop.f32.mrf.mxu2 }
 0x3da   : > { %v1865_v55 = vpop.f32.mrf.mxu3  ;;  %v1847_v7 = vadd.f32 %v1846_v42, %v5776_v48 }
 0x3db   : > { %v1866_v0 = vadd.f32 %v1865_v55, %v5776_v48  ;;  %v1861_v48 = vadd.f32 %v1860_v60, %v5783_v30  ;;  %v1876_v60 = vmul.f32 %v1842_v6, %v5377_v52  ;;  %v1988_v22 = vpop.f32.mrf.mxu0 }
 0x3dc   : > { %v1892_v43 = vmul.f32 %v1847_v7, %v5339_v26  ;;  %v2007_v12 = vpop.f32.mrf.mxu1 }
 0x3dd   : > { %v1893_v59 = vmul.f32 %v1866_v0, %v5343_v19  ;;  %v1908_v5 = vmax.f32 %v1876_v60, 0.0 }
 0x3de   : > { %v1924_v30 = vmax.f32 %v1892_v43, 0.0 }
 0x3df   : > { %v1925_v38 = vmax.f32 %v1893_v59, 0.0  ;;  %v1940_v45 = vpack.c.bf16 %v1916_v51, %v1908_v5  ;;  %v5935_v51 = vpop.permute.xlu0 %2310 }
 0x3e1   : > { %v1848_v33 = vpop.f32.mrf.mxu2  ;;  %4395 = vmatmul.msk.bf16.gmra.mxu2 %vm883_vm5, %v5819_v24 }
 0x3e2   : > { %v1849_v47 = vadd.f32 %v1848_v33, %v5786_v23  ;;  %v1867_v36 = vpop.f32.mrf.mxu3  ;;  %4397 = vmatmul.msk.bf16.gmra.mxu3 %vm883_vm5, %v5819_v24 }
 0x3e3   : > { %v1868_v56 = vadd.f32 %v1867_v36, %v5786_v23  ;;  %4399 = vmatmul.msk.bf16.gmra.mxu0 %vm883_vm5, %v5819_v24  ;;  %v1877_v23 = vmul.f32 %v1861_v48, %v5381_v21  ;;  %v1990_v42 = vpop.f32.mrf.mxu0 }
 0x3e4   : > { %v1900_v61 = vmul.f32 %v1849_v47, %v5347_v34  ;;  %4401 = vmatmul.msk.bf16.gmra.mxu1 %vm883_vm5, %v5819_v24  ;;  %v2009_v55 = vpop.f32.mrf.mxu1 }
 0x3e5   : > { %v1901_v10 = vmul.f32 %v1868_v56, %v5351_v49  ;;  %v1909_v37 = vmax.f32 %v1877_v23, 0.0 }
 0x3e6   : > { %v1932_v50 = vmax.f32 %v1900_v61, 0.0 }
 0x3e7   : > { %v1933_v18 = vmax.f32 %v1901_v10, 0.0  ;;  %v1941_v40 = vpack.c.bf16 %v1917_v31, %v1909_v37  ;;  %v5943_v3 = vpop.permute.xlu0 %2305 }
 0x3e8   : > { %v1948_v15 = vpack.c.bf16 %v1932_v50, %v1924_v30 }
 0x3e9   : > { %v1949_v13 = vpack.c.bf16 %v1933_v18, %v1925_v38  ;;  %v5895_v7 = vpop.f32.mrf.mxu2 }
 0x3ea   : > { %2262 = vmatpush.bf16.msrb.mxu2 %v1948_v15  ;;  %v5897_v0 = vpop.f32.mrf.mxu3 }
 0x3eb   : > { %2281 = vmatpush.bf16.msrb.mxu3 %v1949_v13  ;;  %v5899_v28 = vpop.f32.mrf.mxu0 }
 0x3ec   : > { %v5901_v58 = vpop.f32.mrf.mxu1 }
 0x3ee   : > { %2263 = vmatpush.bf16.msrb.mxu2 %v1940_v45 }
 0x3ef   : > { %2282 = vmatpush.bf16.msrb.mxu3 %v1941_v40 }
 0x3f1   : > { %4402 = vmatmul.msk.bf16.vlgmr.msrb.gmra.mxu2 %vm883_vm5, %v5804_v32  ;;  %v5903_v33 = vpop.f32.mrf.mxu2 }
 0x3f2   : > { %4404 = vmatmul.msk.bf16.vlgmr.msrb.gmra.mxu3 %vm883_vm5, %v5804_v32  ;;  %v5905_v32 = vpop.f32.mrf.mxu3 }
 0x3f3   : > { %v5907_v6 = vpop.f32.mrf.mxu0 }
 0x3f4   : > { %v5909_v43 = vpop.f32.mrf.mxu1 }
 0x3f9   : > { %v5911_v47 = vpop.f32.mrf.mxu2 }
 0x3fa   : > { %v5913_v36 = vpop.f32.mrf.mxu3 }
 0x3fc   : > { %v5917_v48 = vpop.f32.mrf.mxu1 }
 0x401   : > { %4403 = vmatmul.msk.bf16.gmra.mxu2 %vm883_vm5, %v5819_v24  ;;  %v5919_v59 = vpop.f32.mrf.mxu2 }
 0x402   : > { %4405 = vmatmul.msk.bf16.gmra.mxu3 %vm883_vm5, %v5819_v24  ;;  %v5915_v24 = vpop.f32.mrf.mxu0  ;;  %v5921_v56 = vpop.f32.mrf.mxu3 }
 0x404   : > { %v5925_v61 = vpop.f32.mrf.mxu1 }
 0x409   : > { %v5927_v1 = vpop.f32.mrf.mxu2 }
 0x40a   : > { %v5923_v20 = vpop.f32.mrf.mxu0  ;;  %6824 = vst [vmem:[#allocation23_spill] sm:$0xff] %v5927_v1  ;;  %v5929_v10 = vpop.f32.mrf.mxu3 }
 0x40b   : > { %6825 = vst [vmem:[#allocation24_spill] sm:$0xff] %v5929_v10 }
 0x411   : > { %v5931_v50 = vpop.f32.mrf.mxu2 }
 0x412   : > { %v5933_v38 = vpop.f32.mrf.mxu3 }
 0x413   : > { %6826 = vst [vmem:[#allocation25_spill] sm:$0xff] %v5933_v38  ;;  %v5948_v38 = vpop.permute.xlu1 %2315 }
 0x419   : > { %v5937_v13 = vpop.f32.mrf.mxu2 }
 0x41a   : > { %v5939_v5 = vpop.f32.mrf.mxu3 }
 0x430   : > { %v2151_v60 = vpop.f32.mrf.mxu0 }
 0x431   : > { %v2170_v30 = vpop.f32.mrf.mxu1  ;;  %v2152_v52 = vadd.f32 %v2151_v60, %v5862_v63 }
 0x432   : > { %v2171_v34 = vadd.f32 %v2170_v30, %v5867_v44 }
 0x438   : > { %v2153_v23 = vpop.f32.mrf.mxu0 }
 0x439   : > { %v2172_v18 = vpop.f32.mrf.mxu1  ;;  %v2154_v40 = vadd.f32 %v2153_v23, %v1985_v9  ;;  %v5958_v23 = vpop.f32.mrf.mxu2 }
 0x43a   : > { %v2173_v21 = vadd.f32 %v2172_v18, %v2004_v25  ;;  %v5962_v18 = vpop.f32.mrf.mxu3 }
 0x43b   : > { %v2326_v26 = vadd.f32 %v5943_v3, %v2154_v40 }
 0x43c   : > { %v2327_v9 = vadd.f32 %v5943_v3, %v2173_v21 }
 0x440   : > { %v2156_v15 = vpop.f32.mrf.mxu0 }
 0x441   : > { %v2175_v31 = vpop.f32.mrf.mxu1  ;;  %v2157_v37 = vadd.f32 %v2156_v15, %v1988_v22  ;;  %v5950_v22 = vpop.permute.xlu2 %2300 }
 0x442   : > { %v2176_v45 = vadd.f32 %v2175_v31, %v2007_v12  ;;  %v2318_v25 = vadd.f32 %v5950_v22, %v2152_v52  ;;  %v2319_v60 = vadd.f32 %v5950_v22, %v2171_v34  ;;  %v2359_v52 = vmul.f32 %v2327_v9, %v5189_v57 }
 0x443   : > { %v2334_v49 = vadd.f32 %v5935_v51, %v2157_v37 }
 0x444   : > { %v2335_v16 = vadd.f32 %v5935_v51, %v2176_v45 }
 0x445   : > { %v2366_v12 = vmul.f32 %v2334_v49, %v6805_v4 }
 0x446   : > { %v2367_v30 = vmul.f32 %v2335_v16, %v6806_v35  ;;  %v2351_v16 = vmul.f32 %v2319_v60, %v6809_v39 }
 0x448   : > { %v2158_v19 = vpop.f32.mrf.mxu0 }
 0x449   : > { %v2159_v10 = vadd.f32 %v2158_v19, %v1990_v42  ;;  %v2177_v1 = vpop.f32.mrf.mxu1  ;;  %v2358_v42 = vmul.f32 %v2326_v26, %v5186_v54 }
 0x44a   : > { %v2178_v63 = vadd.f32 %v2177_v1, %v2009_v55  ;;  %v2350_v55 = vmul.f32 %v2318_v25, %v6808_v41  ;;  %v2398_v1 = vmax.f32 %v2366_v12, 0.0  ;;  %v5972_v12 = vld [vmem:[%s6682_s1 + $0x80] sm:$0xff] }
 0x44b   : > { %v2342_v44 = vadd.f32 %v5948_v38, %v2159_v10  ;;  %v2399_v10 = vmax.f32 %v2367_v30, 0.0  ;;  %v2390_v26 = vmax.f32 %v2358_v42, 0.0 }
 0x44c   : > { %v2343_v19 = vadd.f32 %v5948_v38, %v2178_v63  ;;  %v2391_v63 = vmax.f32 %v2359_v52, 0.0  ;;  %v2382_v54 = vmax.f32 %v2350_v55, 0.0 }
 0x44d   : > { %v2374_v21 = vmul.f32 %v2342_v44, %v6810_v17  ;;  %v2383_v44 = vmax.f32 %v2351_v16, 0.0 }
 0x44e   : > { %v2375_v49 = vmul.f32 %v2343_v19, %v6807_v27  ;;  %v2414_v27 = vpack.c.bf16 %v2390_v26, %v2382_v54 }
 0x44f   : > { %v2406_v34 = vmax.f32 %v2374_v21, 0.0  ;;  %v2415_v25 = vpack.c.bf16 %v2391_v63, %v2383_v44 }
 0x450   : > { %v2407_v15 = vmax.f32 %v2375_v49, 0.0  ;;  %v2227_v31 = vpop.f32.mrf.mxu0 }
 0x451   : > { %v2246_v37 = vpop.f32.mrf.mxu1  ;;  %v2422_v45 = vpack.c.bf16 %v2406_v34, %v2398_v1  ;;  %v2228_v54 = vadd.f32 %v2227_v31, %v5899_v28  ;;  %v5989_v28 = vld [vmem:[%s6682_s1 + $0x88] sm:$0xff] }
 0x452   : > { %v2423_v40 = vpack.c.bf16 %v2407_v15, %v2399_v10  ;;  %v2247_v55 = vadd.f32 %v2246_v37, %v5901_v58 }
 0x453   : > { %2480 = vmatpush.bf16.msra.mxu0 %v2422_v45  ;;  %v2322_v16 = vadd.f32 %v5950_v22, %v2228_v54 }
 0x454   : > { %2499 = vmatpush.bf16.msra.mxu1 %v2423_v40  ;;  %v2189_v9 = vpop.f32.mrf.mxu2  ;;  %v2323_v45 = vadd.f32 %v5950_v22, %v2247_v55 }
 0x455   : > { %v2208_v19 = vpop.f32.mrf.mxu3  ;;  %v2190_v58 = vadd.f32 %v2189_v9, %v5895_v7 }
 0x456   : > { %v2209_v31 = vadd.f32 %v2208_v19, %v5897_v0  ;;  %v2355_v9 = vmul.f32 %v2323_v45, %v5283_v29  ;;  %v6827_v45 = vld [vmem:[#allocation32_spill] sm:$0xff] }
 0x457   : > { %2481 = vmatpush.bf16.msra.mxu0 %v2414_v27 }
 0x458   : > { %2500 = vmatpush.bf16.msra.mxu1 %v2415_v25  ;;  %v2229_v60 = vpop.f32.mrf.mxu0 }
 0x459   : > { %v2248_v30 = vpop.f32.mrf.mxu1  ;;  %v2230_v10 = vadd.f32 %v2229_v60, %v5907_v6 }
 0x45a   : > { %4414 = vmatmul.msk.bf16.vlgmr.msra.gmra.mxu0 %vm883_vm5, %v5972_v12  ;;  %v2249_v26 = vadd.f32 %v2248_v30, %v5909_v43  ;;  %v2354_v43 = vmul.f32 %v2322_v16, %v5279_v11  ;;  %v2321_v30 = vadd.f32 %v5950_v22, %v2209_v31  ;;  %v6828_v31 = vld [vmem:[#allocation33_spill] sm:$0xff] }
 0x45b   : > { %4416 = vmatmul.msk.bf16.vlgmr.msra.gmra.mxu1 %vm883_vm5, %v5972_v12  ;;  %v2330_v63 = vadd.f32 %v5943_v3, %v2230_v10 }
 0x45c   : > { %v2191_v42 = vpop.f32.mrf.mxu2 }
 0x45d   : > { %v2210_v21 = vpop.f32.mrf.mxu3  ;;  %v2192_v44 = vadd.f32 %v2191_v42, %v5903_v33 }
 0x45e   : > { %v2211_v0 = vadd.f32 %v2210_v21, %v5905_v32 }
 0x45f   : > { %v2328_v54 = vadd.f32 %v5943_v3, %v2192_v44  ;;  %v6830_v44 = vld [vmem:[#allocation34_spill] sm:$0xff] }
 0x460   : > { %v2232_v52 = vpop.f32.mrf.mxu0 }
 0x461   : > { %v2251_v49 = vpop.f32.mrf.mxu1  ;;  %v2233_v1 = vadd.f32 %v2232_v52, %v5915_v24  ;;  %v2362_v52 = vmul.f32 %v2330_v63, %v5287_v46 }
 0x462   : > { %v2252_v27 = vadd.f32 %v2251_v49, %v5917_v48 }
 0x463   : > { %v2338_v24 = vadd.f32 %v5935_v51, %v2233_v1 }
 0x464   : > { %v2194_v34 = vpop.f32.mrf.mxu2  ;;  %v2339_v6 = vadd.f32 %v5935_v51, %v2252_v27 }
 0x465   : > { %v2213_v15 = vpop.f32.mrf.mxu3  ;;  %v2195_v48 = vadd.f32 %v2194_v34, %v5911_v47  ;;  %v2331_v47 = vadd.f32 %v5943_v3, %v2249_v26  ;;  %v2370_v60 = vmul.f32 %v2338_v24, %v5309_v8  ;;  %v2329_v34 = vadd.f32 %v5943_v3, %v2211_v0  ;;  %v6831_v0 = vld [vmem:[#allocation29_spill] sm:$0xff] }
 0x466   : > { %v2214_v37 = vadd.f32 %v2213_v15, %v5913_v36  ;;  %v2320_v36 = vadd.f32 %v5950_v22, %v2190_v58  ;;  %v2371_v32 = vmul.f32 %v2339_v6, %v5313_v14 }
 0x467   : > { %v2336_v33 = vadd.f32 %v5935_v51, %v2195_v48  ;;  %v2363_v27 = vmul.f32 %v2331_v47, %v6811_v62  ;;  %v2402_v15 = vmax.f32 %v2370_v60, 0.0  ;;  %v2394_v47 = vmax.f32 %v2362_v52, 0.0 }
 0x468   : > { %v2234_v40 = vpop.f32.mrf.mxu0  ;;  %v2403_v48 = vmax.f32 %v2371_v32, 0.0 }
 0x469   : > { %v2235_v25 = vadd.f32 %v2234_v40, %v5923_v20  ;;  %v2253_v7 = vpop.f32.mrf.mxu1  ;;  %v2368_v26 = vmul.f32 %v2336_v33, %v6827_v45  ;;  %v6829_v40 = vld [vmem:[#allocation28_spill] sm:$0xff] }
 0x46a   : > { %v2254_v19 = vadd.f32 %v2253_v7, %v5925_v61  ;;  %4415 = vmatmul.msk.bf16.gmra.mxu0 %vm883_vm5, %v5989_v28  ;;  %v2337_v61 = vadd.f32 %v5935_v51, %v2214_v37  ;;  %v2360_v63 = vmul.f32 %v2328_v54, %v6829_v40 }
 0x46b   : > { %v2346_v20 = vadd.f32 %v5948_v38, %v2235_v25  ;;  %4417 = vmatmul.msk.bf16.gmra.mxu1 %vm883_vm5, %v5989_v28 }
 0x46c   : > { %v2347_v42 = vadd.f32 %v5948_v38, %v2254_v19  ;;  %v2196_v21 = vpop.f32.mrf.mxu2  ;;  %v2369_v6 = vmul.f32 %v2337_v61, %v6828_v31  ;;  %v6832_v19 = vld [vmem:[#allocation35_spill] sm:$0xff] }
 0x46d   : > { %v2378_v49 = vmul.f32 %v2346_v20, %v5317_v2  ;;  %v2197_v55 = vadd.f32 %v2196_v21, %v5919_v59  ;;  %v2215_v1 = vpop.f32.mrf.mxu3  ;;  %v2395_v20 = vmax.f32 %v2363_v27, 0.0  ;;  %v6833_v21 = vld [vmem:[#allocation36_spill] sm:$0xff] }
 0x46e   : > { %v2379_v16 = vmul.f32 %v2347_v42, %v6813_v53  ;;  %v2216_v10 = vadd.f32 %v2215_v1, %v5921_v56  ;;  %v2361_v56 = vmul.f32 %v2329_v34, %v6831_v0  ;;  %v2386_v42 = vmax.f32 %v2354_v43, 0.0  ;;  %v6834_v1 = vld [vmem:[#allocation37_spill] sm:$0xff] }
 0x46f   : > { %v2410_v58 = vmax.f32 %v2378_v49, 0.0  ;;  %v2344_v24 = vadd.f32 %v5948_v38, %v2197_v55  ;;  %v2352_v32 = vmul.f32 %v2320_v36, %v6833_v21  ;;  %v2400_v49 = vmax.f32 %v2368_v26, 0.0 }
 0x470   : > { %v2411_v37 = vmax.f32 %v2379_v16, 0.0  ;;  %v2345_v59 = vadd.f32 %v5948_v38, %v2216_v10  ;;  %v2387_v55 = vmax.f32 %v2355_v9, 0.0  ;;  %v2353_v16 = vmul.f32 %v2321_v30, %v6834_v1 }
 0x471   : > { %v2376_v25 = vmul.f32 %v2344_v24, %v6830_v44  ;;  %v2426_v7 = vpack.c.bf16 %v2410_v58, %v2402_v15  ;;  %v2401_v54 = vmax.f32 %v2369_v6, 0.0  ;;  %v2418_v34 = vpack.c.bf16 %v2394_v47, %v2386_v42 }
 0x472   : > { %v2377_v60 = vmul.f32 %v2345_v59, %v6832_v19  ;;  %v2427_v33 = vpack.c.bf16 %v2411_v37, %v2403_v48  ;;  %v2392_v24 = vmax.f32 %v2360_v63, 0.0  ;;  %v2419_v48 = vpack.c.bf16 %v2395_v20, %v2387_v55 }
 0x473   : > { %v2408_v61 = vmax.f32 %v2376_v25, 0.0  ;;  %2556 = vmatpush.bf16.msrb.mxu0 %v2426_v7  ;;  %v2393_v27 = vmax.f32 %v2361_v56, 0.0  ;;  %v2384_v43 = vmax.f32 %v2352_v32, 0.0  ;;  %v2385_v36 = vmax.f32 %v2353_v16, 0.0  ;;  %v6835_v56 = vld [vmem:[#allocation25_spill] sm:$0xff]  ;;  %v6837_v32 = vld [vmem:[#allocation24_spill] sm:$0xff] }
 0x474   : > { %v2409_v10 = vmax.f32 %v2377_v60, 0.0  ;;  %2575 = vmatpush.bf16.msrb.mxu1 %v2427_v33  ;;  %v2265_v15 = vpop.f32.mrf.mxu2  ;;  %v6836_v33 = vld [vmem:[#allocation23_spill] sm:$0xff] }
 0x475   : > { %v2284_v52 = vpop.f32.mrf.mxu3  ;;  %v2424_v58 = vpack.c.bf16 %v2408_v61, %v2400_v49  ;;  %v2416_v9 = vpack.c.bf16 %v2392_v24, %v2384_v43  ;;  %v2417_v30 = vpack.c.bf16 %v2393_v27, %v2385_v36  ;;  %v2266_v20 = vadd.f32 %v2265_v15, %v6836_v33  ;;  %v6838_v15 = vld [vmem:[#allocation45_spill] sm:$0xff]  ;;  %v6840_v24 = vld [vmem:[#allocation40_spill] sm:$0xff] }
 0x476   : > { %v2425_v59 = vpack.c.bf16 %v2409_v10, %v2401_v54  ;;  %v2285_v49 = vadd.f32 %v2284_v52, %v6837_v32  ;;  %v6842_v27 = vld [vmem:[#allocation41_spill] sm:$0xff]  ;;  %v6843_v36 = vld [vmem:[#allocation48_spill] sm:$0xff] }
 0x477   : > { %2518 = vmatpush.bf16.msra.mxu2 %v2424_v58  ;;  %2557 = vmatpush.bf16.msrb.mxu0 %v2418_v34  ;;  %v2324_v10 = vadd.f32 %v5950_v22, %v2266_v20 }
 0x478   : > { %2537 = vmatpush.bf16.msra.mxu3 %v2425_v59  ;;  %2576 = vmatpush.bf16.msrb.mxu1 %v2419_v48  ;;  %v6841_v59 = vld [vmem:[#allocation47_spill] sm:$0xff] }
 0x47a   : > { %4422 = vmatmul.msk.bf16.vlgmr.msrb.gmra.mxu0 %vm883_vm5, %v5972_v12 }
 0x47b   : > { %4424 = vmatmul.msk.bf16.vlgmr.msrb.gmra.mxu1 %vm883_vm5, %v5972_v12  ;;  %2519 = vmatpush.bf16.msra.mxu2 %v2416_v9 }
 0x47c   : > { %2538 = vmatpush.bf16.msra.mxu3 %v2417_v30  ;;  %v2267_v26 = vpop.f32.mrf.mxu2  ;;  %v6844_v30 = vld [vmem:[#allocation49_spill] sm:$0xff] }
 0x47d   : > { %v2286_v6 = vpop.f32.mrf.mxu3  ;;  %v2268_v47 = vadd.f32 %v2267_v26, %v5931_v50  ;;  %v2356_v26 = vmul.f32 %v2324_v10, %v6844_v30 }
 0x47e   : > { %4418 = vmatmul.msk.bf16.vlgmr.msra.gmra.mxu2 %vm883_vm5, %v5972_v12  ;;  %v2287_v60 = vadd.f32 %v2286_v6, %v6835_v56 }
 0x47f   : > { %4420 = vmatmul.msk.bf16.vlgmr.msra.gmra.mxu3 %vm883_vm5, %v5972_v12  ;;  %v2388_v33 = vmax.f32 %v2356_v26, 0.0 }
 0x480   : > { %v2333_v16 = vadd.f32 %v5943_v3, %v2287_v60 }
 0x482   : > { %v2365_v43 = vmul.f32 %v2333_v16, %v6842_v27 }
 0x484   : > { %v2270_v37 = vpop.f32.mrf.mxu2 }
 0x485   : > { %v2289_v63 = vpop.f32.mrf.mxu3  ;;  %v2271_v25 = vadd.f32 %v2270_v37, %v5937_v13 }
 0x486   : > { %v2290_v7 = vadd.f32 %v2289_v63, %v5939_v5  ;;  %v2332_v5 = vadd.f32 %v5943_v3, %v2268_v47  ;;  %v6845_v63 = vld [vmem:[#allocation50_spill] sm:$0xff] }
 0x487   : > { %v2340_v42 = vadd.f32 %v5935_v51, %v2271_v25 }
 0x488   : > { %v2341_v13 = vadd.f32 %v5935_v51, %v2290_v7  ;;  %v2325_v51 = vadd.f32 %v5950_v22, %v2285_v49 }
 0x489   : > { %v2372_v58 = vmul.f32 %v2340_v42, %v6838_v15 }
 0x48a   : > { %4423 = vmatmul.msk.bf16.gmra.mxu0 %vm883_vm5, %v5989_v28  ;;  %v2357_v25 = vmul.f32 %v2325_v51, %v6845_v63  ;;  %v6092_v51 = vpop.permute.xlu0 %2440 }
 0x48b   : > { %4425 = vmatmul.msk.bf16.gmra.mxu1 %vm883_vm5, %v5989_v28  ;;  %v2404_v6 = vmax.f32 %v2372_v58, 0.0  ;;  %v6089_v58 = vpop.permute.xlu2 %2455 }
 0x48c   : > { %v2272_v61 = vpop.f32.mrf.mxu2  ;;  %v2389_v20 = vmax.f32 %v2357_v25, 0.0 }
 0x48d   : > { %v2273_v50 = vadd.f32 %v2272_v61, %v5958_v23  ;;  %v2291_v55 = vpop.f32.mrf.mxu3  ;;  %v6839_v23 = vld [vmem:[#allocation46_spill] sm:$0xff] }
 0x48e   : > { %v2292_v54 = vadd.f32 %v2291_v55, %v5962_v18  ;;  %4419 = vmatmul.msk.bf16.gmra.mxu2 %vm883_vm5, %v5989_v28  ;;  %v2373_v34 = vmul.f32 %v2341_v13, %v6839_v23  ;;  %v2364_v18 = vmul.f32 %v2332_v5, %v6840_v24 }
 0x48f   : > { %v2348_v52 = vadd.f32 %v5948_v38, %v2273_v50  ;;  %4421 = vmatmul.msk.bf16.gmra.mxu3 %vm883_vm5, %v5989_v28  ;;  %v6083_v50 = vpop.permute.xlu1 %2450 }
 0x490   : > { %v2349_v3 = vadd.f32 %v5948_v38, %v2292_v54  ;;  %v2405_v7 = vmax.f32 %v2373_v34, 0.0  ;;  %v2396_v56 = vmax.f32 %v2364_v18, 0.0  ;;  %v2397_v38 = vmax.f32 %v2365_v43, 0.0 }
 0x491   : > { %v2380_v48 = vmul.f32 %v2348_v52, %v6841_v59 }
 0x492   : > { %v2381_v9 = vmul.f32 %v2349_v3, %v6843_v36  ;;  %v2420_v42 = vpack.c.bf16 %v2396_v56, %v2388_v33  ;;  %v2421_v32 = vpack.c.bf16 %v2397_v38, %v2389_v20 }
 0x493   : > { %v2412_v37 = vmax.f32 %v2380_v48, 0.0 }
 0x494   : > { %v2413_v22 = vmax.f32 %v2381_v9, 0.0 }
 0x495   : > { %v2428_v47 = vpack.c.bf16 %v2412_v37, %v2404_v6  ;;  %v6846_v37 = vld [vmem:[#allocation27_spill] sm:$0xff] }
 0x496   : > { %v2429_v60 = vpack.c.bf16 %v2413_v22, %v2405_v7 }
 0x497   : > { %2594 = vmatpush.bf16.msrb.mxu2 %v2428_v47  ;;  %v6086_v10 = vpop.permute.xlu1 %2445  ;;  %v6847_v47 = vld [vmem:[#allocation31_spill] sm:$0xff] }
 0x498   : > { %2613 = vmatpush.bf16.msrb.mxu3 %v2429_v60 }
 0x49b   : > { %2595 = vmatpush.bf16.msrb.mxu2 %v2420_v42 }
 0x49c   : > { %2614 = vmatpush.bf16.msrb.mxu3 %v2421_v32 }
 0x49e   : > { %4426 = vmatmul.msk.bf16.vlgmr.msrb.gmra.mxu2 %vm883_vm5, %v5972_v12 }
 0x49f   : > { %4428 = vmatmul.msk.bf16.vlgmr.msrb.gmra.mxu3 %vm883_vm5, %v5972_v12 }
 0x4ae   : > { %4427 = vmatmul.msk.bf16.gmra.mxu2 %vm883_vm5, %v5989_v28 }
 0x4af   : > { %4429 = vmatmul.msk.bf16.gmra.mxu3 %vm883_vm5, %v5989_v28 }
 0x4d7   : > { %v2483_v49 = vpop.f32.mrf.mxu0 }
 0x4d8   : > { %v2502_v13 = vpop.f32.mrf.mxu1  ;;  %v2484_v3 = vadd.f32 %v2483_v49, %v6092_v51 }
 0x4d9   : > { %v2503_v9 = vadd.f32 %v2502_v13, %v6092_v51 }
 0x4da   : > { %v2626_v60 = vmul.f32 %v2484_v3, %v6808_v41 }
 0x4db   : > { %v2627_v20 = vmul.f32 %v2503_v9, %v6809_v39 }
 0x4df   : > { %v2485_v61 = vpop.f32.mrf.mxu0 }
 0x4e0   : > { %v2504_v5 = vpop.f32.mrf.mxu1  ;;  %v2486_v52 = vadd.f32 %v2485_v61, %v6086_v10 }
 0x4e1   : > { %v2505_v28 = vadd.f32 %v2504_v5, %v6086_v10 }
 0x4e2   : > { %v2634_v25 = vmul.f32 %v2486_v52, %v6846_v37 }
 0x4e3   : > { %v2635_v22 = vmul.f32 %v2505_v28, %v5189_v57 }
 0x4e4   : > { %v2666_v49 = vmax.f32 %v2634_v25, 0.0 }
 0x4e5   : > { %v2667_v61 = vmax.f32 %v2635_v22, 0.0 }
 0x4e7   : > { %v2488_v55 = vpop.f32.mrf.mxu0 }
 0x4e8   : > { %v2507_v16 = vpop.f32.mrf.mxu1  ;;  %v2489_v54 = vadd.f32 %v2488_v55, %v6083_v50 }
 0x4e9   : > { %v2508_v12 = vadd.f32 %v2507_v16, %v6083_v50  ;;  %v2658_v16 = vmax.f32 %v2626_v60, 0.0 }
 0x4ea   : > { %v2642_v18 = vmul.f32 %v2489_v54, %v6805_v4 }
 0x4eb   : > { %v2643_v26 = vmul.f32 %v2508_v12, %v6806_v35  ;;  %v2659_v12 = vmax.f32 %v2627_v20, 0.0  ;;  %v2690_v52 = vpack.c.bf16 %v2666_v49, %v2658_v16 }
 0x4ec   : > { %v2674_v38 = vmax.f32 %v2642_v18, 0.0 }
 0x4ed   : > { %v2675_v42 = vmax.f32 %v2643_v26, 0.0  ;;  %v2691_v28 = vpack.c.bf16 %v2667_v61, %v2659_v12 }
 0x4ef   : > { %v2490_v34 = vpop.f32.mrf.mxu0 }
 0x4f0   : > { %v2491_v48 = vadd.f32 %v2490_v34, %v6089_v58  ;;  %v2509_v43 = vpop.f32.mrf.mxu1  ;;  %v6110_v34 = vld [vmem:[%s6682_s1 + $0x90] sm:$0xff] }
 0x4f1   : > { %v2510_v6 = vadd.f32 %v2509_v43, %v6089_v58 }
 0x4f2   : > { %v2650_v7 = vmul.f32 %v2491_v48, %v6810_v17 }
 0x4f3   : > { %v2651_v56 = vmul.f32 %v2510_v6, %v6847_v47 }
 0x4f4   : > { %v2682_v33 = vmax.f32 %v2650_v7, 0.0  ;;  %v6119_v7 = vld [vmem:[%s6682_s1 + $0x98] sm:$0xff] }
 0x4f5   : > { %v2683_v32 = vmax.f32 %v2651_v56, 0.0 }
 0x4f6   : > { %v2698_v13 = vpack.c.bf16 %v2682_v33, %v2674_v38 }
 0x4f7   : > { %v2699_v5 = vpack.c.bf16 %v2683_v32, %v2675_v42  ;;  %v2559_v55 = vpop.f32.mrf.mxu0 }
 0x4f8   : > { %v2578_v54 = vpop.f32.mrf.mxu1  ;;  %2756 = vmatpush.bf16.msra.mxu0 %v2698_v13  ;;  %v2560_v20 = vadd.f32 %v2559_v55, %v6092_v51 }
 0x4f9   : > { %2775 = vmatpush.bf16.msra.mxu1 %v2699_v5  ;;  %v2579_v13 = vadd.f32 %v2578_v54, %v6092_v51 }
 0x4fb   : > { %v2631_v54 = vmul.f32 %v2579_v13, %v5283_v29 }
 0x4fc   : > { %2757 = vmatpush.bf16.msra.mxu0 %v2690_v52 }
 0x4fd   : > { %2776 = vmatpush.bf16.msra.mxu1 %v2691_v28 }
 0x4ff   : > { %v2561_v3 = vpop.f32.mrf.mxu0  ;;  %4438 = vmatmul.msk.bf16.vlgmr.msra.gmra.mxu0 %vm883_vm5, %v6110_v34 }
 0x500   : > { %v2580_v18 = vpop.f32.mrf.mxu1  ;;  %4440 = vmatmul.msk.bf16.vlgmr.msra.gmra.mxu1 %vm883_vm5, %v6110_v34  ;;  %v2562_v60 = vadd.f32 %v2561_v3, %v6086_v10 }
 0x501   : > { %v2521_v48 = vpop.f32.mrf.mxu2  ;;  %v2581_v38 = vadd.f32 %v2580_v18, %v6086_v10  ;;  %v2630_v18 = vmul.f32 %v2560_v20, %v5279_v11 }
 0x502   : > { %v2540_v43 = vpop.f32.mrf.mxu3  ;;  %v2638_v12 = vmul.f32 %v2562_v60, %v5287_v46  ;;  %v2522_v13 = vadd.f32 %v2521_v48, %v6092_v51 }
 0x503   : > { %v2639_v28 = vmul.f32 %v2581_v38, %v6811_v62 }
 0x505   : > { %v2671_v60 = vmax.f32 %v2639_v28, 0.0  ;;  %v2541_v28 = vadd.f32 %v2540_v43, %v6092_v51 }
 0x507   : > { %v2564_v9 = vpop.f32.mrf.mxu0  ;;  %v2629_v43 = vmul.f32 %v2541_v28, %v6834_v1 }
 0x508   : > { %v2583_v26 = vpop.f32.mrf.mxu1  ;;  %v2565_v22 = vadd.f32 %v2564_v9, %v6083_v50 }
 0x509   : > { %v2523_v6 = vpop.f32.mrf.mxu2  ;;  %v2584_v56 = vadd.f32 %v2583_v26, %v6083_v50 }
 0x50a   : > { %v2542_v25 = vpop.f32.mrf.mxu3  ;;  %v2646_v42 = vmul.f32 %v2565_v22, %v5309_v8  ;;  %v2524_v38 = vadd.f32 %v2523_v6, %v6086_v10 }
 0x50b   : > { %v2647_v61 = vmul.f32 %v2584_v56, %v5313_v14  ;;  %v2543_v20 = vadd.f32 %v2542_v25, %v6086_v10  ;;  %v2628_v25 = vmul.f32 %v2522_v13, %v6833_v21 }
 0x50c   : > { %v2678_v9 = vmax.f32 %v2646_v42, 0.0 }
 0x50d   : > { %v2679_v22 = vmax.f32 %v2647_v61, 0.0  ;;  %v2637_v48 = vmul.f32 %v2543_v20, %v6831_v0 }
 0x50f   : > { %v2566_v33 = vpop.f32.mrf.mxu0  ;;  %4439 = vmatmul.msk.bf16.gmra.mxu0 %vm883_vm5, %v6119_v7 }
 0x510   : > { %v2567_v32 = vadd.f32 %v2566_v33, %v6089_v58  ;;  %v2585_v49 = vpop.f32.mrf.mxu1  ;;  %4441 = vmatmul.msk.bf16.gmra.mxu1 %vm883_vm5, %v6119_v7  ;;  %v2670_v33 = vmax.f32 %v2638_v12, 0.0 }
 0x511   : > { %v2586_v5 = vadd.f32 %v2585_v49, %v6089_v58  ;;  %v2526_v16 = vpop.f32.mrf.mxu2 }
 0x512   : > { %v2654_v52 = vmul.f32 %v2567_v32, %v5317_v2  ;;  %v2545_v55 = vpop.f32.mrf.mxu3  ;;  %v2527_v14 = vadd.f32 %v2526_v16, %v6083_v50  ;;  %v2662_v2 = vmax.f32 %v2630_v18, 0.0  ;;  %v2636_v18 = vmul.f32 %v2524_v38, %v6829_v40 }
 0x513   : > { %v2655_v3 = vmul.f32 %v2586_v5, %v6813_v53  ;;  %v2546_v32 = vadd.f32 %v2545_v55, %v6083_v50  ;;  %v2663_v5 = vmax.f32 %v2631_v54, 0.0 }
 0x514   : > { %v2686_v26 = vmax.f32 %v2654_v52, 0.0  ;;  %v2644_v61 = vmul.f32 %v2527_v14, %v6827_v45  ;;  %v2694_v52 = vpack.c.bf16 %v2670_v33, %v2662_v2  ;;  %v2669_v33 = vmax.f32 %v2637_v48, 0.0 }
 0x515   : > { %v2687_v56 = vmax.f32 %v2655_v3, 0.0  ;;  %v2645_v55 = vmul.f32 %v2546_v32, %v6828_v31  ;;  %v2695_v3 = vpack.c.bf16 %v2671_v60, %v2663_v5  ;;  %v2660_v32 = vmax.f32 %v2628_v25, 0.0 }
 0x516   : > { %v2702_v49 = vpack.c.bf16 %v2686_v26, %v2678_v9  ;;  %v2676_v2 = vmax.f32 %v2644_v61, 0.0  ;;  %v2661_v5 = vmax.f32 %v2629_v43, 0.0 }
 0x517   : > { %v2703_v46 = vpack.c.bf16 %v2687_v56, %v2679_v22  ;;  %v2677_v26 = vmax.f32 %v2645_v55, 0.0  ;;  %v2668_v22 = vmax.f32 %v2636_v18, 0.0 }
 0x518   : > { %2832 = vmatpush.bf16.msrb.mxu0 %v2702_v49 }
 0x519   : > { %2851 = vmatpush.bf16.msrb.mxu1 %v2703_v46  ;;  %v2528_v42 = vpop.f32.mrf.mxu2  ;;  %v2692_v20 = vpack.c.bf16 %v2668_v22, %v2660_v32 }
 0x51a   : > { %v2529_v12 = vadd.f32 %v2528_v42, %v6089_v58  ;;  %v2547_v16 = vpop.f32.mrf.mxu3  ;;  %v2693_v42 = vpack.c.bf16 %v2669_v33, %v2661_v5 }
 0x51b   : > { %v2548_v6 = vadd.f32 %v2547_v16, %v6089_v58 }
 0x51c   : > { %v2652_v46 = vmul.f32 %v2529_v12, %v6830_v44  ;;  %2833 = vmatpush.bf16.msrb.mxu0 %v2694_v52 }
 0x51d   : > { %v2653_v14 = vmul.f32 %v2548_v6, %v6832_v19  ;;  %2852 = vmatpush.bf16.msrb.mxu1 %v2695_v3 }
 0x51e   : > { %v2684_v9 = vmax.f32 %v2652_v46, 0.0 }
 0x51f   : > { %v2685_v54 = vmax.f32 %v2653_v14, 0.0  ;;  %4446 = vmatmul.msk.bf16.vlgmr.msrb.gmra.mxu0 %vm883_vm5, %v6110_v34 }
 0x520   : > { %v2700_v56 = vpack.c.bf16 %v2684_v9, %v2676_v2  ;;  %4448 = vmatmul.msk.bf16.vlgmr.msrb.gmra.mxu1 %vm883_vm5, %v6110_v34 }
 0x521   : > { %v2701_v49 = vpack.c.bf16 %v2685_v54, %v2677_v26  ;;  %v2597_v60 = vpop.f32.mrf.mxu2 }
 0x522   : > { %v2616_v38 = vpop.f32.mrf.mxu3  ;;  %2794 = vmatpush.bf16.msra.mxu2 %v2700_v56  ;;  %v2598_v18 = vadd.f32 %v2597_v60, %v6092_v51 }
 0x523   : > { %2813 = vmatpush.bf16.msra.mxu3 %v2701_v49 }
 0x524   : > { %v2632_v54 = vmul.f32 %v2598_v18, %v6844_v30 }
 0x526   : > { %2795 = vmatpush.bf16.msra.mxu2 %v2692_v20  ;;  %v2664_v5 = vmax.f32 %v2632_v54, 0.0 }
 0x527   : > { %2814 = vmatpush.bf16.msra.mxu3 %v2693_v42 }
 0x529   : > { %v2599_v13 = vpop.f32.mrf.mxu2  ;;  %4442 = vmatmul.msk.bf16.vlgmr.msra.gmra.mxu2 %vm883_vm5, %v6110_v34 }
 0x52a   : > { %v2618_v61 = vpop.f32.mrf.mxu3  ;;  %4444 = vmatmul.msk.bf16.vlgmr.msra.gmra.mxu3 %vm883_vm5, %v6110_v34  ;;  %v2600_v55 = vadd.f32 %v2599_v13, %v6086_v10 }
 0x52b   : > { %v2619_v6 = vadd.f32 %v2618_v61, %v6086_v10 }
 0x52c   : > { %v2640_v2 = vmul.f32 %v2600_v55, %v6840_v24 }
 0x52d   : > { %v2641_v43 = vmul.f32 %v2619_v6, %v6842_v27 }
 0x52e   : > { %v2672_v60 = vmax.f32 %v2640_v2, 0.0 }
 0x52f   : > { %4447 = vmatmul.msk.bf16.gmra.mxu0 %vm883_vm5, %v6119_v7 }
 0x530   : > { %4449 = vmatmul.msk.bf16.gmra.mxu1 %vm883_vm5, %v6119_v7  ;;  %v2696_v42 = vpack.c.bf16 %v2672_v60, %v2664_v5 }
 0x531   : > { %v2602_v12 = vpop.f32.mrf.mxu2 }
 0x532   : > { %v2621_v16 = vpop.f32.mrf.mxu3  ;;  %v2603_v52 = vadd.f32 %v2602_v12, %v6083_v50 }
 0x533   : > { %v2622_v28 = vadd.f32 %v2621_v16, %v6083_v50  ;;  %v2617_v50 = vadd.f32 %v2616_v38, %v6092_v51  ;;  %v2673_v38 = vmax.f32 %v2641_v43, 0.0 }
 0x534   : > { %v2648_v46 = vmul.f32 %v2603_v52, %v6838_v15 }
 0x535   : > { %v2649_v25 = vmul.f32 %v2622_v28, %v6839_v23  ;;  %v2633_v33 = vmul.f32 %v2617_v50, %v6845_v63  ;;  %v6197_v28 = vpop.permute.xlu2 %2726 }
 0x536   : > { %v2680_v22 = vmax.f32 %v2648_v46, 0.0  ;;  %v6203_v46 = vpop.permute.xlu1 %2716 }
 0x537   : > { %v2681_v49 = vmax.f32 %v2649_v25, 0.0  ;;  %v2665_v20 = vmax.f32 %v2633_v33, 0.0 }
 0x539   : > { %v2604_v3 = vpop.f32.mrf.mxu2  ;;  %4443 = vmatmul.msk.bf16.gmra.mxu2 %vm883_vm5, %v6119_v7  ;;  %v2697_v13 = vpack.c.bf16 %v2673_v38, %v2665_v20 }
 0x53a   : > { %v2605_v48 = vadd.f32 %v2604_v3, %v6089_v58  ;;  %v2623_v14 = vpop.f32.mrf.mxu3  ;;  %4445 = vmatmul.msk.bf16.gmra.mxu3 %vm883_vm5, %v6119_v7 }
 0x53b   : > { %v2624_v10 = vadd.f32 %v2623_v14, %v6089_v58  ;;  %v6206_v14 = vpop.permute.xlu0 %2731 }
 0x53c   : > { %v2656_v9 = vmul.f32 %v2605_v48, %v6841_v59 }
 0x53d   : > { %v2657_v26 = vmul.f32 %v2624_v10, %v6843_v36  ;;  %v6200_v18 = vpop.permute.xlu2 %2721 }
 0x53e   : > { %v2688_v56 = vmax.f32 %v2656_v9, 0.0 }
 0x53f   : > { %v2689_v51 = vmax.f32 %v2657_v26, 0.0 }
 0x540   : > { %v2704_v32 = vpack.c.bf16 %v2688_v56, %v2680_v22 }
 0x541   : > { %v2705_v58 = vpack.c.bf16 %v2689_v51, %v2681_v49 }
 0x542   : > { %2870 = vmatpush.bf16.msrb.mxu2 %v2704_v32 }
 0x543   : > { %2889 = vmatpush.bf16.msrb.mxu3 %v2705_v58 }
 0x546   : > { %2871 = vmatpush.bf16.msrb.mxu2 %v2696_v42 }
 0x547   : > { %2890 = vmatpush.bf16.msrb.mxu3 %v2697_v13 }
 0x549   : > { %4450 = vmatmul.msk.bf16.vlgmr.msrb.gmra.mxu2 %vm883_vm5, %v6110_v34 }
 0x54a   : > { %4452 = vmatmul.msk.bf16.vlgmr.msrb.gmra.mxu3 %vm883_vm5, %v6110_v34 }
 0x559   : > { %4451 = vmatmul.msk.bf16.gmra.mxu2 %vm883_vm5, %v6119_v7 }
 0x55a   : > { %4453 = vmatmul.msk.bf16.gmra.mxu3 %vm883_vm5, %v6119_v7 }
 0x57c   : > { %v2759_v61 = vpop.f32.mrf.mxu0 }
 0x57d   : > { %v2778_v12 = vpop.f32.mrf.mxu1  ;;  %v2760_v25 = vadd.f32 %v2759_v61, %v6203_v46 }
 0x57e   : > { %v2779_v43 = vadd.f32 %v2778_v12, %v6203_v46 }
 0x57f   : > { %v2902_v51 = vmul.f32 %v2760_v25, %v6808_v41  ;;  %v6224_v41 = vld [vmem:[%s6682_s1 + $0xa0] sm:$0xff] }
 0x580   : > { %v2903_v32 = vmul.f32 %v2779_v43, %v6809_v39 }
 0x584   : > { %v2761_v16 = vpop.f32.mrf.mxu0 }
 0x585   : > { %v2780_v52 = vpop.f32.mrf.mxu1  ;;  %v2762_v48 = vadd.f32 %v2761_v16, %v6200_v18 }
 0x586   : > { %v2781_v7 = vadd.f32 %v2780_v52, %v6200_v18 }
 0x587   : > { %v2910_v22 = vmul.f32 %v2762_v48, %v6846_v37  ;;  %v2934_v37 = vmax.f32 %v2902_v51, 0.0  ;;  %v6849_v51 = vld [vmem:[#allocation38_spill] sm:$0xff] }
 0x588   : > { %v2911_v33 = vmul.f32 %v2781_v7, %v5189_v57 }
 0x589   : > { %v2942_v5 = vmax.f32 %v2910_v22, 0.0 }
 0x58a   : > { %v2943_v20 = vmax.f32 %v2911_v33, 0.0 }
 0x58b   : > { %v2966_v57 = vpack.c.bf16 %v2942_v5, %v2934_v37 }
 0x58c   : > { %v2764_v55 = vpop.f32.mrf.mxu0 }
 0x58d   : > { %v2783_v6 = vpop.f32.mrf.mxu1  ;;  %v2765_v3 = vadd.f32 %v2764_v55, %v6197_v28 }
 0x58e   : > { %v2784_v34 = vadd.f32 %v2783_v6, %v6197_v28 }
 0x58f   : > { %v2918_v10 = vmul.f32 %v2765_v3, %v6805_v4  ;;  %v6233_v3 = vld [vmem:[%s6682_s1 + $0xa8] sm:$0xff] }
 0x590   : > { %v2919_v26 = vmul.f32 %v2784_v34, %v6806_v35 }
 0x591   : > { %v2950_v4 = vmax.f32 %v2918_v10, 0.0 }
 0x592   : > { %v2951_v38 = vmax.f32 %v2919_v26, 0.0 }
 0x594   : > { %v2766_v50 = vpop.f32.mrf.mxu0 }
 0x595   : > { %v2767_v2 = vadd.f32 %v2766_v50, %v6206_v14  ;;  %v2785_v9 = vpop.f32.mrf.mxu1 }
 0x596   : > { %v2786_v54 = vadd.f32 %v2785_v9, %v6206_v14 }
 0x597   : > { %v2926_v56 = vmul.f32 %v2767_v2, %v6810_v17  ;;  %v2935_v17 = vmax.f32 %v2903_v32, 0.0 }
 0x598   : > { %v2927_v49 = vmul.f32 %v2786_v54, %v6847_v47 }
 0x599   : > { %v2958_v60 = vmax.f32 %v2926_v56, 0.0  ;;  %v2967_v47 = vpack.c.bf16 %v2943_v20, %v2935_v17  ;;  %v6848_v56 = vld [vmem:[#allocation42_spill] sm:$0xff]  ;;  %v2986_v20 = vld [vmem:[%s6682_s1 + $0xb0] sm:$0x1] }
 0x59a   : > { %v2959_v58 = vmax.f32 %v2927_v49, 0.0 }
 0x59b   : > { %v2974_v35 = vpack.c.bf16 %v2958_v60, %v2950_v4  ;;  %v6850_v60 = vld [vmem:[#allocation43_spill] sm:$0xff] }
 0x59c   : > { %v2975_v42 = vpack.c.bf16 %v2959_v58, %v2951_v38  ;;  %v2835_v13 = vpop.f32.mrf.mxu0 }
 0x59d   : > { %v2854_v61 = vpop.f32.mrf.mxu1  ;;  %3045 = vmatpush.bf16.msra.mxu0 %v2974_v35  ;;  %v2836_v2 = vadd.f32 %v2835_v13, %v6203_v46 }
 0x59e   : > { %3068 = vmatpush.bf16.msra.mxu1 %v2975_v42  ;;  %v2855_v22 = vadd.f32 %v2854_v61, %v6203_v46 }
 0x59f   : > { %v2906_v58 = vmul.f32 %v2836_v2, %v5279_v11 }
 0x5a0   : > { %v2907_v42 = vmul.f32 %v2855_v22, %v5283_v29 }
 0x5a1   : > { %3046 = vmatpush.bf16.msra.mxu0 %v2966_v57 }
 0x5a2   : > { %3069 = vmatpush.bf16.msra.mxu1 %v2967_v47  ;;  %v2939_v11 = vmax.f32 %v2907_v42, 0.0 }
 0x5a4   : > { %v2837_v39 = vpop.f32.mrf.mxu0  ;;  %4462 = vmatmul.msk.bf16.vlgmr.msra.gmra.mxu0 %vm883_vm5, %v6224_v41 }
 0x5a5   : > { %v2856_v12 = vpop.f32.mrf.mxu1  ;;  %4465 = vmatmul.msk.bf16.vlgmr.msra.gmra.mxu1 %vm883_vm5, %v6224_v41  ;;  %v2838_v7 = vadd.f32 %v2837_v39, %v6200_v18 }
 0x5a6   : > { %v2857_v50 = vadd.f32 %v2856_v12, %v6200_v18  ;;  %v2938_v12 = vmax.f32 %v2906_v58, 0.0 }
 0x5a7   : > { %v2914_v4 = vmul.f32 %v2838_v7, %v6849_v51 }
 0x5a8   : > { %v2915_v38 = vmul.f32 %v2857_v50, %v6811_v62  ;;  %v3026_v62 = vunpack.c.l.b16 %v2986_v20 }
 0x5a9   : > { %v2946_v61 = vmax.f32 %v2914_v4, 0.0 }
 0x5aa   : > { %v2947_v57 = vmax.f32 %v2915_v38, 0.0 }
 0x5ac   : > { %v2797_v16 = vpop.f32.mrf.mxu2  ;;  %v2840_v52 = vpop.f32.mrf.mxu0 }
 0x5ad   : > { %v2816_v55 = vpop.f32.mrf.mxu3  ;;  %v2859_v6 = vpop.f32.mrf.mxu1  ;;  %v2841_v34 = vadd.f32 %v2840_v52, %v6197_v28  ;;  %v2970_v52 = vpack.c.bf16 %v2946_v61, %v2938_v12  ;;  %v2798_v2 = vadd.f32 %v2797_v16, %v6203_v46 }
 0x5ae   : > { %v2860_v48 = vadd.f32 %v2859_v6, %v6197_v28  ;;  %v2971_v6 = vpack.c.bf16 %v2947_v57, %v2939_v11  ;;  %v2817_v22 = vadd.f32 %v2816_v55, %v6203_v46 }
 0x5af   : > { %v2922_v9 = vmul.f32 %v2841_v34, %v5309_v8  ;;  %v6258_v34 = vpack.c.b16 %v3026_v62, %v3026_v62 }
 0x5b0   : > { %v2923_v33 = vmul.f32 %v2860_v48, %v6848_v56 }
 0x5b1   : > { %v2954_v5 = vmax.f32 %v2922_v9, 0.0 }
 0x5b2   : > { %v2955_v13 = vmax.f32 %v2923_v33, 0.0 }
 0x5b4   : > { %v2799_v25 = vpop.f32.mrf.mxu2  ;;  %v2842_v10 = vpop.f32.mrf.mxu0  ;;  %4463 = vmatmul.msk.bf16.gmra.mxu0 %vm883_vm5, %v6233_v3 }
 0x5b5   : > { %v2818_v43 = vpop.f32.mrf.mxu3  ;;  %v2843_v26 = vadd.f32 %v2842_v10, %v6206_v14  ;;  %v2861_v54 = vpop.f32.mrf.mxu1  ;;  %4466 = vmatmul.msk.bf16.gmra.mxu1 %vm883_vm5, %v6233_v3  ;;  %v2800_v7 = vadd.f32 %v2799_v25, %v6200_v18 }
 0x5b6   : > { %v2862_v49 = vadd.f32 %v2861_v54, %v6206_v14  ;;  %v2819_v50 = vadd.f32 %v2818_v43, %v6200_v18 }
 0x5b7   : > { %v2930_v32 = vmul.f32 %v2843_v26, %v6850_v60  ;;  %v2912_v56 = vmul.f32 %v2800_v7, %v6829_v40  ;;  %v2905_v60 = vmul.f32 %v2817_v22, %v6834_v1 }
 0x5b8   : > { %v2931_v8 = vmul.f32 %v2862_v49, %v6813_v53  ;;  %v2913_v16 = vmul.f32 %v2819_v50, %v6831_v0  ;;  %v2904_v49 = vmul.f32 %v2798_v2, %v6833_v21 }
 0x5b9   : > { %v2962_v35 = vmax.f32 %v2930_v32, 0.0  ;;  %v2944_v38 = vmax.f32 %v2912_v56, 0.0 }
 0x5ba   : > { %v2963_v37 = vmax.f32 %v2931_v8, 0.0  ;;  %v2945_v8 = vmax.f32 %v2913_v16, 0.0  ;;  %v2936_v40 = vmax.f32 %v2904_v49, 0.0 }
 0x5bb   : > { %v2978_v17 = vpack.c.bf16 %v2962_v35, %v2954_v5 }
 0x5bc   : > { %v2979_v47 = vpack.c.bf16 %v2963_v37, %v2955_v13  ;;  %v2802_v39 = vpop.f32.mrf.mxu2  ;;  %v2968_v0 = vpack.c.bf16 %v2944_v38, %v2936_v40  ;;  %v6331_v38 = vld [vmem:[%s6682_s1 + $0xc0] sm:$0xff] }
 0x5bd   : > { %v2821_v53 = vpop.f32.mrf.mxu3  ;;  %3137 = vmatpush.bf16.msrb.mxu0 %v2978_v17  ;;  %v2803_v48 = vadd.f32 %v2802_v39, %v6197_v28 }
 0x5be   : > { %3160 = vmatpush.bf16.msrb.mxu1 %v2979_v47  ;;  %v2822_v29 = vadd.f32 %v2821_v53, %v6197_v28 }
 0x5bf   : > { %v2920_v9 = vmul.f32 %v2803_v48, %v6827_v45 }
 0x5c0   : > { %v2921_v25 = vmul.f32 %v2822_v29, %v6828_v31 }
 0x5c1   : > { %3138 = vmatpush.bf16.msrb.mxu0 %v2970_v52  ;;  %v2952_v51 = vmax.f32 %v2920_v9, 0.0 }
 0x5c2   : > { %3161 = vmatpush.bf16.msrb.mxu1 %v2971_v6  ;;  %v2953_v32 = vmax.f32 %v2921_v25, 0.0 }
 0x5c4   : > { %v2804_v10 = vpop.f32.mrf.mxu2  ;;  %4464 = vmatmul.msk.bf16.gmra.mxu0 %vm883_vm5, %v6258_v34 }
 0x5c5   : > { %v2805_v26 = vadd.f32 %v2804_v10, %v6206_v14  ;;  %v2823_v54 = vpop.f32.mrf.mxu3  ;;  %4467 = vmatmul.msk.bf16.gmra.mxu1 %vm883_vm5, %v6258_v34 }
 0x5c6   : > { %v2824_v43 = vadd.f32 %v2823_v54, %v6206_v14 }
 0x5c7   : > { %v2928_v33 = vmul.f32 %v2805_v26, %v6830_v44  ;;  %v2937_v44 = vmax.f32 %v2905_v60, 0.0  ;;  %v6853_v60 = vld [vmem:[#allocation14_spill] sm:$0xff] }
 0x5c8   : > { %v2929_v45 = vmul.f32 %v2824_v43, %v6832_v19 }
 0x5c9   : > { %v2960_v4 = vmax.f32 %v2928_v33, 0.0  ;;  %v2969_v19 = vpack.c.bf16 %v2945_v8, %v2937_v44 }
 0x5ca   : > { %v2961_v55 = vmax.f32 %v2929_v45, 0.0 }
 0x5cb   : > { %v2976_v31 = vpack.c.bf16 %v2960_v4, %v2952_v51 }
 0x5cc   : > { %v2977_v58 = vpack.c.bf16 %v2961_v55, %v2953_v32  ;;  %v2873_v5 = vpop.f32.mrf.mxu2 }
 0x5cd   : > { %v2892_v35 = vpop.f32.mrf.mxu3  ;;  %3091 = vmatpush.bf16.msra.mxu2 %v2976_v31  ;;  %v2874_v47 = vadd.f32 %v2873_v5, %v6203_v46  ;;  %v6854_v31 = vld [vmem:[#allocation12_spill] sm:$0xff] }
 0x5ce   : > { %3114 = vmatpush.bf16.msra.mxu3 %v2977_v58  ;;  %v3404_v8 = vpack.c.b16 %v6854_v31, %v6854_v31  ;;  %v6855_v58 = vld [vmem:[#allocation13_spill] sm:$0xff] }
 0x5cf   : > { %v2908_v48 = vmul.f32 %v2874_v47, %v6844_v30  ;;  %v3405_v5 = vpack.c.b16 %v6855_v58, %v6855_v58 }
 0x5d0   : > { %v3441_v40 = vshrl.u32 %v3404_v8, 16 }
 0x5d1   : > { %3092 = vmatpush.bf16.msra.mxu2 %v2968_v0  ;;  %v2940_v26 = vmax.f32 %v2908_v48, 0.0  ;;  %v3449_v44 = vshrl.u32 %v3405_v5, 16  ;;  %v3452_v0 = vshll.u32 %v3405_v5, 16 }
 0x5d2   : > { %3115 = vmatpush.bf16.msra.mxu3 %v2969_v19  ;;  %v3443_v19 = vrot.slane %v3441_v40, 1 }
 0x5d4   : > { %v2875_v21 = vpop.f32.mrf.mxu2  ;;  %4468 = vmatmul.msk.bf16.vlgmr.msra.gmra.mxu2 %vm883_vm5, %v6224_v41  ;;  %4474 = vmatmul.msk.bf16.vlgmr.msrb.gmra.mxu0 %vm883_vm5, %v6224_v41 }
 0x5d5   : > { %v2894_v1 = vpop.f32.mrf.mxu3  ;;  %4471 = vmatmul.msk.bf16.vlgmr.msra.gmra.mxu3 %vm883_vm5, %v6224_v41  ;;  %4477 = vmatmul.msk.bf16.vlgmr.msrb.gmra.mxu1 %vm883_vm5, %v6224_v41  ;;  %v2876_v61 = vadd.f32 %v2875_v21, %v6200_v18 }
 0x5d6   : > { %v2895_v17 = vadd.f32 %v2894_v1, %v6200_v18  ;;  %v3451_v1 = vrot.slane %v3449_v44, 1 }
 0x5d7   : > { %v2916_v11 = vmul.f32 %v2876_v61, %v6840_v24 }
 0x5d9   : > { %v2948_v2 = vmax.f32 %v2916_v11, 0.0 }
 0x5dc   : > { %v2878_v20 = vpop.f32.mrf.mxu2 }
 0x5dd   : > { %v2897_v42 = vpop.f32.mrf.mxu3  ;;  %v2879_v13 = vadd.f32 %v2878_v20, %v6197_v28 }
 0x5de   : > { %v2898_v37 = vadd.f32 %v2897_v42, %v6197_v28  ;;  %v2893_v28 = vadd.f32 %v2892_v35, %v6203_v46  ;;  %v3444_v35 = vshll.u32 %v3404_v8, 16 }
 0x5df   : > { %v2924_v39 = vmul.f32 %v2879_v13, %v6838_v15  ;;  %v2917_v15 = vmul.f32 %v2895_v17, %v6842_v27 }
 0x5e0   : > { %v2925_v18 = vmul.f32 %v2898_v37, %v6839_v23  ;;  %v2909_v50 = vmul.f32 %v2893_v28, %v6845_v63  ;;  %v6852_v63 = vld [vmem:[#allocation7_spill] sm:$0xff]  ;;  %v3446_v21 = vrot.slane %v3444_v35, 2  ;;  %v6361_v28 = vpop.permute.xlu0 %3004 }
 0x5e1   : > { %v2956_v29 = vmax.f32 %v2924_v39, 0.0  ;;  %v2949_v9 = vmax.f32 %v2917_v15, 0.0  ;;  %v3401_v54 = vpack.c.b16 %v6852_v63, %v6852_v63  ;;  %v6856_v39 = vld [vmem:[#allocation8_spill] sm:$0xff] }
 0x5e2   : > { %v2957_v10 = vmax.f32 %v2925_v18, 0.0  ;;  %v2941_v24 = vmax.f32 %v2909_v50, 0.0  ;;  %v3447_v20 = vor.u32 %v3446_v21, %v3443_v19 }
 0x5e3   : > { %v3417_v43 = vshrl.u32 %v3401_v54, 16  ;;  %v3420_v56 = vshll.u32 %v3401_v54, 16 }
 0x5e4   : > { %v2880_v57 = vpop.f32.mrf.mxu2  ;;  %4469 = vmatmul.msk.bf16.gmra.mxu2 %vm883_vm5, %v6233_v3  ;;  %4475 = vmatmul.msk.bf16.gmra.mxu0 %vm883_vm5, %v6233_v3  ;;  %v2973_v27 = vpack.c.bf16 %v2949_v9, %v2941_v24  ;;  %v3488_v13 = vand.u32 %v3447_v20, %v6853_v60 }
 0x5e5   : > { %v2881_v62 = vadd.f32 %v2880_v57, %v6206_v14  ;;  %v2899_v12 = vpop.f32.mrf.mxu3  ;;  %4472 = vmatmul.msk.bf16.gmra.mxu3 %vm883_vm5, %v6233_v3  ;;  %4478 = vmatmul.msk.bf16.gmra.mxu1 %vm883_vm5, %v6233_v3  ;;  %v3419_v45 = vrot.slane %v3417_v43, 1  ;;  %v3422_v49 = vrot.slane %v3420_v56, 2  ;;  %v6859_v43 = vld [vmem:[#allocation11_spill] sm:$0xff] }
 0x5e6   : > { %v2900_v53 = vadd.f32 %v2899_v12, %v6206_v14  ;;  %v3407_v56 = vpack.c.b16 %v6859_v43, %v6859_v43 }
 0x5e7   : > { %v2932_v52 = vmul.f32 %v2881_v62, %v6841_v59  ;;  %v2972_v59 = vpack.c.bf16 %v2948_v2, %v2940_v26  ;;  %v3423_v4 = vor.u32 %v3422_v49, %v3419_v45  ;;  %v3402_v62 = vpack.c.b16 %v6856_v39, %v6856_v39 }
 0x5e8   : > { %v2933_v6 = vmul.f32 %v2900_v53, %v6843_v36  ;;  %v6851_v36 = vld [vmem:[#allocation6_spill] sm:$0xff]  ;;  %v3465_v58 = vshrl.u32 %v3407_v56, 16  ;;  %v3468_v5 = vshll.u32 %v3407_v56, 16 }
 0x5e9   : > { %v2964_v7 = vmax.f32 %v2932_v52, 0.0  ;;  %v3400_v30 = vpack.c.b16 %v6851_v36, %v6851_v36  ;;  %v3479_v55 = vand.u32 %v3423_v4, %v6853_v60  ;;  %v3425_v53 = vshrl.u32 %v3402_v62, 16 }
 0x5ea   : > { %v2965_v46 = vmax.f32 %v2933_v6, 0.0  ;;  %v3428_v11 = vshll.u32 %v3402_v62, 16  ;;  %v3470_v19 = vrot.slane %v3468_v5, 2 }
 0x5eb   : > { %v2980_v23 = vpack.c.bf16 %v2964_v7, %v2956_v29  ;;  %v3409_v22 = vshrl.u32 %v3400_v30, 16  ;;  %v3412_v25 = vshll.u32 %v3400_v30, 16  ;;  %3520 = vmatpush.bf16.msra.mxu1 %v3479_v55  ;;  %v3427_v48 = vrot.slane %v3425_v53, 1  ;;  %v6392_v55 = vld [vmem:[%s6682_s1 + $0xb8] sm:$0xff] }
 0x5ec   : > { %v2981_v14 = vpack.c.bf16 %v2965_v46, %v2957_v10  ;;  %v3430_v29 = vrot.slane %v3428_v11, 2 }
 0x5ed   : > { %3183 = vmatpush.bf16.msrb.mxu2 %v2980_v23  ;;  %v3411_v33 = vrot.slane %v3409_v22, 1  ;;  %v3414_v16 = vrot.slane %v3412_v25, 2  ;;  %v6365_v23 = vpop.permute.xlu1 %3009  ;;  %v6858_v22 = vld [vmem:[#allocation10_spill] sm:$0xff] }
 0x5ee   : > { %3206 = vmatpush.bf16.msrb.mxu3 %v2981_v14  ;;  %v3431_v50 = vor.u32 %v3430_v29, %v3427_v48  ;;  %v3406_v25 = vpack.c.b16 %v6858_v22, %v6858_v22 }
 0x5ef   : > { %v3415_v51 = vor.u32 %v3414_v16, %v3411_v33  ;;  %v6381_v33 = vpop.permute.xlu2 %2994 }
 0x5f0   : > { %v3482_v46 = vand.u32 %v3431_v50, %v6853_v60  ;;  %v3457_v31 = vshrl.u32 %v3406_v25, 16  ;;  %v3460_v8 = vshll.u32 %v3406_v25, 16 }
 0x5f1   : > { %3184 = vmatpush.bf16.msrb.mxu2 %v2972_v59  ;;  %v3476_v32 = vand.u32 %v3415_v51, %v6853_v60  ;;  %v6369_v59 = vpop.permute.xlu0 %2999 }
 0x5f2   : > { %3207 = vmatpush.bf16.msrb.mxu3 %v2973_v27  ;;  %v3459_v35 = vrot.slane %v3457_v31, 1  ;;  %v3462_v44 = vrot.slane %v3460_v8, 2 }
 0x5f3   : > { %3506 = vmatpush.bf16.msra.mxu0 %v3476_v32 }
 0x5f4   : > { %4470 = vmatmul.msk.bf16.gmra.mxu2 %vm883_vm5, %v6258_v34  ;;  %4476 = vmatmul.msk.bf16.gmra.mxu0 %vm883_vm5, %v6258_v34  ;;  %v3463_v21 = vor.u32 %v3462_v44, %v3459_v35 }
 0x5f5   : > { %4473 = vmatmul.msk.bf16.gmra.mxu3 %vm883_vm5, %v6258_v34  ;;  %4479 = vmatmul.msk.bf16.gmra.mxu1 %vm883_vm5, %v6258_v34 }
 0x5f6   : > { %3534 = vmatpush.bf16.msra.mxu2 %v3482_v46 }
 0x5f7   : > { %3562 = vmatpush.bf16.msrb.mxu0 %v3488_v13 }
 0x604   : > { %4480 = vmatmul.msk.bf16.vlgmr.msrb.gmra.mxu2 %vm883_vm5, %v6224_v41  ;;  %4490 = vmatmul.msk.bf16.vlgmr.msra.gmra.mxu0 %vm578_vm4, %v6331_v38 }
 0x605   : > { %4483 = vmatmul.msk.bf16.vlgmr.msrb.gmra.mxu3 %vm883_vm5, %v6224_v41  ;;  %4491 = vmatmul.msk.bf16.vlgmr.msra.gmra.mxu1 %vm578_vm4, %v6331_v38  ;;  %v3454_v41 = vrot.slane %v3452_v0, 2  ;;  %v3467_v0 = vrot.slane %v3465_v58, 1 }
 0x607   : > { %v3455_v42 = vor.u32 %v3454_v41, %v3451_v1  ;;  %v3471_v1 = vor.u32 %v3470_v19, %v3467_v0  ;;  %v3494_v41 = vand.u32 %v3463_v21, %v6853_v60 }
 0x609   : > { %v3491_v37 = vand.u32 %v3455_v42, %v6853_v60  ;;  %v3497_v20 = vand.u32 %v3471_v1, %v6853_v60  ;;  %3590 = vmatpush.bf16.msrb.mxu2 %v3494_v41 }
 0x60b   : > { %3576 = vmatpush.bf16.msrb.mxu1 %v3491_v37 }
 0x614   : > { %4481 = vmatmul.msk.bf16.gmra.mxu2 %vm883_vm5, %v6233_v3  ;;  %4494 = vmatmul.msk.bf16.vlgmr.msrb.gmra.mxu0 %vm578_vm4, %v6331_v38 }
 0x615   : > { %4484 = vmatmul.msk.bf16.gmra.mxu3 %vm883_vm5, %v6233_v3  ;;  %4495 = vmatmul.msk.bf16.vlgmr.msrb.gmra.mxu1 %vm578_vm4, %v6331_v38  ;;  %v6857_v3 = vld [vmem:[#allocation9_spill] sm:$0xff] }
 0x616   : > { %v3403_v12 = vpack.c.b16 %v6857_v3, %v6857_v3 }
 0x618   : > { %v3433_v52 = vshrl.u32 %v3403_v12, 16  ;;  %v3436_v15 = vshll.u32 %v3403_v12, 16 }
 0x61a   : > { %v3435_v7 = vrot.slane %v3433_v52, 1 }
 0x621   : > { %v3048_v61 = vpop.f32.mrf.mxu0 }
 0x622   : > { %v3071_v17 = vpop.f32.mrf.mxu1  ;;  %v3049_v45 = vadd.f32 %v3048_v61, %v6381_v33 }
 0x623   : > { %v3072_v49 = vadd.f32 %v3071_v17, %v6381_v33 }
 0x624   : > { %4482 = vmatmul.msk.bf16.gmra.mxu2 %vm883_vm5, %v6258_v34 }
 0x625   : > { %4485 = vmatmul.msk.bf16.gmra.mxu3 %vm883_vm5, %v6258_v34  ;;  %v3438_v34 = vrot.slane %v3436_v15, 2 }
 0x627   : > { %v3439_v10 = vor.u32 %v3438_v34, %v3435_v7 }
 0x629   : > { %v3050_v57 = vpop.f32.mrf.mxu0  ;;  %v3485_v2 = vand.u32 %v3439_v10, %v6853_v60 }
 0x62a   : > { %v3073_v47 = vpop.f32.mrf.mxu1  ;;  %v3051_v30 = vadd.f32 %v3050_v57, %v6369_v59 }
 0x62b   : > { %3548 = vmatpush.bf16.msra.mxu3 %v3485_v2  ;;  %v3074_v63 = vadd.f32 %v3073_v47, %v6369_v59 }
 0x62c   : > { %v3375_v51 = vpack.c.bf16 %v3051_v30, %v3049_v45 }
 0x62d   : > { %v3376_v4 = vpack.c.bf16 %v3074_v63, %v3072_v49 }
 0x62f   : > { %3604 = vmatpush.bf16.msrb.mxu3 %v3497_v20 }
 0x631   : > { %v3053_v18 = vpop.f32.mrf.mxu0 }
 0x632   : > { %v3076_v6 = vpop.f32.mrf.mxu1  ;;  %v3054_v14 = vadd.f32 %v3053_v18, %v6361_v28 }
 0x633   : > { %v3077_v27 = vadd.f32 %v3076_v6, %v6361_v28 }
 0x634   : > { %4492 = vmatmul.msk.bf16.vlgmr.msra.gmra.mxu2 %vm578_vm4, %v6331_v38 }
 0x635   : > { %4493 = vmatmul.msk.bf16.vlgmr.msra.gmra.mxu3 %vm578_vm4, %v6331_v38 }
 0x639   : > { %v3055_v9 = vpop.f32.mrf.mxu0 }
 0x63a   : > { %v3056_v26 = vadd.f32 %v3055_v9, %v6365_v23  ;;  %v3078_v24 = vpop.f32.mrf.mxu1 }
 0x63b   : > { %v3079_v36 = vadd.f32 %v3078_v24, %v6365_v23 }
 0x63c   : > { %v3383_v54 = vpack.c.bf16 %v3056_v26, %v3054_v14 }
 0x63d   : > { %v3384_v16 = vpack.c.bf16 %v3079_v36, %v3077_v27 }
 0x63e   : > { %3625 = vmatpush.bf16.msra.mxu0 %v3383_v54 }
 0x63f   : > { %3639 = vmatpush.bf16.msra.mxu1 %v3384_v16 }
 0x641   : > { %v6387_v32 = vpop.f32.mrf.mxu0 }
 0x642   : > { %v6394_v40 = vpop.f32.mrf.mxu1  ;;  %3626 = vmatpush.bf16.msra.mxu0 %v3375_v51 }
 0x643   : > { %3640 = vmatpush.bf16.msra.mxu1 %v3376_v4 }
 0x644   : > { %4496 = vmatmul.msk.bf16.vlgmr.msrb.gmra.mxu2 %vm578_vm4, %v6331_v38 }
 0x645   : > { %4502 = vmatmul.msk.bf16.vlgmr.msra.gmra.mxu0 %vm883_vm5, %v6392_v55  ;;  %4497 = vmatmul.msk.bf16.vlgmr.msrb.gmra.mxu3 %vm578_vm4, %v6331_v38 }
 0x646   : > { %4503 = vmatmul.msk.bf16.vlgmr.msra.gmra.mxu1 %vm883_vm5, %v6392_v55 }
 0x649   : > { %v3060_v42 = vpop.f32.mrf.mxu0 }
 0x64a   : > { %v3083_v13 = vpop.f32.mrf.mxu1 }
 0x651   : > { %v3140_v37 = vpop.f32.mrf.mxu0 }
 0x652   : > { %v3163_v61 = vpop.f32.mrf.mxu1  ;;  %v3141_v10 = vadd.f32 %v3140_v37, %v6381_v33 }
 0x653   : > { %v3164_v46 = vadd.f32 %v3163_v61, %v6381_v33 }
 0x657   : > { %v3094_v17 = vpop.f32.mrf.mxu2 }
 0x658   : > { %v3117_v57 = vpop.f32.mrf.mxu3  ;;  %v3095_v16 = vadd.f32 %v3094_v17, %v6381_v33 }
 0x659   : > { %v3142_v47 = vpop.f32.mrf.mxu0  ;;  %v3118_v45 = vadd.f32 %v3117_v57, %v6381_v33 }
 0x65a   : > { %v3165_v39 = vpop.f32.mrf.mxu1  ;;  %v3143_v29 = vadd.f32 %v3142_v47, %v6369_v59 }
 0x65b   : > { %v3166_v34 = vadd.f32 %v3165_v39, %v6369_v59 }
 0x65c   : > { %v3379_v9 = vpack.c.bf16 %v3143_v29, %v3141_v10 }
 0x65d   : > { %v3380_v27 = vpack.c.bf16 %v3166_v34, %v3164_v46  ;;  %v6454_v46 = vpop.permute.xlu1 %3735 }
 0x65f   : > { %v3096_v62 = vpop.f32.mrf.mxu2 }
 0x660   : > { %v3119_v3 = vpop.f32.mrf.mxu3  ;;  %v3097_v54 = vadd.f32 %v3096_v62, %v6369_v59 }
 0x661   : > { %v3145_v12 = vpop.f32.mrf.mxu0  ;;  %v3120_v43 = vadd.f32 %v3119_v3, %v6369_v59 }
 0x662   : > { %v3168_v60 = vpop.f32.mrf.mxu1  ;;  %v3146_v52 = vadd.f32 %v3145_v12, %v6361_v28  ;;  %v3377_v49 = vpack.c.bf16 %v3097_v54, %v3095_v16 }
 0x663   : > { %v3169_v38 = vadd.f32 %v3168_v60, %v6361_v28  ;;  %v3378_v51 = vpack.c.bf16 %v3120_v43, %v3118_v45 }
 0x667   : > { %v3099_v18 = vpop.f32.mrf.mxu2 }
 0x668   : > { %v3122_v53 = vpop.f32.mrf.mxu3  ;;  %v3100_v14 = vadd.f32 %v3099_v18, %v6361_v28 }
 0x669   : > { %v3147_v11 = vpop.f32.mrf.mxu0  ;;  %v3123_v36 = vadd.f32 %v3122_v53, %v6361_v28 }
 0x66a   : > { %v3148_v15 = vadd.f32 %v3147_v11, %v6365_v23  ;;  %v3170_v6 = vpop.f32.mrf.mxu1 }
 0x66b   : > { %v3171_v48 = vadd.f32 %v3170_v6, %v6365_v23 }
 0x66c   : > { %v3387_v7 = vpack.c.bf16 %v3148_v15, %v3146_v52 }
 0x66d   : > { %v3388_v50 = vpack.c.bf16 %v3171_v48, %v3169_v38 }
 0x66e   : > { %3681 = vmatpush.bf16.msrb.mxu0 %v3387_v7 }
 0x66f   : > { %3695 = vmatpush.bf16.msrb.mxu1 %v3388_v50  ;;  %v3101_v2 = vpop.f32.mrf.mxu2 }
 0x670   : > { %v3102_v26 = vadd.f32 %v3101_v2, %v6365_v23  ;;  %v3124_v24 = vpop.f32.mrf.mxu3 }
 0x671   : > { %v3125_v30 = vadd.f32 %v3124_v24, %v6365_v23  ;;  %v6418_v63 = vpop.f32.mrf.mxu0  ;;  %v6457_v24 = vpop.permute.xlu2 %3740 }
 0x672   : > { %v3385_v22 = vpack.c.bf16 %v3102_v26, %v3100_v14  ;;  %v6421_v25 = vpop.f32.mrf.mxu1  ;;  %3682 = vmatpush.bf16.msrb.mxu0 %v3379_v9 }
 0x673   : > { %v3386_v56 = vpack.c.bf16 %v3125_v30, %v3123_v36  ;;  %3696 = vmatpush.bf16.msrb.mxu1 %v3380_v27 }
 0x674   : > { %3653 = vmatpush.bf16.msra.mxu2 %v3385_v22 }
 0x675   : > { %3667 = vmatpush.bf16.msra.mxu3 %v3386_v56  ;;  %4506 = vmatmul.msk.bf16.vlgmr.msrb.gmra.mxu0 %vm883_vm5, %v6392_v55 }
 0x676   : > { %4507 = vmatmul.msk.bf16.vlgmr.msrb.gmra.mxu1 %vm883_vm5, %v6392_v55 }
 0x677   : > { %v6430_v4 = vpop.f32.mrf.mxu2 }
 0x678   : > { %v6432_v31 = vpop.f32.mrf.mxu3  ;;  %3654 = vmatpush.bf16.msra.mxu2 %v3377_v49  ;;  %v6465_v49 = vld [vmem:[%s6682_s1 + $0xc8] sm:$0x3] }
 0x679   : > { %3668 = vmatpush.bf16.msra.mxu3 %v3378_v51  ;;  %v3152_v8 = vpop.f32.mrf.mxu0 }
 0x67a   : > { %v3175_v58 = vpop.f32.mrf.mxu1 }
 0x67b   : > { %4504 = vmatmul.msk.bf16.vlgmr.msra.gmra.mxu2 %vm883_vm5, %v6392_v55 }
 0x67c   : > { %4505 = vmatmul.msk.bf16.vlgmr.msra.gmra.mxu3 %vm883_vm5, %v6392_v55 }
 0x67f   : > { %v3106_v5 = vpop.f32.mrf.mxu2 }
 0x680   : > { %v3129_v35 = vpop.f32.mrf.mxu3 }
 0x681   : > { %v3508_v20 = vpop.f32.mrf.mxu0 }
 0x682   : > { %v3522_v42 = vpop.f32.mrf.mxu1 }
 0x687   : > { %v3186_v44 = vpop.f32.mrf.mxu2 }
 0x688   : > { %v3209_v0 = vpop.f32.mrf.mxu3  ;;  %v3187_v60 = vadd.f32 %v3186_v44, %v6381_v33 }
 0x689   : > { %v3510_v18 = vpop.f32.mrf.mxu0  ;;  %v3210_v53 = vadd.f32 %v3209_v0, %v6381_v33 }
 0x68a   : > { %v3524_v11 = vpop.f32.mrf.mxu1 }
 0x68f   : > { %v3188_v19 = vpop.f32.mrf.mxu2 }
 0x690   : > { %v3211_v21 = vpop.f32.mrf.mxu3  ;;  %v3189_v39 = vadd.f32 %v3188_v19, %v6369_v59 }
 0x691   : > { %v3212_v3 = vadd.f32 %v3211_v21, %v6369_v59 }
 0x692   : > { %v3381_v52 = vpack.c.bf16 %v3189_v39, %v3187_v60  ;;  %v3578_v59 = vpop.f32.mrf.mxu1 }
 0x693   : > { %v3382_v15 = vpack.c.bf16 %v3212_v3, %v3210_v53 }
 0x697   : > { %v3191_v1 = vpop.f32.mrf.mxu2 }
 0x698   : > { %v3214_v41 = vpop.f32.mrf.mxu3  ;;  %v3192_v37 = vadd.f32 %v3191_v1, %v6361_v28 }
 0x699   : > { %v3215_v57 = vadd.f32 %v3214_v41, %v6361_v28 }
 0x69a   : > { %v3580_v29 = vpop.f32.mrf.mxu1 }
 0x69f   : > { %v3193_v13 = vpop.f32.mrf.mxu2 }
 0x6a0   : > { %v3194_v61 = vadd.f32 %v3193_v13, %v6365_v23  ;;  %v3216_v17 = vpop.f32.mrf.mxu3 }
 0x6a1   : > { %v3217_v47 = vadd.f32 %v3216_v17, %v6365_v23  ;;  %v3564_v23 = vpop.f32.mrf.mxu0 }
 0x6a2   : > { %v3389_v62 = vpack.c.bf16 %v3194_v61, %v3192_v37 }
 0x6a3   : > { %v3390_v12 = vpack.c.bf16 %v3217_v47, %v3215_v57 }
 0x6a4   : > { %3709 = vmatpush.bf16.msrb.mxu2 %v3389_v62 }
 0x6a5   : > { %3723 = vmatpush.bf16.msrb.mxu3 %v3390_v12 }
 0x6a7   : > { %v6446_v6 = vpop.f32.mrf.mxu2 }
 0x6a8   : > { %v6448_v28 = vpop.f32.mrf.mxu3  ;;  %3710 = vmatpush.bf16.msrb.mxu2 %v3381_v52 }
 0x6a9   : > { %3724 = vmatpush.bf16.msrb.mxu3 %v3382_v15  ;;  %v3566_v48 = vpop.f32.mrf.mxu0 }
 0x6ab   : > { %4508 = vmatmul.msk.bf16.vlgmr.msrb.gmra.mxu2 %vm883_vm5, %v6392_v55 }
 0x6ac   : > { %4509 = vmatmul.msk.bf16.vlgmr.msrb.gmra.mxu3 %vm883_vm5, %v6392_v55 }
 0x6af   : > { %v3198_v38 = vpop.f32.mrf.mxu2 }
 0x6b0   : > { %v3221_v33 = vpop.f32.mrf.mxu3 }
 0x6b7   : > { %v3536_v51 = vpop.f32.mrf.mxu2 }
 0x6b8   : > { %v3550_v8 = vpop.f32.mrf.mxu3 }
 0x6bf   : > { %v3538_v58 = vpop.f32.mrf.mxu2 }
 0x6c0   : > { %v3552_v5 = vpop.f32.mrf.mxu3 }
 0x6c2   : > { %v3628_v7 = vpop.f32.mrf.mxu0 }
 0x6c3   : > { %v3642_v34 = vpop.f32.mrf.mxu1  ;;  %v3629_v50 = vadd.f32 %v3628_v7, %v3508_v20 }
 0x6c4   : > { %v3643_v10 = vadd.f32 %v3642_v34, %v3522_v42 }
 0x6c5   : > { %v3743_v9 = vadd.f32 %v6454_v46, %v3629_v50 }
 0x6c6   : > { %v3744_v55 = vadd.f32 %v6454_v46, %v3643_v10 }
 0x6c7   : > { %v3759_v54 = vmax.f32 %v3743_v9, 0.0  ;;  %v3592_v35 = vpop.f32.mrf.mxu2 }
 0x6c8   : > { %v3760_v43 = vmax.f32 %v3744_v55, 0.0  ;;  %v3606_v44 = vpop.f32.mrf.mxu3 }
 0x6ca   : > { %v3630_v2 = vpop.f32.mrf.mxu0 }
 0x6cb   : > { %v3631_v14 = vadd.f32 %v3630_v2, %v3510_v18  ;;  %v3644_v26 = vpop.f32.mrf.mxu1 }
 0x6cc   : > { %v3645_v27 = vadd.f32 %v3644_v26, %v3524_v11 }
 0x6cd   : > { %v3751_v36 = vadd.f32 %v6457_v24, %v3631_v14 }
 0x6ce   : > { %v3752_v30 = vadd.f32 %v6457_v24, %v3645_v27 }
 0x6cf   : > { %v3767_v22 = vmax.f32 %v3751_v36, 0.0  ;;  %v3594_v21 = vpop.f32.mrf.mxu2 }
 0x6d0   : > { %v3768_v56 = vmax.f32 %v3752_v30, 0.0  ;;  %v3608_v1 = vpop.f32.mrf.mxu3 }
 0x6d1   : > { %v3776_v16 = vpack.c.bf16 %v3767_v22, %v3759_v54  ;;  %v6487_v22 = vpop.permute.xlu0 %3014 }
 0x6d2   : > { %v3777_v45 = vpack.c.bf16 %v3768_v56, %v3760_v43  ;;  %v6491_v56 = vadd.f32 %v6387_v32, %v6487_v22 }
 0x6d3   : > { %3801 = vmatpush.bf16.msra.mxu0 %v3776_v16 }
 0x6d4   : > { %3814 = vmatpush.bf16.msra.mxu1 %v3777_v45  ;;  %vm3231_vm9 = vcmp.ne.f32.partialorder %v6491_v56, %v6491_v56 }
 0x6d6   : > { %4510 = vmatmul.msk.bf16.vlgmr.msra.gmra.mxu0 %vm3790_vm6, %v6465_v49 }
 0x6d7   : > { %4511 = vmatmul.msk.bf16.vlgmr.msra.gmra.mxu1 %vm3790_vm6, %v6465_v49 }
 0x6f2   : > { %v3684_v0 = vpop.f32.mrf.mxu0 }
 0x6f3   : > { %v3698_v19 = vpop.f32.mrf.mxu1  ;;  %v3685_v41 = vadd.f32 %v3684_v0, %v3564_v23  ;;  %v3247_v0 = vand.u32 2147483647, %v6491_v56 }
 0x6f4   : > { %v3699_v20 = vadd.f32 %v3698_v19, %v3578_v59 }
 0x6f5   : > { %v3747_v13 = vadd.f32 %v6454_v46, %v3685_v41 }
 0x6f6   : > { %v3748_v17 = vadd.f32 %v6454_v46, %v3699_v20 }
 0x6f7   : > { %v3763_v3 = vmax.f32 %v3747_v13, 0.0 }
 0x6f8   : > { %v3764_v18 = vmax.f32 %v3748_v17, 0.0 }
 0x6fa   : > { %v3686_v42 = vpop.f32.mrf.mxu0 }
 0x6fb   : > { %v3687_v37 = vadd.f32 %v3686_v42, %v3566_v48  ;;  %v3700_v61 = vpop.f32.mrf.mxu1 }
 0x6fc   : > { %v3701_v57 = vadd.f32 %v3700_v61, %v3580_v29 }
 0x6fd   : > { %v3755_v47 = vadd.f32 %v6457_v24, %v3687_v37 }
 0x6fe   : > { %v3756_v39 = vadd.f32 %v6457_v24, %v3701_v57  ;;  %v3656_v62 = vpop.f32.mrf.mxu2 }
 0x6ff   : > { %v3771_v12 = vmax.f32 %v3755_v47, 0.0  ;;  %v3670_v60 = vpop.f32.mrf.mxu3  ;;  %v3657_v15 = vadd.f32 %v3656_v62, %v3536_v51  ;;  %v6507_v47 = vpop.permute.xlu1 %3787 }
 0x700   : > { %v3772_v53 = vmax.f32 %v3756_v39, 0.0  ;;  %v3671_v23 = vadd.f32 %v3670_v60, %v3550_v8 }
 0x701   : > { %v3780_v11 = vpack.c.bf16 %v3771_v12, %v3763_v3  ;;  %v3745_v38 = vadd.f32 %v6454_v46, %v3657_v15 }
 0x702   : > { %v3781_v52 = vpack.c.bf16 %v3772_v53, %v3764_v18  ;;  %v3746_v29 = vadd.f32 %v6454_v46, %v3671_v23 }
 0x703   : > { %3853 = vmatpush.bf16.msrb.mxu0 %v3780_v11  ;;  %v3761_v10 = vmax.f32 %v3745_v38, 0.0 }
 0x704   : > { %3866 = vmatpush.bf16.msrb.mxu1 %v3781_v52  ;;  %v3762_v9 = vmax.f32 %v3746_v29, 0.0 }
 0x706   : > { %v3658_v59 = vpop.f32.mrf.mxu2  ;;  %4514 = vmatmul.msk.bf16.vlgmr.msrb.gmra.mxu0 %vm3790_vm6, %v6465_v49 }
 0x707   : > { %v3659_v33 = vadd.f32 %v3658_v59, %v3538_v58  ;;  %v3672_v48 = vpop.f32.mrf.mxu3  ;;  %4515 = vmatmul.msk.bf16.vlgmr.msrb.gmra.mxu1 %vm3790_vm6, %v6465_v49 }
 0x708   : > { %v3673_v7 = vadd.f32 %v3672_v48, %v3552_v5  ;;  %v6497_v5 = vadd.f32 %v6394_v40, %v6487_v22 }
 0x709   : > { %v3753_v34 = vadd.f32 %v6457_v24, %v3659_v33 }
 0x70a   : > { %v3754_v50 = vadd.f32 %v6457_v24, %v3673_v7  ;;  %vm3232_vm10 = vcmp.ne.f32.partialorder %v6497_v5, %v6497_v5 }
 0x70b   : > { %v3769_v2 = vmax.f32 %v3753_v34, 0.0 }
 0x70c   : > { %v3770_v14 = vmax.f32 %v3754_v50, 0.0 }
 0x70d   : > { %v3778_v26 = vpack.c.bf16 %v3769_v2, %v3761_v10 }
 0x70e   : > { %v3779_v55 = vpack.c.bf16 %v3770_v14, %v3762_v9 }
 0x70f   : > { %3827 = vmatpush.bf16.msra.mxu2 %v3778_v26 }
 0x710   : > { %3840 = vmatpush.bf16.msra.mxu3 %v3779_v55  ;;  %v3223_v55 = vmax.f32 %v6491_v56, 0.0 }
 0x712   : > { %4512 = vmatmul.msk.bf16.vlgmr.msra.gmra.mxu2 %vm3790_vm6, %v6465_v49 }
 0x713   : > { %4513 = vmatmul.msk.bf16.vlgmr.msra.gmra.mxu3 %vm3790_vm6, %v6465_v49 }
 0x72e   : > { %v3712_v27 = vpop.f32.mrf.mxu2 }
 0x72f   : > { %v3726_v36 = vpop.f32.mrf.mxu3  ;;  %v3713_v30 = vadd.f32 %v3712_v27, %v3592_v35 }
 0x730   : > { %v3727_v54 = vadd.f32 %v3726_v36, %v3606_v44 }
 0x731   : > { %v3749_v16 = vadd.f32 %v6454_v46, %v3713_v30  ;;  %v3224_v30 = vmax.f32 %v6497_v5, 0.0 }
 0x732   : > { %v3750_v8 = vadd.f32 %v6454_v46, %v3727_v54  ;;  %v3255_v46 = vsub.f32 0.0, %v3247_v0 }
 0x733   : > { %v3765_v19 = vmax.f32 %v3749_v16, 0.0 }
 0x734   : > { %v3766_v41 = vmax.f32 %v3750_v8, 0.0  ;;  %v3263_v40 = vmul.f32 1.442695, %v3255_v46 }
 0x736   : > { %v3714_v43 = vpop.f32.mrf.mxu2  ;;  %4601 = vpow2.f32 %v3263_v40 }
 0x737   : > { %v3715_v45 = vadd.f32 %v3714_v43, %v3594_v21  ;;  %v3728_v51 = vpop.f32.mrf.mxu3  ;;  %v3248_v21 = vand.u32 2147483647, %v6497_v5  ;;  %v6515_v43 = vadd.f32 %v6418_v63, %v6487_v22  ;;  %v6526_v63 = vadd.f32 %v6421_v25, %v6487_v22 }
 0x738   : > { %v3729_v58 = vadd.f32 %v3728_v51, %v3608_v1 }
 0x739   : > { %v3757_v35 = vadd.f32 %v6457_v24, %v3715_v45  ;;  %v3256_v1 = vsub.f32 0.0, %v3248_v21  ;;  %v3251_v0 = vand.u32 2147483647, %v6515_v43 }
 0x73a   : > { %v3758_v44 = vadd.f32 %v6457_v24, %v3729_v58  ;;  %v4058_v58 = vrot.slane %v3223_v55, 5 }
 0x73b   : > { %v3773_v32 = vmax.f32 %v3757_v35, 0.0  ;;  %v3265_v24 = vmul.f32 1.442695, %v3256_v1 }
 0x73c   : > { %v3774_v20 = vmax.f32 %v3758_v44, 0.0  ;;  %v4602_v37 = vpop.eup %4601 }
 0x73d   : > { %v3782_v42 = vpack.c.bf16 %v3773_v32, %v3765_v19  ;;  %4603 = vpow2.f32 %v3265_v24  ;;  %v3279_v17 = vadd.f32 1.0, %v4602_v37  ;;  %v3282_v18 = vmul.f32 -0.5, %v4602_v37 }
 0x73e   : > { %v3783_v13 = vpack.c.bf16 %v3774_v20, %v3766_v41  ;;  %v3285_v59 = vand.u32 2147483647, %v4602_v37  ;;  %v4059_v41 = vrot.slane %v3224_v30, 5  ;;  %v3252_v24 = vand.u32 2147483647, %v6526_v63 }
 0x73f   : > { %3879 = vmatpush.bf16.msrb.mxu2 %v3782_v42  ;;  %4605 = vlog2.f32 %v3279_v17  ;;  %v3283_v52 = vadd.f32 1.0, %v3282_v18 }
 0x740   : > { %3892 = vmatpush.bf16.msrb.mxu3 %v3783_v13  ;;  %vm3286_vm7 = vcmp.lt.f32.partialorder %v3285_v59, 0.0004427343  ;;  %v3260_v18 = vsub.f32 0.0, %v3252_v24 }
 0x741   : > { %v3284_v50 = vmul.f32 %v4602_v37, %v3283_v52 }
 0x742   : > { %4516 = vmatmul.msk.bf16.vlgmr.msrb.gmra.mxu2 %vm3790_vm6, %v6465_v49  ;;  %v3273_v59 = vmul.f32 1.442695, %v3260_v18 }
 0x743   : > { %4517 = vmatmul.msk.bf16.vlgmr.msrb.gmra.mxu3 %vm3790_vm6, %v6465_v49  ;;  %v4604_v61 = vpop.eup %4603 }
 0x744   : > { %v3288_v57 = vadd.f32 1.0, %v4604_v61  ;;  %v3291_v53 = vmul.f32 -0.5, %v4604_v61  ;;  %v3294_v7 = vand.u32 2147483647, %v4604_v61 }
 0x745   : > { %v4606_v11 = vpop.eup %4605 }
 0x746   : > { %4607 = vlog2.f32 %v3288_v57  ;;  %v3281_v33 = vmul.f32 0.6931472, %v4606_v11  ;;  %v3292_v48 = vadd.f32 1.0, %v3291_v53  ;;  %vm3295_vm8 = vcmp.lt.f32.partialorder %v3294_v7, 0.0004427343 }
 0x748   : > { %v3287_v14 = vsel %vm3286_vm7, %v3284_v50, %v3281_v33  ;;  %v3293_v26 = vmul.f32 %v4604_v61, %v3292_v48  ;;  %vm3235_vm7 = vcmp.ne.f32.partialorder %v6515_v43, %v6515_v43 }
 0x749   : > { %v3351_v36 = vadd.f32 %v3287_v14, %v3223_v55 }
 0x74b   : > { %v3359_v51 = vsel %vm3231_vm9, %v6491_v56, %v3351_v36 }
 0x74c   : > { %v4608_v23 = vpop.eup %4607  ;;  %v3367_v32 = vadd.f32 0.01, %v3359_v51 }
 0x74d   : > { %v3290_v10 = vmul.f32 0.6931472, %v4608_v23  ;;  %v6539_v23 = vadd.f32 %v6430_v4, %v6487_v22 }
 0x74e   : > { %v4082_v17 = vrot.slane %v3367_v32, 5 }
 0x74f   : > { %v3296_v27 = vsel %vm3295_vm8, %v3293_v26, %v3290_v10  ;;  %v3249_v33 = vand.u32 2147483647, %v6539_v23  ;;  %vm3236_vm8 = vcmp.ne.f32.partialorder %v6526_v63, %v6526_v63 }
 0x750   : > { %v3352_v54 = vadd.f32 %v3296_v27, %v3224_v30 }
 0x751   : > { %v3257_v7 = vsub.f32 0.0, %v3249_v33 }
 0x752   : > { %v3360_v44 = vsel %vm3232_vm10, %v6497_v5, %v3352_v54  ;;  %v3259_v5 = vsub.f32 0.0, %v3251_v0 }
 0x753   : > { %v3803_v39 = vpop.f32.mrf.mxu0  ;;  %v3368_v46 = vadd.f32 0.01, %v3360_v44 }
 0x754   : > { %v3804_v62 = vadd.f32 %v3803_v39, %v6507_v47  ;;  %v3816_v3 = vpop.f32.mrf.mxu1 }
 0x755   : > { %v3817_v12 = vadd.f32 %v3816_v3, %v6507_v47 }
 0x756   : > { %v4518_v60 = vmul.f32 -1.442695, %v3804_v62  ;;  %v4083_v62 = vrot.slane %v3368_v46, 5 }
 0x757   : > { %v4519_v49 = vmul.f32 -1.442695, %v3817_v12 }
 0x758   : > { %4609 = vpow2.f32 %v4518_v60  ;;  %v3271_v60 = vmul.f32 1.442695, %v3259_v5 }
 0x759   : > { %4611 = vpow2.f32 %v4519_v49 }
 0x75b   : > { %v3805_v15 = vpop.f32.mrf.mxu0 }
 0x75c   : > { %v3818_v38 = vpop.f32.mrf.mxu1 }
 0x75d   : > { %v6544_v38 = vadd.f32 %v6432_v31, %v6487_v22 }
 0x75e   : > { %v4610_v29 = vpop.eup %4609 }
 0x75f   : > { %v4612_v34 = vpop.eup %4611  ;;  %v3922_v2 = vadd.f32 1.0, %v4610_v29  ;;  %v3250_v48 = vand.u32 2147483647, %v6544_v38 }
 0x760   : > { %v3923_v9 = vadd.f32 1.0, %v4612_v34 }
 0x761   : > { %4613 = vrcp.f32 %v3922_v2  ;;  %v3941_v20 = vand.u32 2147483648, %v3922_v2  ;;  %v3939_v42 = vand.u32 2147483647, %v3922_v2  ;;  %vm3935_vm13 = vweird.f32 %v3922_v2 }
 0x762   : > { %4615 = vrcp.f32 %v3923_v9  ;;  %v3956_v13 = vand.u32 2147483648, %v3923_v9  ;;  %v3954_v40 = vand.u32 2147483647, %v3923_v9  ;;  %vm3950_vm1 = vweird.f32 %v3923_v9 }
 0x763   : > { %v3942_v25 = vor.u32 1.1754944e-38, %v3941_v20  ;;  %vm3940_vm2 = vcmp.eq.f32.partialorder %v3939_v42, 8.507059e+37  ;;  %4617 = vpow2.f32 %v3271_v60  ;;  %v3258_v34 = vsub.f32 0.0, %v3250_v48 }
 0x764   : > { %v3957_v39 = vor.u32 1.1754944e-38, %v3956_v13  ;;  %vm3955_vm4 = vcmp.eq.f32.partialorder %v3954_v40, 8.507059e+37  ;;  %4619 = vpow2.f32 %v3273_v59  ;;  %v3227_v40 = vmax.f32 %v6515_v43, 0.0 }
 0x765   : > { %v3269_v4 = vmul.f32 1.442695, %v3258_v34 }
 0x767   : > { %v4614_v16 = vpop.eup %4613 }
 0x768   : > { %v4616_v45 = vpop.eup %4615  ;;  %v3931_v8 = vmul.f32 %v4614_v16, %v3922_v2  ;;  %vm3936_vm11 = vweird.f32 %v4614_v16  ;;  %v3267_v2 = vmul.f32 1.442695, %v3257_v7 }
 0x769   : > { %v3946_v35 = vmul.f32 %v4616_v45, %v3923_v9  ;;  %vm3951_vm12 = vweird.f32 %v4616_v45  ;;  %vm3937_vm14 = vmor %vm3935_vm13, %vm3936_vm11  ;;  %v4618_v29 = vpop.eup %4617 }
 0x76a   : > { %v3932_v19 = vsub.f32 1.0, %v3931_v8  ;;  %vm3952_vm3 = vmor %vm3950_vm1, %vm3951_vm12  ;;  %v3315_v50 = vadd.f32 1.0, %v4618_v29  ;;  %v4620_v10 = vpop.eup %4619  ;;  %v3318_v27 = vmul.f32 -0.5, %v4618_v29  ;;  %v3321_v8 = vand.u32 2147483647, %v4618_v29 }
 0x76b   : > { %v3947_v21 = vsub.f32 1.0, %v3946_v35  ;;  %v3324_v9 = vadd.f32 1.0, %v4620_v10 }
 0x76c   : > { %v3933_v56 = vmul.f32 %v4614_v16, %v3932_v19  ;;  %4621 = vlog2.f32 %v3315_v50  ;;  %vm3322_vm5 = vcmp.lt.f32.partialorder %v3321_v8, 0.0004427343 }
 0x76d   : > { %v3948_v1 = vmul.f32 %v4616_v45, %v3947_v21  ;;  %4623 = vpow2.f32 %v3267_v2 }
 0x76e   : > { %v3934_v37 = vadd.f32 %v4614_v16, %v3933_v56  ;;  %4625 = vpow2.f32 %v3269_v4  ;;  %v3330_v56 = vand.u32 2147483647, %v4620_v10 }
 0x76f   : > { %v3949_v61 = vadd.f32 %v4616_v45, %v3948_v1  ;;  %4627 = vlog2.f32 %v3324_v9 }
 0x770   : > { %v3938_v57 = vsel %vm3937_vm14, %v4614_v16, %v3934_v37  ;;  %v3319_v16 = vadd.f32 1.0, %v3318_v27  ;;  %vm3331_vm6 = vcmp.lt.f32.partialorder %v3330_v56, 0.0004427343 }
 0x771   : > { %v3943_v3 = vsel %vm3940_vm2, %v3942_v25, %v3938_v57  ;;  %v3953_v12 = vsel %vm3952_vm3, %v4616_v45, %v3949_v61  ;;  %v3327_v45 = vmul.f32 -0.5, %v4620_v10  ;;  %v3228_v61 = vmax.f32 %v6526_v63, 0.0 }
 0x772   : > { %v4099_v49 = vsel %vm4098_vm15, %v3943_v3, %v4058_v58  ;;  %v3958_v53 = vsel %vm3955_vm4, %v3957_v39, %v3953_v12  ;;  %v4622_v54 = vpop.eup %4621 }
 0x773   : > { %v4107_v11 = vsel %vm355_vm0, %v4099_v49, %v4082_v17  ;;  %v4100_v52 = vsel %vm4098_vm15, %v3958_v53, %v4059_v41  ;;  %v6550_v51 = vpop.eup %4623  ;;  %v3317_v44 = vmul.f32 0.6931472, %v4622_v54  ;;  %v3320_v41 = vmul.f32 %v4618_v29, %v3319_v16 }
 0x774   : > { %4115 = vst [vmem:[%s6533_s28] sm:$0x1f] %v4107_v11  ;;  %v4108_v15 = vsel %vm355_vm0, %v4100_v52, %v4083_v62  ;;  %v6552_v35 = vpop.eup %4625  ;;  %v3328_v20 = vadd.f32 1.0, %v3327_v45  ;;  %v3297_v5 = vadd.f32 1.0, %v6550_v51  ;;  %v3300_v57 = vmul.f32 -0.5, %v6550_v51 }
 0x775   : > { %4116 = vst [vmem:[%s6533_s28 + $0x8] sm:$0x1f] %v4108_v15  ;;  %v4628_v19 = vpop.eup %4627  ;;  %v3323_v13 = vsel %vm3322_vm5, %v3320_v41, %v3317_v44  ;;  %v3306_v37 = vadd.f32 1.0, %v6552_v35  ;;  %v3303_v62 = vand.u32 2147483647, %v6550_v51  ;;  %v3309_v3 = vmul.f32 -0.5, %v6552_v35 }
 0x776   : > { %v3326_v46 = vmul.f32 0.6931472, %v4628_v19  ;;  %v3329_v24 = vmul.f32 %v4620_v10, %v3328_v20  ;;  %v3355_v25 = vadd.f32 %v3323_v13, %v3227_v40  ;;  %v4062_v15 = vrot.slane %v3227_v40, 5 }
 0x777   : > { %v4063_v59 = vrot.slane %v3228_v61, 5  ;;  %v3301_v29 = vadd.f32 1.0, %v3300_v57  ;;  %v3312_v7 = vand.u32 2147483647, %v6552_v35  ;;  %vm6577_vm9 = vcmp.lt.f32.partialorder %v3303_v62, 0.0004427343 }
 0x778   : > { %v3332_v17 = vsel %vm3331_vm6, %v3329_v24, %v3326_v46  ;;  %v3363_v49 = vsel %vm3235_vm7, %v6515_v43, %v3355_v25  ;;  %v3310_v2 = vadd.f32 1.0, %v3309_v3  ;;  %v3225_v57 = vmax.f32 %v6539_v23, 0.0 }
 0x779   : > { %v3356_v53 = vadd.f32 %v3332_v17, %v3228_v61  ;;  %v3371_v10 = vadd.f32 0.01, %v3363_v49  ;;  %v3302_v54 = vmul.f32 %v6550_v51, %v3301_v29  ;;  %vm3313_vm4 = vcmp.lt.f32.partialorder %v3312_v7, 0.0004427343 }
 0x77a   : > { %vm3233_vm5 = vcmp.ne.f32.partialorder %v6539_v23, %v6539_v23  ;;  %vm3234_vm6 = vcmp.ne.f32.partialorder %v6544_v38, %v6544_v38 }
 0x783   : > { %v3855_v14 = vpop.f32.mrf.mxu0 }
 0x784   : > { %v3856_v26 = vadd.f32 %v3855_v14, %v6507_v47  ;;  %v3868_v55 = vpop.f32.mrf.mxu1  ;;  %v3364_v14 = vsel %vm3236_vm8, %v6526_v63, %v3356_v53 }
 0x785   : > { %v3869_v31 = vadd.f32 %v3868_v55, %v6507_v47 }
 0x786   : > { %v4522_v36 = vmul.f32 -1.442695, %v3856_v26 }
 0x787   : > { %v4523_v30 = vmul.f32 -1.442695, %v3869_v31 }
 0x788   : > { %4629 = vpow2.f32 %v4522_v36 }
 0x789   : > { %4631 = vpow2.f32 %v4523_v30 }
 0x78b   : > { %v3857_v58 = vpop.f32.mrf.mxu0 }
 0x78c   : > { %v3870_v0 = vpop.f32.mrf.mxu1  ;;  %v3372_v58 = vadd.f32 0.01, %v3364_v14 }
 0x78e   : > { %v4630_v32 = vpop.eup %4629 }
 0x78f   : > { %v4632_v21 = vpop.eup %4631  ;;  %v6554_v42 = vadd.f32 1.0, %v4630_v32 }
 0x790   : > { %v6556_v1 = vadd.f32 1.0, %v4632_v21  ;;  %v4086_v21 = vrot.slane %v3371_v10, 5 }
 0x791   : > { %4633 = vrcp.f32 %v6554_v42  ;;  %v4001_v26 = vand.u32 2147483648, %v6554_v42  ;;  %v3999_v36 = vand.u32 2147483647, %v6554_v42  ;;  %vm3995_vm12 = vweird.f32 %v6554_v42 }
 0x792   : > { %4635 = vrcp.f32 %v6556_v1  ;;  %v4016_v30 = vand.u32 2147483648, %v6556_v1  ;;  %v4014_v45 = vand.u32 2147483647, %v6556_v1  ;;  %vm4010_vm14 = vweird.f32 %v6556_v1 }
 0x793   : > { %4637 = vlog2.f32 %v3297_v5  ;;  %v4002_v32 = vor.u32 1.1754944e-38, %v4001_v26  ;;  %vm4000_vm1 = vcmp.eq.f32.partialorder %v3999_v36, 8.507059e+37  ;;  %v4087_v5 = vrot.slane %v3372_v58, 5 }
 0x794   : > { %4639 = vlog2.f32 %v3306_v37  ;;  %v4017_v56 = vor.u32 1.1754944e-38, %v4016_v30  ;;  %vm4015_vm3 = vcmp.eq.f32.partialorder %v4014_v45, 8.507059e+37 }
 0x795   : > { %v3829_v39 = vpop.f32.mrf.mxu2 }
 0x796   : > { %v3830_v12 = vadd.f32 %v3829_v39, %v6507_v47  ;;  %v3842_v60 = vpop.f32.mrf.mxu3  ;;  %v3311_v39 = vmul.f32 %v6552_v35, %v3310_v2  ;;  %v6609_v35 = vadd.f32 %v6446_v6, %v6487_v22 }
 0x797   : > { %v4634_v18 = vpop.eup %4633  ;;  %v3843_v11 = vadd.f32 %v3842_v60, %v6507_v47  ;;  %v3226_v60 = vmax.f32 %v6544_v38, 0.0 }
 0x798   : > { %v4636_v52 = vpop.eup %4635  ;;  %v3991_v33 = vmul.f32 %v4634_v18, %v6554_v42  ;;  %v4520_v48 = vmul.f32 -1.442695, %v3830_v12  ;;  %vm3996_vm10 = vweird.f32 %v4634_v18  ;;  %v3253_v43 = vand.u32 2147483647, %v6609_v35 }
 0x799   : > { %v4006_v34 = vmul.f32 %v4636_v52, %v6556_v1  ;;  %v4521_v50 = vmul.f32 -1.442695, %v3843_v11  ;;  %v4638_v9 = vpop.eup %4637  ;;  %vm4011_vm11 = vweird.f32 %v4636_v52  ;;  %vm3997_vm13 = vmor %vm3995_vm12, %vm3996_vm10 }
 0x79a   : > { %v3992_v4 = vsub.f32 1.0, %v3991_v33  ;;  %4641 = vpow2.f32 %v4520_v48  ;;  %v4640_v31 = vpop.eup %4639  ;;  %v3299_v63 = vmul.f32 0.6931472, %v4638_v9  ;;  %vm4012_vm2 = vmor %vm4010_vm14, %vm4011_vm11  ;;  %v6615_v33 = vadd.f32 %v6448_v28, %v6487_v22 }
 0x79b   : > { %v4007_v55 = vsub.f32 1.0, %v4006_v34  ;;  %4643 = vpow2.f32 %v4521_v50  ;;  %v3308_v19 = vmul.f32 0.6931472, %v4640_v31  ;;  %v4061_v22 = vrot.slane %v3226_v60, 5 }
 0x79c   : > { %v3993_v27 = vmul.f32 %v4634_v18, %v3992_v4  ;;  %v3305_v1 = vsel %vm6577_vm9, %v3302_v54, %v3299_v63  ;;  %v3254_v14 = vand.u32 2147483647, %v6615_v33  ;;  %v3261_v36 = vsub.f32 0.0, %v3253_v43 }
 0x79d   : > { %v4008_v16 = vmul.f32 %v4636_v52, %v4007_v55  ;;  %v3831_v8 = vpop.f32.mrf.mxu2  ;;  %v3353_v3 = vadd.f32 %v3305_v1, %v3225_v57  ;;  %v3314_v12 = vsel %vm3313_vm4, %v3311_v39, %v3308_v19  ;;  %vm3238_vm4 = vcmp.ne.f32.partialorder %v6615_v33, %v6615_v33 }
 0x79e   : > { %v3994_v44 = vadd.f32 %v4634_v18, %v3993_v27  ;;  %v3844_v0 = vpop.f32.mrf.mxu3  ;;  %v3354_v49 = vadd.f32 %v3314_v12, %v3226_v60  ;;  %v3262_v45 = vsub.f32 0.0, %v3254_v14  ;;  %v3275_v19 = vmul.f32 1.442695, %v3261_v36 }
 0x79f   : > { %v4009_v41 = vadd.f32 %v4636_v52, %v4008_v16  ;;  %v3361_v11 = vsel %vm3233_vm5, %v6539_v23, %v3353_v3 }
 0x7a0   : > { %v4642_v20 = vpop.eup %4641  ;;  %v3998_v51 = vsel %vm3997_vm13, %v4634_v18, %v3994_v44  ;;  %v3369_v29 = vadd.f32 0.01, %v3361_v11  ;;  %v3362_v7 = vsel %vm3234_vm6, %v6544_v38, %v3354_v49 }
 0x7a1   : > { %v4644_v13 = vpop.eup %4643  ;;  %v4003_v46 = vsel %vm4000_vm1, %v4002_v32, %v3998_v51  ;;  %v4013_v40 = vsel %vm4012_vm2, %v4636_v52, %v4009_v41  ;;  %v3924_v42 = vadd.f32 1.0, %v4642_v20  ;;  %v3370_v9 = vadd.f32 0.01, %v3362_v7 }
 0x7a2   : > { %v4103_v24 = vsel %vm4098_vm15, %v4003_v46, %v4062_v15  ;;  %v4018_v37 = vsel %vm4015_vm3, %v4017_v56, %v4013_v40  ;;  %v3925_v25 = vadd.f32 1.0, %v4644_v13  ;;  %v4084_v55 = vrot.slane %v3369_v29, 5 }
 0x7a3   : > { %v4111_v61 = vsel %vm355_vm0, %v4103_v24, %v4086_v21  ;;  %v4104_v17 = vsel %vm4098_vm15, %v4018_v37, %v4063_v59  ;;  %4645 = vrcp.f32 %v3924_v42  ;;  %v4060_v59 = vrot.slane %v3225_v57, 5 }
 0x7a4   : > { %4119 = vst [vmem:[%s6533_s28 + $0x20] sm:$0x1f] %v4111_v61  ;;  %v4112_v62 = vsel %vm355_vm0, %v4104_v17, %v4087_v5  ;;  %4647 = vrcp.f32 %v3925_v25  ;;  %v3971_v34 = vand.u32 2147483648, %v3924_v42  ;;  %v3969_v10 = vand.u32 2147483647, %v3924_v42 }
 0x7a5   : > { %4120 = vst [vmem:[%s6533_s28 + $0x28] sm:$0x1f] %v4112_v62  ;;  %v3986_v6 = vand.u32 2147483648, %v3925_v25  ;;  %v3984_v4 = vand.u32 2147483647, %v3925_v25  ;;  %vm3965_vm9 = vweird.f32 %v3924_v42  ;;  %vm3980_vm11 = vweird.f32 %v3925_v25 }
 0x7a6   : > { %v3972_v26 = vor.u32 1.1754944e-38, %v3971_v34  ;;  %vm3970_vm12 = vcmp.eq.f32.partialorder %v3969_v10, 8.507059e+37  ;;  %v4085_v16 = vrot.slane %v3370_v9, 5  ;;  %v3277_v32 = vmul.f32 1.442695, %v3262_v45 }
 0x7a7   : > { %v3987_v27 = vor.u32 1.1754944e-38, %v3986_v6  ;;  %vm3985_vm14 = vcmp.eq.f32.partialorder %v3984_v4, 8.507059e+37  ;;  %4649 = vpow2.f32 %v3275_v19  ;;  %v3230_v29 = vmax.f32 %v6615_v33, 0.0 }
 0x7a8   : > { %4651 = vpow2.f32 %v3277_v32  ;;  %vm3237_vm3 = vcmp.ne.f32.partialorder %v6609_v35, %v6609_v35 }
 0x7a9   : > { %v4646_v18 = vpop.eup %4645 }
 0x7aa   : > { %v4648_v53 = vpop.eup %4647  ;;  %v3961_v52 = vmul.f32 %v4646_v18, %v3924_v42  ;;  %vm3966_vm7 = vweird.f32 %v4646_v18 }
 0x7ab   : > { %v3976_v15 = vmul.f32 %v4648_v53, %v3925_v25  ;;  %vm3981_vm8 = vweird.f32 %v4648_v53  ;;  %vm3967_vm10 = vmor %vm3965_vm9, %vm3966_vm7 }
 0x7ac   : > { %v3962_v48 = vsub.f32 1.0, %v3961_v52  ;;  %vm3982_vm13 = vmor %vm3980_vm11, %vm3981_vm8 }
 0x7ad   : > { %v3977_v23 = vsub.f32 1.0, %v3976_v15  ;;  %v4650_v41 = vpop.eup %4649 }
 0x7ae   : > { %v3963_v50 = vmul.f32 %v4646_v18, %v3962_v48  ;;  %v4652_v20 = vpop.eup %4651  ;;  %v3333_v21 = vadd.f32 1.0, %v4650_v41  ;;  %v3336_v24 = vmul.f32 -0.5, %v4650_v41  ;;  %v3339_v62 = vand.u32 2147483647, %v4650_v41 }
 0x7af   : > { %v3978_v2 = vmul.f32 %v4648_v53, %v3977_v23  ;;  %v3342_v51 = vadd.f32 1.0, %v4652_v20  ;;  %v3345_v37 = vmul.f32 -0.5, %v4652_v20 }
 0x7b0   : > { %v3964_v28 = vadd.f32 %v4646_v18, %v3963_v50  ;;  %4653 = vlog2.f32 %v3333_v21  ;;  %v3337_v57 = vadd.f32 1.0, %v3336_v24  ;;  %vm3340_vm1 = vcmp.lt.f32.partialorder %v3339_v62, 0.0004427343 }
 0x7b1   : > { %v3979_v38 = vadd.f32 %v4648_v53, %v3978_v2  ;;  %4655 = vlog2.f32 %v3342_v51  ;;  %v3346_v3 = vadd.f32 1.0, %v3345_v37 }
 0x7b2   : > { %v3968_v31 = vsel %vm3967_vm10, %v4646_v18, %v3964_v28  ;;  %v3348_v18 = vand.u32 2147483647, %v4652_v20  ;;  %v3338_v11 = vmul.f32 %v4650_v41, %v3337_v57 }
 0x7b3   : > { %v3973_v30 = vsel %vm3970_vm12, %v3972_v26, %v3968_v31  ;;  %v3983_v54 = vsel %vm3982_vm13, %v4648_v53, %v3979_v38  ;;  %v3347_v52 = vmul.f32 %v4652_v20, %v3346_v3 }
 0x7b4   : > { %v4101_v8 = vsel %vm4098_vm15, %v3973_v30, %v4060_v59  ;;  %v3988_v58 = vsel %vm3985_vm14, %v3987_v27, %v3983_v54  ;;  %vm3349_vm2 = vcmp.lt.f32.partialorder %v3348_v18, 0.0004427343  ;;  %v3229_v59 = vmax.f32 %v6609_v35, 0.0 }
 0x7b5   : > { %v4109_v63 = vsel %vm355_vm0, %v4101_v8, %v4084_v55  ;;  %v4102_v44 = vsel %vm4098_vm15, %v3988_v58, %v4061_v22  ;;  %v4065_v54 = vrot.slane %v3230_v29, 5 }
 0x7b6   : > { %4117 = vst [vmem:[%s6533_s28 + $0x10] sm:$0x1f] %v4109_v63  ;;  %v4110_v0 = vsel %vm355_vm0, %v4102_v44, %v4085_v16  ;;  %v4654_v1 = vpop.eup %4653  ;;  %v4064_v36 = vrot.slane %v3229_v59, 5 }
 0x7b7   : > { %4118 = vst [vmem:[%s6533_s28 + $0x18] sm:$0x1f] %v4110_v0  ;;  %v4656_v17 = vpop.eup %4655  ;;  %v3335_v60 = vmul.f32 0.6931472, %v4654_v1 }
 0x7b8   : > { %v3344_v49 = vmul.f32 0.6931472, %v4656_v17 }
 0x7b9   : > { %v3341_v15 = vsel %vm3340_vm1, %v3338_v11, %v3335_v60 }
 0x7ba   : > { %v3350_v48 = vsel %vm3349_vm2, %v3347_v52, %v3344_v49  ;;  %v3357_v7 = vadd.f32 %v3341_v15, %v3229_v59 }
 0x7bb   : > { %v3358_v23 = vadd.f32 %v3350_v48, %v3230_v29 }
 0x7bc   : > { %v3365_v43 = vsel %vm3237_vm3, %v6609_v35, %v3357_v7 }
 0x7bd   : > { %v3366_v4 = vsel %vm3238_vm4, %v6615_v33, %v3358_v23  ;;  %v3373_v38 = vadd.f32 0.01, %v3365_v43 }
 0x7be   : > { %v3374_v35 = vadd.f32 0.01, %v3366_v4 }
 0x7bf   : > { %v4088_v8 = vrot.slane %v3373_v38, 5 }
 0x7c0   : > { %v4089_v44 = vrot.slane %v3374_v35, 5 }
 0x7c5   : > { %v3881_v56 = vpop.f32.mrf.mxu2 }
 0x7c6   : > { %v3882_v13 = vadd.f32 %v3881_v56, %v6507_v47  ;;  %v3894_v46 = vpop.f32.mrf.mxu3 }
 0x7c7   : > { %v3895_v40 = vadd.f32 %v3894_v46, %v6507_v47 }
 0x7c8   : > { %v4524_v42 = vmul.f32 -1.442695, %v3882_v13 }
 0x7c9   : > { %v4525_v5 = vmul.f32 -1.442695, %v3895_v40 }
 0x7ca   : > { %4657 = vpow2.f32 %v4524_v42 }
 0x7cb   : > { %4659 = vpow2.f32 %v4525_v5 }
 0x7cd   : > { %v3883_v25 = vpop.f32.mrf.mxu2 }
 0x7ce   : > { %v3896_v61 = vpop.f32.mrf.mxu3 }
 0x7d0   : > { %v4658_v39 = vpop.eup %4657 }
 0x7d1   : > { %v4660_v12 = vpop.eup %4659  ;;  %v3928_v47 = vadd.f32 1.0, %v4658_v39 }
 0x7d2   : > { %v3929_v53 = vadd.f32 1.0, %v4660_v12 }
 0x7d3   : > { %4661 = vrcp.f32 %v3928_v47  ;;  %v4031_v9 = vand.u32 2147483648, %v3928_v47  ;;  %v4029_v22 = vand.u32 2147483647, %v3928_v47  ;;  %vm4025_vm7 = vweird.f32 %v3928_v47 }
 0x7d4   : > { %4663 = vrcp.f32 %v3929_v53  ;;  %v4046_v26 = vand.u32 2147483648, %v3929_v53  ;;  %v4044_v31 = vand.u32 2147483647, %v3929_v53  ;;  %vm4040_vm9 = vweird.f32 %v3929_v53 }
 0x7d5   : > { %v4032_v33 = vor.u32 1.1754944e-38, %v4031_v9  ;;  %vm4030_vm10 = vcmp.eq.f32.partialorder %v4029_v22, 8.507059e+37 }
 0x7d6   : > { %v4047_v45 = vor.u32 1.1754944e-38, %v4046_v26  ;;  %vm4045_vm12 = vcmp.eq.f32.partialorder %v4044_v31, 8.507059e+37 }
 0x7d9   : > { %v4662_v34 = vpop.eup %4661 }
 0x7da   : > { %v4664_v50 = vpop.eup %4663  ;;  %v4021_v10 = vmul.f32 %v4662_v34, %v3928_v47  ;;  %vm4026_vm5 = vweird.f32 %v4662_v34 }
 0x7db   : > { %v4036_v6 = vmul.f32 %v4664_v50, %v3929_v53  ;;  %vm4041_vm6 = vweird.f32 %v4664_v50  ;;  %vm4027_vm8 = vmor %vm4025_vm7, %vm4026_vm5 }
 0x7dc   : > { %v4022_v2 = vsub.f32 1.0, %v4021_v10  ;;  %vm4042_vm11 = vmor %vm4040_vm9, %vm4041_vm6 }
 0x7dd   : > { %v4037_v14 = vsub.f32 1.0, %v4036_v6 }
 0x7de   : > { %v4023_v28 = vmul.f32 %v4662_v34, %v4022_v2 }
 0x7df   : > { %v4038_v55 = vmul.f32 %v4664_v50, %v4037_v14 }
 0x7e0   : > { %v4024_v27 = vadd.f32 %v4662_v34, %v4023_v28 }
 0x7e1   : > { %v4039_v30 = vadd.f32 %v4664_v50, %v4038_v55 }
 0x7e2   : > { %v4028_v16 = vsel %vm4027_vm8, %v4662_v34, %v4024_v27 }
 0x7e3   : > { %v4033_v58 = vsel %vm4030_vm10, %v4032_v33, %v4028_v16  ;;  %v4043_v63 = vsel %vm4042_vm11, %v4664_v50, %v4039_v30 }
 0x7e4   : > { %v4105_v0 = vsel %vm4098_vm15, %v4033_v58, %v4064_v36  ;;  %v4048_v19 = vsel %vm4045_vm12, %v4047_v45, %v4043_v63 }
 0x7e5   : > { %v4113_v32 = vsel %vm355_vm0, %v4105_v0, %v4088_v8  ;;  %v4106_v41 = vsel %vm4098_vm15, %v4048_v19, %v4065_v54 }
 0x7e6   : > { %4121 = vst [vmem:[%s6533_s28 + $0x30] sm:$0x1f] %v4113_v32  ;;  %v4114_v20 = vsel %vm355_vm0, %v4106_v41, %v4089_v44 }
 0x7e7   : > { %4122 = vst [vmem:[%s6533_s28 + $0x38] sm:$0x1f] %v4114_v20 }
 0x7e8   : > { %4692 = shalt.err (!%p4689_p5)
}
 0x7e9   : > { %4557 = dma.vmem_to_hbm [thread:$0]  (%p4789_p6), %s4138_s16, 1024, %s4140_s5, %s4124_s6  }
 0x7ea PF: > { %s4151_s8 = sand.u32 1, %s4715_s12   ;;  %p4560_p7 = pnand %p4207_p9, %p4793_p8 }
 0x7eb   : > { %s4152_s25 = scalar_lea.sflag [#allocation4], %s4151_s8 }
 0x7ec   : > { %p4561_p10 = pneg %p4560_p7 }
 0x7ee   : > { %4710 = dma.done.wait (%p4561_p10), %s4152_s25, 1024  }
 0x7ef   : > { %4712 = vsyncadd (%p4561_p10), %s4152_s25, 4294966272  ;;  %p13_p11 = scmp.ge.s32.totalorder %s4774_s18, 4   ;;  %s6862_s12 = smov %s4719_s13 }
 0x7f0   : > { %s6863_s13 = smov %s4723_s14  ;;  %s6864_s14 = smov %s4787_s21 }
 0x7f1   : > { %s6865_s15 = smov %s4774_s18  ;;  %15 = sbr.rel (!%p13_p11) target bundleno = 3 (0x3), region = 95 }
 0x7f6   :  { %4158 = vsyncpa [#allocation4], 1 }
 0x7f7   :  { %4160 = vsyncpa [#allocation4 + $0x1], 1 }

</bundles_post_ra>
